<compile_context>
chip_gen: v7x
topology: tpu7x:2x2x1
jax: 0.10.0
libtpu: 0.0.40
codegen_flags: <defaults>
</compile_context>

<pallas_src>
import jax
import jax.numpy as jnp
from jax.experimental import pallas as pl
from jax.experimental.pallas import tpu as pltpu


_VMEM_LIMIT = 32 * 1024 * 1024  # fits physical VMEM on v5e/v6e/v7x, >= defaults


# ----------------------------- Pallas kernels ------------------------------

def _conv_relu_pool_kernel(a_ref, b_ref, c_ref, d_ref, w_ref, bias_ref, o_ref):
    # a/b/c/d: (tm, K) im2col rows for the 4 positions of each 2x2 pool window
    # w: (K, N), bias: (1, N) -> o: (tm, N) pooled+ReLU'd conv output
    w = w_ref[...]
    m0 = jnp.dot(a_ref[...], w, preferred_element_type=jnp.float32)
    m1 = jnp.dot(b_ref[...], w, preferred_element_type=jnp.float32)
    m2 = jnp.dot(c_ref[...], w, preferred_element_type=jnp.float32)
    m3 = jnp.dot(d_ref[...], w, preferred_element_type=jnp.float32)
    m = jnp.maximum(jnp.maximum(m0, m1), jnp.maximum(m2, m3))
    o_ref[...] = jnp.maximum(m + bias_ref[...], 0.0).astype(o_ref.dtype)


def _matmul_bias_kernel(x_ref, w_ref, b_ref, o_ref):
    # x: (tm, K), w: (K, N), b: (1, N) -> o: (tm, N)
    acc = jnp.dot(x_ref[...], w_ref[...], preferred_element_type=jnp.float32)
    o_ref[...] = (acc + b_ref[...]).astype(o_ref.dtype)


# ----------------------------- wrappers -------------------------------------

def conv_relu_pool(views, w, bias, *, bm=512):
    """views: 4 arrays (M, K) (pool-partner im2col rows), w: (K, N), bias: (N,).
    Returns (M, N) = relu(maxpool2(conv + bias)) with rows ordered (b, h2, w2)."""
    M, K = views[0].shape
    N = w.shape[1]
    tm = M if M <= bm else bm
    grid = (pl.cdiv(M, tm),)
    in_specs = ([pl.BlockSpec((tm, K), lambda i: (i, 0))] * 4 +
                [pl.BlockSpec((K, N), lambda i: (0, 0)),   # resident: fetched once
                 pl.BlockSpec((1, N), lambda i: (0, 0))])
    return pl.pallas_call(
        _conv_relu_pool_kernel,
        out_shape=jax.ShapeDtypeStruct((M, N), jnp.float32),
        grid=grid,
        in_specs=in_specs,
        out_specs=pl.BlockSpec((tm, N), lambda i: (i, 0)),
        compiler_params=pltpu.CompilerParams(
            dimension_semantics=("parallel",),
            vmem_limit_bytes=_VMEM_LIMIT),
    )(*views, w, bias.reshape(1, N).astype(jnp.float32))


def linear(x, w, b, *, bm=512):
    """(M,K) @ (K,N) + b with the N axis zero-padded to a multiple of 128 for
    lane-dense stores; padding is sliced off outside the kernel."""
    M, K = x.shape
    N = w.shape[1]
    n_pad = max(128, ((N + 127) // 128) * 128)
    if n_pad != N:
        w = jnp.pad(w, ((0, 0), (0, n_pad - N)))
        b = jnp.pad(b, ((0, n_pad - N),))
    tm = M if M <= bm else bm
    out = pl.pallas_call(
        _matmul_bias_kernel,
        out_shape=jax.ShapeDtypeStruct((M, n_pad), jnp.float32),
        grid=(pl.cdiv(M, tm),),
        in_specs=[pl.BlockSpec((tm, K), lambda i: (i, 0)),
                  pl.BlockSpec((K, n_pad), lambda i: (0, 0)),
                  pl.BlockSpec((1, n_pad), lambda i: (0, 0))],
        out_specs=pl.BlockSpec((tm, n_pad), lambda i: (i, 0)),
        compiler_params=pltpu.CompilerParams(
            dimension_semantics=("parallel",),
            vmem_limit_bytes=_VMEM_LIMIT),
    )(x, w, b.reshape(1, n_pad).astype(jnp.float32))
    return out[:, :N]


def pooled_im2col(x, k=5, pad=2, k_pad=None):
    """x: (B, H, W, C) NHWC -> 4 arrays (B*(H//2)*(W//2), C*k*k), one per 2x2
    pool position.  Patch columns are flattened (c, kh, kw)-major to match the
    torch Conv2d weight (Cout, Cin, KH, KW).reshape ordering.  Optionally zero-
    pads K up to `k_pad` columns (8-aligned sublanes)."""
    B, H, W, C = x.shape
    assert H % 2 == 0 and W % 2 == 0
    H2, W2 = H // 2, W // 2
    K = C * k * k
    xp = jnp.pad(x, ((0, 0), (pad, pad), (pad, pad), (0, 0)))
    views = []
    for ph in (0, 1):
        for pw in (0, 1):
            patches = []
            for kh in range(k):
                for kw in range(k):
                    r0, c0 = ph + kh, pw + kw
                    # output rows 2*h2+ph, cols 2*w2+pw  ->  stride-2 slices
                    patches.append(xp[:, r0:r0 + H:2, c0:c0 + W:2, :])
            p = jnp.stack(patches, axis=-1)          # (B, H2, W2, C, k*k)
            p = p.reshape(B * H2 * W2, K)            # columns ordered (c, kh, kw)
            if k_pad is not None and k_pad > K:
                p = jnp.pad(p, ((0, 0), (0, k_pad - K)))
            views.append(p)
    return views


# ----------------------------- model ----------------------------------------

def init_params(key):
    k1, k2, k3, k4, k5, k6 = jax.random.split(key, 6)
    scale = 0.05
    return {
        "conv1_w": scale * jax.random.normal(k1, (16, 1, 5, 5), jnp.float32),
        "conv1_b": scale * jax.random.normal(k2, (16,), jnp.float32),
        "conv2_w": scale * jax.random.normal(k3, (32, 16, 5, 5), jnp.float32),
        "conv2_b": scale * jax.random.normal(k4, (32,), jnp.float32),
        "fc_w":    scale * jax.random.normal(k5, (10, 32 * 7 * 7), jnp.float32),
        "fc_b":    scale * jax.random.normal(k6, (10,), jnp.float32),
    }


@jax.jit
def cnn_forward(x_nchw, params):
    B = x_nchw.shape[0]
    x = jnp.transpose(x_nchw, (0, 2, 3, 1))                  # NCHW -> NHWC

    # conv1 (1->16, 5x5, pad 2) + ReLU + MaxPool2, one fused Pallas kernel.
    v1 = pooled_im2col(x, k=5, pad=2, k_pad=32)              # 4 x (B*196, 32)
    w1 = params["conv1_w"].reshape(16, 25).T                 # (25, 16)
    w1 = jnp.pad(w1, ((0, 32 - 25), (0, 0)))                 # (32, 16)  K-pad
    y1 = conv_relu_pool(v1, w1, params["conv1_b"])           # (B*196, 16)
    y1 = y1.reshape(B, 14, 14, 16)                           # NHWC

    # conv2 (16->32, 5x5, pad 2) + ReLU + MaxPool2, one fused Pallas kernel.
    v2 = pooled_im2col(y1, k=5, pad=2)                       # 4 x (B*49, 400)
    w2 = params["conv2_w"].reshape(32, 400).T                # (400, 32)
    y2 = conv_relu_pool(v2, w2, params["conv2_b"])           # (B*49, 32)

    # Linear: avoid transposing activations to NCHW — permute fc weight columns
    # once so the NHWC flatten (h, w, c) can be used directly.
    feat = y2.reshape(B, 7 * 7 * 32)                         # (B, 1568) NHWC order
    fc_w = params["fc_w"].reshape(10, 32, 7, 7)              # (o, c, h, w)
    fc_w = jnp.transpose(fc_w, (2, 3, 1, 0)).reshape(7 * 7 * 32, 10)
    out = linear(feat, fc_w, params["fc_b"])                 # (B, 10)
    return out


if __name__ == "__main__":
    key = jax.random.PRNGKey(0)
    pkey, xkey = jax.random.split(key)
    params = init_params(pkey)
    # Linear(32*7*7, 10) implies 28x28 spatial input (MNIST-like), 1 channel.
    x = jax.random.normal(xkey, (2, 1, 28, 28), jnp.float32)
    out = cnn_forward(x, params)
    out = jax.block_until_ready(out)
    assert out.shape == (2, 10)
    assert bool(jnp.all(jnp.isfinite(out)))
    print("KERNEL_OK")
</pallas_src>

<mosaic_0001>
module attributes {stable_mosaic.version = 11 : i64} {
  func.func @_conv_relu_pool_kernel(%arg0: i32, %arg1: memref<392x32xf32, #tpu.memory_space<vmem>>, %arg2: memref<392x32xf32, #tpu.memory_space<vmem>>, %arg3: memref<392x32xf32, #tpu.memory_space<vmem>>, %arg4: memref<392x32xf32, #tpu.memory_space<vmem>>, %arg5: memref<32x16xf32, #tpu.memory_space<vmem>>, %arg6: memref<1x16xf32, #tpu.memory_space<vmem>>, %arg7: memref<392x16xf32, #tpu.memory_space<vmem>>) attributes {dimension_semantics = [#tpu.dimension_semantics<parallel>], iteration_bounds = array<i64: 1>, scalar_prefetch = 0 : i64, scratch_operands = 0 : i64, tpu.core_type = #tpu.core_type<tc>, window_params = [{transform_indices = @transform_0, window_bounds = array<i64: 392, 32>}, {transform_indices = @transform_1, window_bounds = array<i64: 392, 32>}, {transform_indices = @transform_2, window_bounds = array<i64: 392, 32>}, {transform_indices = @transform_3, window_bounds = array<i64: 392, 32>}, {pipeline_mode = #tpu.pipeline_mode<synchronous>, transform_indices = @transform_4, window_bounds = array<i64: 32, 16>}, {pipeline_mode = #tpu.pipeline_mode<synchronous>, transform_indices = @transform_5, window_bounds = array<i64: 1, 16>}, {transform_indices = @transform_6, window_bounds = array<i64: 392, 16>}]} {
    %c0 = arith.constant 0 : index
    %c0_0 = arith.constant 0 : index
    %0 = vector.load %arg5[%c0, %c0_0] : memref<32x16xf32, #tpu.memory_space<vmem>>, vector<32x16xf32>
    %c0_1 = arith.constant 0 : index
    %c0_2 = arith.constant 0 : index
    %1 = vector.load %arg1[%c0_1, %c0_2] : memref<392x32xf32, #tpu.memory_space<vmem>>, vector<392x32xf32>
    %cst = arith.constant dense<0.000000e+00> : vector<392x16xf32>
    %2 = tpu.matmul %1, %0, %cst {dimension_numbers = #tpu.dot_dimension_numbers<[1], [0], [0], [1], [0, 0, 1, 1], [], []>} : vector<392x32xf32>, vector<32x16xf32>, vector<392x16xf32> -> vector<392x16xf32>
    %c0_3 = arith.constant 0 : index
    %c0_4 = arith.constant 0 : index
    %3 = vector.load %arg2[%c0_3, %c0_4] : memref<392x32xf32, #tpu.memory_space<vmem>>, vector<392x32xf32>
    %cst_5 = arith.constant dense<0.000000e+00> : vector<392x16xf32>
    %4 = tpu.matmul %3, %0, %cst_5 {dimension_numbers = #tpu.dot_dimension_numbers<[1], [0], [0], [1], [0, 0, 1, 1], [], []>} : vector<392x32xf32>, vector<32x16xf32>, vector<392x16xf32> -> vector<392x16xf32>
    %c0_6 = arith.constant 0 : index
    %c0_7 = arith.constant 0 : index
    %5 = vector.load %arg3[%c0_6, %c0_7] : memref<392x32xf32, #tpu.memory_space<vmem>>, vector<392x32xf32>
    %cst_8 = arith.constant dense<0.000000e+00> : vector<392x16xf32>
    %6 = tpu.matmul %5, %0, %cst_8 {dimension_numbers = #tpu.dot_dimension_numbers<[1], [0], [0], [1], [0, 0, 1, 1], [], []>} : vector<392x32xf32>, vector<32x16xf32>, vector<392x16xf32> -> vector<392x16xf32>
    %c0_9 = arith.constant 0 : index
    %c0_10 = arith.constant 0 : index
    %7 = vector.load %arg4[%c0_9, %c0_10] : memref<392x32xf32, #tpu.memory_space<vmem>>, vector<392x32xf32>
    %cst_11 = arith.constant dense<0.000000e+00> : vector<392x16xf32>
    %8 = tpu.matmul %7, %0, %cst_11 {dimension_numbers = #tpu.dot_dimension_numbers<[1], [0], [0], [1], [0, 0, 1, 1], [], []>} : vector<392x32xf32>, vector<32x16xf32>, vector<392x16xf32> -> vector<392x16xf32>
    %9 = arith.maximumf %2, %4 : vector<392x16xf32>
    %10 = arith.maximumf %6, %8 : vector<392x16xf32>
    %11 = arith.maximumf %9, %10 : vector<392x16xf32>
    %c0_12 = arith.constant 0 : index
    %c0_13 = arith.constant 0 : index
    %12 = vector.load %arg6[%c0_12, %c0_13] : memref<1x16xf32, #tpu.memory_space<vmem>>, vector<1x16xf32>
    %13 = vector.broadcast %12 : vector<1x16xf32> to vector<392x16xf32>
    %14 = arith.addf %11, %13 : vector<392x16xf32>
    %cst_14 = arith.constant 0.000000e+00 : f32
    %15 = vector.broadcast %cst_14 : f32 to vector<392x16xf32>
    %16 = arith.maximumf %14, %15 : vector<392x16xf32>
    %c0_15 = arith.constant 0 : index
    %c0_16 = arith.constant 0 : index
    %17 = vector.load %arg7[%c0_15, %c0_16] : memref<392x16xf32, #tpu.memory_space<vmem>>, vector<392x16xf32>
    tpu.vector_store %arg7[%c0_15, %c0_16], %16 {strides = array<i32>} : memref<392x16xf32, #tpu.memory_space<vmem>>, vector<392x16xf32>,
    return
  }
  func.func @transform_0(%arg0: i32) -> (i32, i32) {
    %c0_i32 = arith.constant 0 : i32
    %c0_i32_0 = arith.constant 0 : i32
    return %arg0, %c0_i32 : i32, i32
  }
  func.func @transform_1(%arg0: i32) -> (i32, i32) {
    %c0_i32 = arith.constant 0 : i32
    %c0_i32_0 = arith.constant 0 : i32
    return %arg0, %c0_i32 : i32, i32
  }
  func.func @transform_2(%arg0: i32) -> (i32, i32) {
    %c0_i32 = arith.constant 0 : i32
    %c0_i32_0 = arith.constant 0 : i32
    return %arg0, %c0_i32 : i32, i32
  }
  func.func @transform_3(%arg0: i32) -> (i32, i32) {
    %c0_i32 = arith.constant 0 : i32
    %c0_i32_0 = arith.constant 0 : i32
    return %arg0, %c0_i32 : i32, i32
  }
  func.func @transform_4(%arg0: i32) -> (i32, i32) {
    %c0_i32 = arith.constant 0 : i32
    %c0_i32_0 = arith.constant 0 : i32
    %c0_i32_1 = arith.constant 0 : i32
    return %c0_i32, %c0_i32_0 : i32, i32
  }
  func.func @transform_5(%arg0: i32) -> (i32, i32) {
    %c0_i32 = arith.constant 0 : i32
    %c0_i32_0 = arith.constant 0 : i32
    %c0_i32_1 = arith.constant 0 : i32
    return %c0_i32, %c0_i32_0 : i32, i32
  }
  func.func @transform_6(%arg0: i32) -> (i32, i32) {
    %c0_i32 = arith.constant 0 : i32
    %c0_i32_0 = arith.constant 0 : i32
    return %arg0, %c0_i32 : i32, i32
  }
}

module attributes {stable_mosaic.version = 11 : i64} {
  func.func @_conv_relu_pool_kernel(%arg0: i32, %arg1: memref<98x400xf32, #tpu.memory_space<vmem>>, %arg2: memref<98x400xf32, #tpu.memory_space<vmem>>, %arg3: memref<98x400xf32, #tpu.memory_space<vmem>>, %arg4: memref<98x400xf32, #tpu.memory_space<vmem>>, %arg5: memref<400x32xf32, #tpu.memory_space<vmem>>, %arg6: memref<1x32xf32, #tpu.memory_space<vmem>>, %arg7: memref<98x32xf32, #tpu.memory_space<vmem>>) attributes {dimension_semantics = [#tpu.dimension_semantics<parallel>], iteration_bounds = array<i64: 1>, scalar_prefetch = 0 : i64, scratch_operands = 0 : i64, tpu.core_type = #tpu.core_type<tc>, window_params = [{transform_indices = @transform_0, window_bounds = array<i64: 98, 400>}, {transform_indices = @transform_1, window_bounds = array<i64: 98, 400>}, {transform_indices = @transform_2, window_bounds = array<i64: 98, 400>}, {transform_indices = @transform_3, window_bounds = array<i64: 98, 400>}, {pipeline_mode = #tpu.pipeline_mode<synchronous>, transform_indices = @transform_4, window_bounds = array<i64: 400, 32>}, {pipeline_mode = #tpu.pipeline_mode<synchronous>, transform_indices = @transform_5, window_bounds = array<i64: 1, 32>}, {transform_indices = @transform_6, window_bounds = array<i64: 98, 32>}]} {
    %c0 = arith.constant 0 : index
    %c0_0 = arith.constant 0 : index
    %0 = vector.load %arg5[%c0, %c0_0] : memref<400x32xf32, #tpu.memory_space<vmem>>, vector<400x32xf32>
    %c0_1 = arith.constant 0 : index
    %c0_2 = arith.constant 0 : index
    %1 = vector.load %arg1[%c0_1, %c0_2] : memref<98x400xf32, #tpu.memory_space<vmem>>, vector<98x400xf32>
    %cst = arith.constant dense<0.000000e+00> : vector<98x32xf32>
    %2 = tpu.matmul %1, %0, %cst {dimension_numbers = #tpu.dot_dimension_numbers<[1], [0], [0], [1], [0, 0, 1, 1], [], []>} : vector<98x400xf32>, vector<400x32xf32>, vector<98x32xf32> -> vector<98x32xf32>
    %c0_3 = arith.constant 0 : index
    %c0_4 = arith.constant 0 : index
    %3 = vector.load %arg2[%c0_3, %c0_4] : memref<98x400xf32, #tpu.memory_space<vmem>>, vector<98x400xf32>
    %cst_5 = arith.constant dense<0.000000e+00> : vector<98x32xf32>
    %4 = tpu.matmul %3, %0, %cst_5 {dimension_numbers = #tpu.dot_dimension_numbers<[1], [0], [0], [1], [0, 0, 1, 1], [], []>} : vector<98x400xf32>, vector<400x32xf32>, vector<98x32xf32> -> vector<98x32xf32>
    %c0_6 = arith.constant 0 : index
    %c0_7 = arith.constant 0 : index
    %5 = vector.load %arg3[%c0_6, %c0_7] : memref<98x400xf32, #tpu.memory_space<vmem>>, vector<98x400xf32>
    %cst_8 = arith.constant dense<0.000000e+00> : vector<98x32xf32>
    %6 = tpu.matmul %5, %0, %cst_8 {dimension_numbers = #tpu.dot_dimension_numbers<[1], [0], [0], [1], [0, 0, 1, 1], [], []>} : vector<98x400xf32>, vector<400x32xf32>, vector<98x32xf32> -> vector<98x32xf32>
    %c0_9 = arith.constant 0 : index
    %c0_10 = arith.constant 0 : index
    %7 = vector.load %arg4[%c0_9, %c0_10] : memref<98x400xf32, #tpu.memory_space<vmem>>, vector<98x400xf32>
    %cst_11 = arith.constant dense<0.000000e+00> : vector<98x32xf32>
    %8 = tpu.matmul %7, %0, %cst_11 {dimension_numbers = #tpu.dot_dimension_numbers<[1], [0], [0], [1], [0, 0, 1, 1], [], []>} : vector<98x400xf32>, vector<400x32xf32>, vector<98x32xf32> -> vector<98x32xf32>
    %9 = arith.maximumf %2, %4 : vector<98x32xf32>
    %10 = arith.maximumf %6, %8 : vector<98x32xf32>
    %11 = arith.maximumf %9, %10 : vector<98x32xf32>
    %c0_12 = arith.constant 0 : index
    %c0_13 = arith.constant 0 : index
    %12 = vector.load %arg6[%c0_12, %c0_13] : memref<1x32xf32, #tpu.memory_space<vmem>>, vector<1x32xf32>
    %13 = vector.broadcast %12 : vector<1x32xf32> to vector<98x32xf32>
    %14 = arith.addf %11, %13 : vector<98x32xf32>
    %cst_14 = arith.constant 0.000000e+00 : f32
    %15 = vector.broadcast %cst_14 : f32 to vector<98x32xf32>
    %16 = arith.maximumf %14, %15 : vector<98x32xf32>
    %c0_15 = arith.constant 0 : index
    %c0_16 = arith.constant 0 : index
    %17 = vector.load %arg7[%c0_15, %c0_16] : memref<98x32xf32, #tpu.memory_space<vmem>>, vector<98x32xf32>
    tpu.vector_store %arg7[%c0_15, %c0_16], %16 {strides = array<i32>} : memref<98x32xf32, #tpu.memory_space<vmem>>, vector<98x32xf32>,
    return
  }
  func.func @transform_0(%arg0: i32) -> (i32, i32) {
    %c0_i32 = arith.constant 0 : i32
    %c0_i32_0 = arith.constant 0 : i32
    return %arg0, %c0_i32 : i32, i32
  }
  func.func @transform_1(%arg0: i32) -> (i32, i32) {
    %c0_i32 = arith.constant 0 : i32
    %c0_i32_0 = arith.constant 0 : i32
    return %arg0, %c0_i32 : i32, i32
  }
  func.func @transform_2(%arg0: i32) -> (i32, i32) {
    %c0_i32 = arith.constant 0 : i32
    %c0_i32_0 = arith.constant 0 : i32
    return %arg0, %c0_i32 : i32, i32
  }
  func.func @transform_3(%arg0: i32) -> (i32, i32) {
    %c0_i32 = arith.constant 0 : i32
    %c0_i32_0 = arith.constant 0 : i32
    return %arg0, %c0_i32 : i32, i32
  }
  func.func @transform_4(%arg0: i32) -> (i32, i32) {
    %c0_i32 = arith.constant 0 : i32
    %c0_i32_0 = arith.constant 0 : i32
    %c0_i32_1 = arith.constant 0 : i32
    return %c0_i32, %c0_i32_0 : i32, i32
  }
  func.func @transform_5(%arg0: i32) -> (i32, i32) {
    %c0_i32 = arith.constant 0 : i32
    %c0_i32_0 = arith.constant 0 : i32
    %c0_i32_1 = arith.constant 0 : i32
    return %c0_i32, %c0_i32_0 : i32, i32
  }
  func.func @transform_6(%arg0: i32) -> (i32, i32) {
    %c0_i32 = arith.constant 0 : i32
    %c0_i32_0 = arith.constant 0 : i32
    return %arg0, %c0_i32 : i32, i32
  }
}

module attributes {stable_mosaic.version = 11 : i64} {
  func.func @_matmul_bias_kernel(%arg0: i32, %arg1: memref<2x1568xf32, #tpu.memory_space<vmem>>, %arg2: memref<1568x128xf32, #tpu.memory_space<vmem>>, %arg3: memref<1x128xf32, #tpu.memory_space<vmem>>, %arg4: memref<2x128xf32, #tpu.memory_space<vmem>>) attributes {dimension_semantics = [#tpu.dimension_semantics<parallel>], iteration_bounds = array<i64: 1>, scalar_prefetch = 0 : i64, scratch_operands = 0 : i64, tpu.core_type = #tpu.core_type<tc>, window_params = [{transform_indices = @transform_0, window_bounds = array<i64: 2, 1568>}, {pipeline_mode = #tpu.pipeline_mode<synchronous>, transform_indices = @transform_1, window_bounds = array<i64: 1568, 128>}, {pipeline_mode = #tpu.pipeline_mode<synchronous>, transform_indices = @transform_2, window_bounds = array<i64: 1, 128>}, {transform_indices = @transform_3, window_bounds = array<i64: 2, 128>}]} {
    %c0 = arith.constant 0 : index
    %c0_0 = arith.constant 0 : index
    %0 = vector.load %arg1[%c0, %c0_0] : memref<2x1568xf32, #tpu.memory_space<vmem>>, vector<2x1568xf32>
    %c0_1 = arith.constant 0 : index
    %c0_2 = arith.constant 0 : index
    %1 = vector.load %arg2[%c0_1, %c0_2] : memref<1568x128xf32, #tpu.memory_space<vmem>>, vector<1568x128xf32>
    %cst = arith.constant dense<0.000000e+00> : vector<2x128xf32>
    %2 = tpu.matmul %0, %1, %cst {dimension_numbers = #tpu.dot_dimension_numbers<[1], [0], [0], [1], [0, 0, 1, 1], [], []>} : vector<2x1568xf32>, vector<1568x128xf32>, vector<2x128xf32> -> vector<2x128xf32>
    %c0_3 = arith.constant 0 : index
    %c0_4 = arith.constant 0 : index
    %3 = vector.load %arg3[%c0_3, %c0_4] : memref<1x128xf32, #tpu.memory_space<vmem>>, vector<1x128xf32>
    %4 = vector.broadcast %3 : vector<1x128xf32> to vector<2x128xf32>
    %5 = arith.addf %2, %4 : vector<2x128xf32>
    %c0_5 = arith.constant 0 : index
    %c0_6 = arith.constant 0 : index
    %6 = vector.load %arg4[%c0_5, %c0_6] : memref<2x128xf32, #tpu.memory_space<vmem>>, vector<2x128xf32>
    tpu.vector_store %arg4[%c0_5, %c0_6], %5 {strides = array<i32>} : memref<2x128xf32, #tpu.memory_space<vmem>>, vector<2x128xf32>,
    return
  }
  func.func @transform_0(%arg0: i32) -> (i32, i32) {
    %c0_i32 = arith.constant 0 : i32
    %c0_i32_0 = arith.constant 0 : i32
    return %arg0, %c0_i32 : i32, i32
  }
  func.func @transform_1(%arg0: i32) -> (i32, i32) {
    %c0_i32 = arith.constant 0 : i32
    %c0_i32_0 = arith.constant 0 : i32
    %c0_i32_1 = arith.constant 0 : i32
    return %c0_i32, %c0_i32_0 : i32, i32
  }
  func.func @transform_2(%arg0: i32) -> (i32, i32) {
    %c0_i32 = arith.constant 0 : i32
    %c0_i32_0 = arith.constant 0 : i32
    %c0_i32_1 = arith.constant 0 : i32
    return %c0_i32, %c0_i32_0 : i32, i32
  }
  func.func @transform_3(%arg0: i32) -> (i32, i32) {
    %c0_i32 = arith.constant 0 : i32
    %c0_i32_0 = arith.constant 0 : i32
    return %arg0, %c0_i32 : i32, i32
  }
}

</mosaic_0001>

<bundles_post_ra>
// kernel: cnn_forward.3
= control target key start
LH: loop header
LB: loop body
LE: loop exit
PB: predicated region body
PF: predicated region fallthrough
CT: control target
= control target key end

     0   :  { %v3414_v0 = vmov 0.0|0.0   ;;  %vm3415_vm0 = vmmov 0   ;;  %v3416_v6 = vmov 0.0   ;;  %vm76_vm1 = vcmask 261120   ;;  %s5331_s4 = inlined_call_operand.vmem [shape: f32[32,16], index: 4, kind: input, shape index: {}]   ;;  %s5332_s0 = inlined_call_operand.vmem [shape: f32[392,32], index: 0, kind: input, shape index: {}]   ;;  %s5333_s1 = inlined_call_operand.vmem [shape: f32[392,32], index: 1, kind: input, shape index: {}]   ;;  %s5334_s2 = inlined_call_operand.vmem [shape: f32[392,32], index: 2, kind: input, shape index: {}]   ;;  %s5335_s3 = inlined_call_operand.vmem [shape: f32[392,32], index: 3, kind: input, shape index: {}]   ;;  %s5336_s5 = inlined_call_operand.vmem [shape: f32[1,16], index: 5, kind: input, shape index: {}]   ;;  %s5337_s6 = inlined_call_operand.vmem [shape: f32[392,16], index: 6, kind: output, shape index: {}]  }
   0x1   :  { %3387 = vmatprep.subr.bf16.mxu0 %v3414_v0  ;;  %3393 = vmatprep.subr.bf16.mxu1 %v3414_v0  ;;  %v23_v1 = vld [vmem:[%s5331_s4] sm:$0xff]  ;;  %v24_v2 = vld [vmem:[%s5331_s4 + $0x8] sm:$0xff]  ;;  %v25_v3 = vld [vmem:[%s5331_s4 + $0x10] sm:$0xff]  ;;  %vm2304_vm2 = vcmask 130048  }
   0x2   :  { %v3388_v4 = vpack.c.bf16 %v24_v2, %v23_v1  ;;  %v26_v5 = vld [vmem:[%s5331_s4 + $0x18] sm:$0xff]  ;;  %2775 = vmatprep.mubr.msk.f32.mxu0 %vm3415_vm0, %v3416_v6  ;;  %2930 = vmatprep.mubr.msk.f32.mxu1 %vm3415_vm0, %v3416_v6  ;;  %v27_v8 = vld [vmem:[%s5332_s0] sm:$0xff]  ;;  %v28_v10 = vld [vmem:[%s5332_s0 + $0x8] sm:$0xff] }
   0x3   :  { %v3391_v7 = vpack.c.bf16 %v26_v5, %v25_v3  ;;  %v534_v9 = vld [vmem:[%s5333_s1] sm:$0xff]  ;;  %v535_v11 = vld [vmem:[%s5333_s1 + $0x8] sm:$0xff]  ;;  %v29_v12 = vld [vmem:[%s5332_s0 + $0x10] sm:$0xff] }
   0x4   :  { %3389 = vmatpush3.bf16.msra.mxu0 %v3388_v4  ;;  %3395 = vmatpush3.bf16.msra.mxu1 %v3388_v4  ;;  %v536_v13 = vld [vmem:[%s5333_s1 + $0x10] sm:$0xff]  ;;  %v30_v14 = vld [vmem:[%s5332_s0 + $0x18] sm:$0xff]  ;;  %v31_v16 = vld [vmem:[%s5332_s0 + $0x20] sm:$0xff] }
   0x5   :  { %3390 = vmatprep.subr.bf16.mxu0 %v3414_v0  ;;  %3396 = vmatprep.subr.bf16.mxu1 %v3414_v0  ;;  %v537_v15 = vld [vmem:[%s5333_s1 + $0x18] sm:$0xff]  ;;  %v538_v17 = vld [vmem:[%s5333_s1 + $0x20] sm:$0xff]  ;;  %v32_v18 = vld [vmem:[%s5332_s0 + $0x28] sm:$0xff] }
   0x6   :  { %v539_v19 = vld [vmem:[%s5333_s1 + $0x28] sm:$0xff]  ;;  %v33_v20 = vld [vmem:[%s5332_s0 + $0x30] sm:$0xff]  ;;  %v34_v22 = vld [vmem:[%s5332_s0 + $0x38] sm:$0xff] }
   0x7   :  { %v540_v21 = vld [vmem:[%s5333_s1 + $0x30] sm:$0xff]  ;;  %v541_v23 = vld [vmem:[%s5333_s1 + $0x38] sm:$0xff]  ;;  %v35_v24 = vld [vmem:[%s5332_s0 + $0x40] sm:$0xff] }
   0x8   :  { %3392 = vmatpush3.bf16.msra.mxu0 %v3391_v7  ;;  %3398 = vmatpush3.bf16.msra.mxu1 %v3391_v7  ;;  %v542_v25 = vld [vmem:[%s5333_s1 + $0x40] sm:$0xff]  ;;  %v36_v26 = vld [vmem:[%s5332_s0 + $0x48] sm:$0xff]  ;;  %v37_v28 = vld [vmem:[%s5332_s0 + $0x50] sm:$0xff] }
   0x9   :  { %3399 = vmatprep.subr.bf16.mxu0 %v3414_v0  ;;  %3405 = vmatprep.subr.bf16.mxu1 %v3414_v0  ;;  %v543_v27 = vld [vmem:[%s5333_s1 + $0x48] sm:$0xff]  ;;  %v544_v29 = vld [vmem:[%s5333_s1 + $0x50] sm:$0xff]  ;;  %v38_v30 = vld [vmem:[%s5332_s0 + $0x58] sm:$0xff] }
   0xa   :  { %v545_v31 = vld [vmem:[%s5333_s1 + $0x58] sm:$0xff]  ;;  %v39_v32 = vld [vmem:[%s5332_s0 + $0x60] sm:$0xff]  ;;  %v40_v34 = vld [vmem:[%s5332_s0 + $0x68] sm:$0xff] }
   0xb   :  { %2776 = vmatmul.mubr.msk.f32.vlgmr.msra.gmra.mrb[0].mxu0 %vm76_vm1, %v27_v8  ;;  %2931 = vmatmul.mubr.msk.f32.vlgmr.msra.gmra.mrb[0].mxu1 %vm76_vm1, %v534_v9  ;;  %v546_v33 = vld [vmem:[%s5333_s1 + $0x60] sm:$0xff]  ;;  %v547_v35 = vld [vmem:[%s5333_s1 + $0x68] sm:$0xff]  ;;  %v41_v36 = vld [vmem:[%s5332_s0 + $0x70] sm:$0xff] }
   0xc   :  { %3401 = vmatpush3.bf16.msra.mxu0 %v3388_v4  ;;  %3407 = vmatpush3.bf16.msra.mxu1 %v3388_v4  ;;  %v548_v37 = vld [vmem:[%s5333_s1 + $0x70] sm:$0xff]  ;;  %v42_v38 = vld [vmem:[%s5332_s0 + $0x78] sm:$0xff]  ;;  %v43_v40 = vld [vmem:[%s5332_s0 + $0x80] sm:$0xff] }
   0xd   :  { %2778 = vmatprep.mubr.msk.f32.mxu0 %vm3415_vm0, %v3416_v6  ;;  %2933 = vmatprep.mubr.msk.f32.mxu1 %vm3415_vm0, %v3416_v6  ;;  %v549_v39 = vld [vmem:[%s5333_s1 + $0x78] sm:$0xff]  ;;  %v550_v41 = vld [vmem:[%s5333_s1 + $0x80] sm:$0xff]  ;;  %v44_v42 = vld [vmem:[%s5332_s0 + $0x88] sm:$0xff] }
   0xe   :  { %3402 = vmatprep.subr.bf16.mxu0 %v3414_v0  ;;  %3408 = vmatprep.subr.bf16.mxu1 %v3414_v0  ;;  %v551_v43 = vld [vmem:[%s5333_s1 + $0x88] sm:$0xff]  ;;  %v45_v44 = vld [vmem:[%s5332_s0 + $0x90] sm:$0xff]  ;;  %v46_v46 = vld [vmem:[%s5332_s0 + $0x98] sm:$0xff] }
   0xf   :  { %2779 = vmatmul.mubr.msk.f32.gmra.mrb[2].mxu0 %vm76_vm1, %v28_v10  ;;  %2934 = vmatmul.mubr.msk.f32.gmra.mrb[2].mxu1 %vm76_vm1, %v535_v11  ;;  %v552_v45 = vld [vmem:[%s5333_s1 + $0x90] sm:$0xff]  ;;  %v553_v47 = vld [vmem:[%s5333_s1 + $0x98] sm:$0xff]  ;;  %v47_v48 = vld [vmem:[%s5332_s0 + $0xa0] sm:$0xff] }
  0x10   :  { %2781 = vmatprep.mubr.msk.f32.mxu0 %vm3415_vm0, %v3416_v6  ;;  %2936 = vmatprep.mubr.msk.f32.mxu1 %vm3415_vm0, %v3416_v6  ;;  %v554_v49 = vld [vmem:[%s5333_s1 + $0xa0] sm:$0xff]  ;;  %v48_v50 = vld [vmem:[%s5332_s0 + $0xa8] sm:$0xff]  ;;  %v49_v52 = vld [vmem:[%s5332_s0 + $0xb0] sm:$0xff] }
  0x11   :  { %3404 = vmatpush3.bf16.msra.mxu0 %v3391_v7  ;;  %3410 = vmatpush3.bf16.msra.mxu1 %v3391_v7  ;;  %v555_v51 = vld [vmem:[%s5333_s1 + $0xa8] sm:$0xff]  ;;  %v556_v53 = vld [vmem:[%s5333_s1 + $0xb0] sm:$0xff]  ;;  %v50_v54 = vld [vmem:[%s5332_s0 + $0xb8] sm:$0xff] }
  0x12   :  { %v557_v55 = vld [vmem:[%s5333_s1 + $0xb8] sm:$0xff]  ;;  %v51_v56 = vld [vmem:[%s5332_s0 + $0xc0] sm:$0xff]  ;;  %v52_v58 = vld [vmem:[%s5332_s0 + $0xc8] sm:$0xff] }
  0x13   :  { %2782 = vmatmul.mubr.msk.f32.gmra.mrb[4].mxu0 %vm76_vm1, %v29_v12  ;;  %2937 = vmatmul.mubr.msk.f32.gmra.mrb[4].mxu1 %vm76_vm1, %v536_v13  ;;  %v558_v57 = vld [vmem:[%s5333_s1 + $0xc0] sm:$0xff]  ;;  %v559_v59 = vld [vmem:[%s5333_s1 + $0xc8] sm:$0xff]  ;;  %v53_v60 = vld [vmem:[%s5332_s0 + $0xd0] sm:$0xff] }
  0x14   :  { %2784 = vmatprep.mubr.msk.f32.mxu0 %vm3415_vm0, %v3416_v6  ;;  %2939 = vmatprep.mubr.msk.f32.mxu1 %vm3415_vm0, %v3416_v6  ;;  %v560_v61 = vld [vmem:[%s5333_s1 + $0xd0] sm:$0xff]  ;;  %v54_v62 = vld [vmem:[%s5332_s0 + $0xd8] sm:$0xff]  ;;  %v55_v0 = vld [vmem:[%s5332_s0 + $0xe0] sm:$0xff] }
  0x15   :  { %v561_v63 = vld [vmem:[%s5333_s1 + $0xd8] sm:$0xff]  ;;  %v562_v1 = vld [vmem:[%s5333_s1 + $0xe0] sm:$0xff]  ;;  %v56_v2 = vld [vmem:[%s5332_s0 + $0xe8] sm:$0xff] }
  0x16   :  { %v563_v3 = vld [vmem:[%s5333_s1 + $0xe8] sm:$0xff]  ;;  %v57_v4 = vld [vmem:[%s5332_s0 + $0xf0] sm:$0xff]  ;;  %v58_v7 = vld [vmem:[%s5332_s0 + $0xf8] sm:$0xff] }
  0x17   :  { %2785 = vmatmul.mubr.msk.f32.gmra.mrb[6].mxu0 %vm76_vm1, %v30_v14  ;;  %2940 = vmatmul.mubr.msk.f32.gmra.mrb[6].mxu1 %vm76_vm1, %v537_v15  ;;  %v564_v5 = vld [vmem:[%s5333_s1 + $0xf0] sm:$0xff]  ;;  %v565_v8 = vld [vmem:[%s5333_s1 + $0xf8] sm:$0xff]  ;;  %v59_v9 = vld [vmem:[%s5332_s0 + $0x100] sm:$0xff] }
  0x18   :  { %2787 = vmatprep.mubr.msk.f32.mxu0 %vm3415_vm0, %v3416_v6  ;;  %2942 = vmatprep.mubr.msk.f32.mxu1 %vm3415_vm0, %v3416_v6  ;;  %v566_v10 = vld [vmem:[%s5333_s1 + $0x100] sm:$0xff]  ;;  %v60_v11 = vld [vmem:[%s5332_s0 + $0x108] sm:$0xff]  ;;  %v61_v13 = vld [vmem:[%s5332_s0 + $0x110] sm:$0xff] }
  0x19   :  { %v567_v12 = vld [vmem:[%s5333_s1 + $0x108] sm:$0xff]  ;;  %v568_v14 = vld [vmem:[%s5333_s1 + $0x110] sm:$0xff]  ;;  %v62_v15 = vld [vmem:[%s5332_s0 + $0x118] sm:$0xff] }
  0x1b   :  { %2788 = vmatmul.mubr.msk.f32.gmra.mrb[8].mxu0 %vm76_vm1, %v31_v16  ;;  %2943 = vmatmul.mubr.msk.f32.gmra.mrb[8].mxu1 %vm76_vm1, %v538_v17  ;;  %v569_v16 = vld [vmem:[%s5333_s1 + $0x118] sm:$0xff]  ;;  %v63_v17 = vld [vmem:[%s5332_s0 + $0x120] sm:$0xff] }
  0x1c   :  { %2790 = vmatprep.mubr.msk.f32.mxu0 %vm3415_vm0, %v3416_v6  ;;  %2945 = vmatprep.mubr.msk.f32.mxu1 %vm3415_vm0, %v3416_v6 }
  0x1f   :  { %2791 = vmatmul.mubr.msk.f32.gmra.mrb[10].mxu0 %vm76_vm1, %v32_v18  ;;  %2946 = vmatmul.mubr.msk.f32.gmra.mrb[10].mxu1 %vm76_vm1, %v539_v19  ;;  %v570_v18 = vld [vmem:[%s5333_s1 + $0x120] sm:$0xff]  ;;  %v64_v19 = vld [vmem:[%s5332_s0 + $0x128] sm:$0xff] }
  0x20   :  { %2793 = vmatprep.mubr.msk.f32.mxu0 %vm3415_vm0, %v3416_v6  ;;  %2948 = vmatprep.mubr.msk.f32.mxu1 %vm3415_vm0, %v3416_v6 }
  0x23   :  { %2794 = vmatmul.mubr.msk.f32.gmra.mrb[12].mxu0 %vm76_vm1, %v33_v20  ;;  %2949 = vmatmul.mubr.msk.f32.gmra.mrb[12].mxu1 %vm76_vm1, %v540_v21  ;;  %v571_v20 = vld [vmem:[%s5333_s1 + $0x128] sm:$0xff]  ;;  %v65_v21 = vld [vmem:[%s5332_s0 + $0x130] sm:$0xff] }
  0x24   :  { %2796 = vmatprep.mubr.msk.f32.mxu0 %vm3415_vm0, %v3416_v6  ;;  %2951 = vmatprep.mubr.msk.f32.mxu1 %vm3415_vm0, %v3416_v6 }
  0x27   :  { %2797 = vmatmul.mubr.msk.f32.gmra.mrb[14].mxu0 %vm76_vm1, %v34_v22  ;;  %2952 = vmatmul.mubr.msk.f32.gmra.mrb[14].mxu1 %vm76_vm1, %v541_v23  ;;  %v572_v22 = vld [vmem:[%s5333_s1 + $0x130] sm:$0xff]  ;;  %v66_v23 = vld [vmem:[%s5332_s0 + $0x138] sm:$0xff] }
  0x28   :  { %2799 = vmatprep.mubr.msk.f32.mxu0 %vm3415_vm0, %v3416_v6  ;;  %2954 = vmatprep.mubr.msk.f32.mxu1 %vm3415_vm0, %v3416_v6 }
  0x2b   :  { %2800 = vmatmul.mubr.msk.f32.gmra.mrb[16].mxu0 %vm76_vm1, %v35_v24  ;;  %2955 = vmatmul.mubr.msk.f32.gmra.mrb[16].mxu1 %vm76_vm1, %v542_v25  ;;  %v573_v24 = vld [vmem:[%s5333_s1 + $0x138] sm:$0xff]  ;;  %v67_v25 = vld [vmem:[%s5332_s0 + $0x140] sm:$0xff] }
  0x2c   :  { %2802 = vmatprep.mubr.msk.f32.mxu0 %vm3415_vm0, %v3416_v6  ;;  %2957 = vmatprep.mubr.msk.f32.mxu1 %vm3415_vm0, %v3416_v6 }
  0x2f   :  { %2803 = vmatmul.mubr.msk.f32.gmra.mrb[18].mxu0 %vm76_vm1, %v36_v26  ;;  %2958 = vmatmul.mubr.msk.f32.gmra.mrb[18].mxu1 %vm76_vm1, %v543_v27  ;;  %v574_v26 = vld [vmem:[%s5333_s1 + $0x140] sm:$0xff]  ;;  %v68_v27 = vld [vmem:[%s5332_s0 + $0x148] sm:$0xff] }
  0x30   :  { %2805 = vmatprep.mubr.msk.f32.mxu0 %vm3415_vm0, %v3416_v6  ;;  %2960 = vmatprep.mubr.msk.f32.mxu1 %vm3415_vm0, %v3416_v6 }
  0x33   :  { %2806 = vmatmul.mubr.msk.f32.gmra.mrb[20].mxu0 %vm76_vm1, %v37_v28  ;;  %2961 = vmatmul.mubr.msk.f32.gmra.mrb[20].mxu1 %vm76_vm1, %v544_v29  ;;  %v575_v28 = vld [vmem:[%s5333_s1 + $0x148] sm:$0xff]  ;;  %v69_v29 = vld [vmem:[%s5332_s0 + $0x150] sm:$0xff] }
  0x34   :  { %2808 = vmatprep.mubr.msk.f32.mxu0 %vm3415_vm0, %v3416_v6  ;;  %2963 = vmatprep.mubr.msk.f32.mxu1 %vm3415_vm0, %v3416_v6 }
  0x37   :  { %2809 = vmatmul.mubr.msk.f32.gmra.mrb[22].mxu0 %vm76_vm1, %v38_v30  ;;  %2964 = vmatmul.mubr.msk.f32.gmra.mrb[22].mxu1 %vm76_vm1, %v545_v31  ;;  %v576_v30 = vld [vmem:[%s5333_s1 + $0x150] sm:$0xff]  ;;  %v70_v31 = vld [vmem:[%s5332_s0 + $0x158] sm:$0xff] }
  0x38   :  { %2811 = vmatprep.mubr.msk.f32.mxu0 %vm3415_vm0, %v3416_v6  ;;  %2966 = vmatprep.mubr.msk.f32.mxu1 %vm3415_vm0, %v3416_v6 }
  0x3b   :  { %2812 = vmatmul.mubr.msk.f32.gmra.mrb[24].mxu0 %vm76_vm1, %v39_v32  ;;  %2967 = vmatmul.mubr.msk.f32.gmra.mrb[24].mxu1 %vm76_vm1, %v546_v33  ;;  %v577_v32 = vld [vmem:[%s5333_s1 + $0x158] sm:$0xff]  ;;  %v71_v33 = vld [vmem:[%s5332_s0 + $0x160] sm:$0xff] }
  0x3c   :  { %2814 = vmatprep.mubr.msk.f32.mxu0 %vm3415_vm0, %v3416_v6  ;;  %2969 = vmatprep.mubr.msk.f32.mxu1 %vm3415_vm0, %v3416_v6 }
  0x3f   :  { %2815 = vmatmul.mubr.msk.f32.gmra.mrb[26].mxu0 %vm76_vm1, %v40_v34  ;;  %2970 = vmatmul.mubr.msk.f32.gmra.mrb[26].mxu1 %vm76_vm1, %v547_v35  ;;  %v578_v34 = vld [vmem:[%s5333_s1 + $0x160] sm:$0xff]  ;;  %v72_v35 = vld [vmem:[%s5332_s0 + $0x168] sm:$0xff] }
  0x40   :  { %2817 = vmatprep.mubr.msk.f32.mxu0 %vm3415_vm0, %v3416_v6  ;;  %2972 = vmatprep.mubr.msk.f32.mxu1 %vm3415_vm0, %v3416_v6 }
  0x43   :  { %2818 = vmatmul.mubr.msk.f32.gmra.mrb[28].mxu0 %vm76_vm1, %v41_v36  ;;  %2973 = vmatmul.mubr.msk.f32.gmra.mrb[28].mxu1 %vm76_vm1, %v548_v37  ;;  %v579_v36 = vld [vmem:[%s5333_s1 + $0x168] sm:$0xff]  ;;  %v73_v37 = vld [vmem:[%s5332_s0 + $0x170] sm:$0xff] }
  0x44   :  { %2820 = vmatprep.mubr.msk.f32.mxu0 %vm3415_vm0, %v3416_v6  ;;  %2975 = vmatprep.mubr.msk.f32.mxu1 %vm3415_vm0, %v3416_v6 }
  0x47   :  { %2821 = vmatmul.mubr.msk.f32.gmra.mrb[30].mxu0 %vm76_vm1, %v42_v38  ;;  %2976 = vmatmul.mubr.msk.f32.gmra.mrb[30].mxu1 %vm76_vm1, %v549_v39  ;;  %v580_v38 = vld [vmem:[%s5333_s1 + $0x170] sm:$0xff]  ;;  %v74_v39 = vld [vmem:[%s5332_s0 + $0x178] sm:$0xff] }
  0x48   :  { %2823 = vmatprep.mubr.msk.f32.mxu0 %vm3415_vm0, %v3416_v6  ;;  %2978 = vmatprep.mubr.msk.f32.mxu1 %vm3415_vm0, %v3416_v6 }
  0x4b   :  { %2824 = vmatmul.mubr.msk.f32.gmra.mrb[32].mxu0 %vm76_vm1, %v43_v40  ;;  %2979 = vmatmul.mubr.msk.f32.gmra.mrb[32].mxu1 %vm76_vm1, %v550_v41  ;;  %v581_v40 = vld [vmem:[%s5333_s1 + $0x178] sm:$0xff]  ;;  %v75_v41 = vld [vmem:[%s5332_s0 + $0x180] sm:$0xff] }
  0x4c   :  { %2826 = vmatprep.mubr.msk.f32.mxu0 %vm3415_vm0, %v3416_v6  ;;  %2981 = vmatprep.mubr.msk.f32.mxu1 %vm3415_vm0, %v3416_v6 }
  0x4f   :  { %2827 = vmatmul.mubr.msk.f32.gmra.mrb[34].mxu0 %vm76_vm1, %v44_v42  ;;  %2982 = vmatmul.mubr.msk.f32.gmra.mrb[34].mxu1 %vm76_vm1, %v551_v43  ;;  %v582_v42 = vld [vmem:[%s5333_s1 + $0x180] sm:$0xff] }
  0x50   :  { %2829 = vmatprep.mubr.msk.f32.mxu0 %vm3415_vm0, %v3416_v6  ;;  %2984 = vmatprep.mubr.msk.f32.mxu1 %vm3415_vm0, %v3416_v6  ;;  %v1040_v43 = vld [vmem:[%s5334_s2] sm:$0xff] }
  0x53   :  { %2830 = vmatmul.mubr.msk.f32.gmra.mrb[36].mxu0 %vm76_vm1, %v45_v44  ;;  %2985 = vmatmul.mubr.msk.f32.gmra.mrb[36].mxu1 %vm76_vm1, %v552_v45  ;;  %v1546_v44 = vld [vmem:[%s5335_s3] sm:$0xff]  ;;  %v1041_v45 = vld [vmem:[%s5334_s2 + $0x8] sm:$0xff] }
  0x54   :  { %2832 = vmatprep.mubr.msk.f32.mxu0 %vm3415_vm0, %v3416_v6  ;;  %2987 = vmatprep.mubr.msk.f32.mxu1 %vm3415_vm0, %v3416_v6 }
  0x57   :  { %2833 = vmatmul.mubr.msk.f32.gmra.mrb[38].mxu0 %vm76_vm1, %v46_v46  ;;  %2988 = vmatmul.mubr.msk.f32.gmra.mrb[38].mxu1 %vm76_vm1, %v553_v47  ;;  %v1547_v46 = vld [vmem:[%s5335_s3 + $0x8] sm:$0xff]  ;;  %v1042_v47 = vld [vmem:[%s5334_s2 + $0x10] sm:$0xff] }
  0x58   :  { %2835 = vmatprep.mubr.msk.f32.mxu0 %vm3415_vm0, %v3416_v6  ;;  %2990 = vmatprep.mubr.msk.f32.mxu1 %vm3415_vm0, %v3416_v6 }
  0x5b   :  { %2836 = vmatmul.mubr.msk.f32.gmra.mrb[40].mxu0 %vm76_vm1, %v47_v48  ;;  %2991 = vmatmul.mubr.msk.f32.gmra.mrb[40].mxu1 %vm76_vm1, %v554_v49  ;;  %v1548_v48 = vld [vmem:[%s5335_s3 + $0x10] sm:$0xff]  ;;  %v1043_v49 = vld [vmem:[%s5334_s2 + $0x18] sm:$0xff] }
  0x5c   :  { %2838 = vmatprep.mubr.msk.f32.mxu0 %vm3415_vm0, %v3416_v6  ;;  %2993 = vmatprep.mubr.msk.f32.mxu1 %vm3415_vm0, %v3416_v6 }
  0x5f   :  { %2839 = vmatmul.mubr.msk.f32.gmra.mrb[42].mxu0 %vm76_vm1, %v48_v50  ;;  %2994 = vmatmul.mubr.msk.f32.gmra.mrb[42].mxu1 %vm76_vm1, %v555_v51  ;;  %v1549_v50 = vld [vmem:[%s5335_s3 + $0x18] sm:$0xff]  ;;  %v1044_v51 = vld [vmem:[%s5334_s2 + $0x20] sm:$0xff] }
  0x60   :  { %2841 = vmatprep.mubr.msk.f32.mxu0 %vm3415_vm0, %v3416_v6  ;;  %2996 = vmatprep.mubr.msk.f32.mxu1 %vm3415_vm0, %v3416_v6 }
  0x63   :  { %2842 = vmatmul.mubr.msk.f32.gmra.mrb[44].mxu0 %vm76_vm1, %v49_v52  ;;  %2997 = vmatmul.mubr.msk.f32.gmra.mrb[44].mxu1 %vm76_vm1, %v556_v53  ;;  %v1550_v52 = vld [vmem:[%s5335_s3 + $0x20] sm:$0xff] }
  0x64   :  { %2844 = vmatprep.mubr.msk.f32.mxu0 %vm3415_vm0, %v3416_v6  ;;  %2999 = vmatprep.mubr.msk.f32.mxu1 %vm3415_vm0, %v3416_v6 }
  0x67   :  { %2845 = vmatmul.mubr.msk.f32.gmra.mrb[46].mxu0 %vm76_vm1, %v50_v54  ;;  %3000 = vmatmul.mubr.msk.f32.gmra.mrb[46].mxu1 %vm76_vm1, %v557_v55 }
  0x68   :  { %2847 = vmatprep.mubr.msk.f32.mxu0 %vm3415_vm0, %v3416_v6  ;;  %3002 = vmatprep.mubr.msk.f32.mxu1 %vm3415_vm0, %v3416_v6 }
  0x6b   :  { %2848 = vmatmul.mubr.msk.f32.gmra.mrb[48].mxu0 %vm76_vm1, %v51_v56  ;;  %3003 = vmatmul.mubr.msk.f32.gmra.mrb[48].mxu1 %vm76_vm1, %v558_v57 }
  0x6c   :  { %2850 = vmatprep.mubr.msk.f32.mxu0 %vm3415_vm0, %v3416_v6  ;;  %3005 = vmatprep.mubr.msk.f32.mxu1 %vm3415_vm0, %v3416_v6 }
  0x6f   :  { %2851 = vmatmul.mubr.msk.f32.gmra.mrb[50].mxu0 %vm76_vm1, %v52_v58  ;;  %3006 = vmatmul.mubr.msk.f32.gmra.mrb[50].mxu1 %vm76_vm1, %v559_v59  ;;  %v1045_v58 = vld [vmem:[%s5334_s2 + $0x28] sm:$0xff] }
  0x70   :  { %2853 = vmatprep.mubr.msk.f32.mxu0 %vm3415_vm0, %v3416_v6  ;;  %3008 = vmatprep.mubr.msk.f32.mxu1 %vm3415_vm0, %v3416_v6  ;;  %v1551_v59 = vld [vmem:[%s5335_s3 + $0x28] sm:$0xff] }
  0x73   :  { %2854 = vmatmul.mubr.msk.f32.gmra.mrb[52].mxu0 %vm76_vm1, %v53_v60  ;;  %3009 = vmatmul.mubr.msk.f32.gmra.mrb[52].mxu1 %vm76_vm1, %v560_v61 }
  0x74   :  { %2856 = vmatprep.mubr.msk.f32.mxu0 %vm3415_vm0, %v3416_v6  ;;  %3011 = vmatprep.mubr.msk.f32.mxu1 %vm3415_vm0, %v3416_v6 }
  0x77   :  { %2857 = vmatmul.mubr.msk.f32.gmra.mrb[54].mxu0 %vm76_vm1, %v54_v62  ;;  %3012 = vmatmul.mubr.msk.f32.gmra.mrb[54].mxu1 %vm76_vm1, %v561_v63  ;;  %v1072_v62 = vld [vmem:[%s5334_s2 + $0x100] sm:$0xff] }
  0x78   :  { %2859 = vmatprep.mubr.msk.f32.mxu0 %vm3415_vm0, %v3416_v6  ;;  %3014 = vmatprep.mubr.msk.f32.mxu1 %vm3415_vm0, %v3416_v6 }
  0x7b   :  { %2860 = vmatmul.mubr.msk.f32.gmra.mrb[56].mxu0 %vm76_vm1, %v55_v0  ;;  %3015 = vmatmul.mubr.msk.f32.gmra.mrb[56].mxu1 %vm76_vm1, %v562_v1  ;;  %v1046_v1 = vld [vmem:[%s5334_s2 + $0x30] sm:$0xff] }
  0x7c   :  { %2862 = vmatprep.mubr.msk.f32.mxu0 %vm3415_vm0, %v3416_v6  ;;  %3017 = vmatprep.mubr.msk.f32.mxu1 %vm3415_vm0, %v3416_v6 }
  0x7f   :  { %2863 = vmatmul.mubr.msk.f32.gmra.mrb[58].mxu0 %vm76_vm1, %v56_v2  ;;  %3018 = vmatmul.mubr.msk.f32.gmra.mrb[58].mxu1 %vm76_vm1, %v563_v3  ;;  %v1552_v2 = vld [vmem:[%s5335_s3 + $0x30] sm:$0xff] }
  0x80   :  { %2865 = vmatprep.mubr.msk.f32.mxu0 %vm3415_vm0, %v3416_v6  ;;  %3020 = vmatprep.mubr.msk.f32.mxu1 %vm3415_vm0, %v3416_v6 }
  0x83   :  { %2866 = vmatmul.mubr.msk.f32.gmra.mrb[60].mxu0 %vm76_vm1, %v57_v4  ;;  %3021 = vmatmul.mubr.msk.f32.gmra.mrb[60].mxu1 %vm76_vm1, %v564_v5 }
  0x84   :  { %2868 = vmatprep.mubr.msk.f32.mxu0 %vm3415_vm0, %v3416_v6  ;;  %3023 = vmatprep.mubr.msk.f32.mxu1 %vm3415_vm0, %v3416_v6 }
  0x87   :  { %2869 = vmatmul.mubr.msk.f32.gmra.mrb[62].mxu0 %vm76_vm1, %v58_v7  ;;  %3024 = vmatmul.mubr.msk.f32.gmra.mrb[62].mxu1 %vm76_vm1, %v565_v8 }
  0x88   :  { %2871 = vmatprep.mubr.msk.f32.mxu0 %vm3415_vm0, %v3416_v6  ;;  %3026 = vmatprep.mubr.msk.f32.mxu1 %vm3415_vm0, %v3416_v6 }
  0x8b   :  { %2872 = vmatmul.mubr.msk.f32.gmra.mrb[64].mxu0 %vm76_vm1, %v59_v9  ;;  %3027 = vmatmul.mubr.msk.f32.gmra.mrb[64].mxu1 %vm76_vm1, %v566_v10  ;;  %v1047_v9 = vld [vmem:[%s5334_s2 + $0x38] sm:$0xff] }
  0x8c   :  { %2874 = vmatprep.mubr.msk.f32.mxu0 %vm3415_vm0, %v3416_v6  ;;  %3029 = vmatprep.mubr.msk.f32.mxu1 %vm3415_vm0, %v3416_v6  ;;  %v1553_v10 = vld [vmem:[%s5335_s3 + $0x38] sm:$0xff] }
  0x8f   :  { %2875 = vmatmul.mubr.msk.f32.gmra.mrb[66].mxu0 %vm76_vm1, %v60_v11  ;;  %3030 = vmatmul.mubr.msk.f32.gmra.mrb[66].mxu1 %vm76_vm1, %v567_v12 }
  0x90   :  { %2877 = vmatprep.mubr.msk.f32.mxu0 %vm3415_vm0, %v3416_v6  ;;  %3032 = vmatprep.mubr.msk.f32.mxu1 %vm3415_vm0, %v3416_v6 }
  0x93   :  { %2878 = vmatmul.mubr.msk.f32.gmra.mrb[68].mxu0 %vm76_vm1, %v61_v13  ;;  %3033 = vmatmul.mubr.msk.f32.gmra.mrb[68].mxu1 %vm76_vm1, %v568_v14  ;;  %v1071_v13 = vld [vmem:[%s5334_s2 + $0xf8] sm:$0xff] }
  0x94   :  { %2880 = vmatprep.mubr.msk.f32.mxu0 %vm3415_vm0, %v3416_v6  ;;  %3035 = vmatprep.mubr.msk.f32.mxu1 %vm3415_vm0, %v3416_v6 }
  0x97   :  { %2881 = vmatmul.mubr.msk.f32.gmra.mrb[70].mxu0 %vm76_vm1, %v62_v15  ;;  %3036 = vmatmul.mubr.msk.f32.gmra.mrb[70].mxu1 %vm76_vm1, %v569_v16  ;;  %v1048_v16 = vld [vmem:[%s5334_s2 + $0x40] sm:$0xff] }
  0x98   :  { %2883 = vmatprep.mubr.msk.f32.mxu0 %vm3415_vm0, %v3416_v6  ;;  %3038 = vmatprep.mubr.msk.f32.mxu1 %vm3415_vm0, %v3416_v6 }
  0x9b   :  { %2884 = vmatmul.mubr.msk.f32.gmra.mrb[72].mxu0 %vm76_vm1, %v63_v17  ;;  %3039 = vmatmul.mubr.msk.f32.gmra.mrb[72].mxu1 %vm76_vm1, %v570_v18  ;;  %v1554_v17 = vld [vmem:[%s5335_s3 + $0x40] sm:$0xff] }
  0x9c   :  { %2886 = vmatprep.mubr.msk.f32.mxu0 %vm3415_vm0, %v3416_v6  ;;  %3041 = vmatprep.mubr.msk.f32.mxu1 %vm3415_vm0, %v3416_v6 }
  0x9f   :  { %2887 = vmatmul.mubr.msk.f32.gmra.mrb[74].mxu0 %vm76_vm1, %v64_v19  ;;  %3042 = vmatmul.mubr.msk.f32.gmra.mrb[74].mxu1 %vm76_vm1, %v571_v20 }
  0xa0   :  { %2889 = vmatprep.mubr.msk.f32.mxu0 %vm3415_vm0, %v3416_v6  ;;  %3044 = vmatprep.mubr.msk.f32.mxu1 %vm3415_vm0, %v3416_v6 }
  0xa3   :  { %2890 = vmatmul.mubr.msk.f32.gmra.mrb[76].mxu0 %vm76_vm1, %v65_v21  ;;  %3045 = vmatmul.mubr.msk.f32.gmra.mrb[76].mxu1 %vm76_vm1, %v572_v22 }
  0xa4   :  { %2892 = vmatprep.mubr.msk.f32.mxu0 %vm3415_vm0, %v3416_v6  ;;  %3047 = vmatprep.mubr.msk.f32.mxu1 %vm3415_vm0, %v3416_v6 }
  0xa7   :  { %2893 = vmatmul.mubr.msk.f32.gmra.mrb[78].mxu0 %vm76_vm1, %v66_v23  ;;  %3048 = vmatmul.mubr.msk.f32.gmra.mrb[78].mxu1 %vm76_vm1, %v573_v24  ;;  %v1049_v23 = vld [vmem:[%s5334_s2 + $0x48] sm:$0xff] }
  0xa8   :  { %2895 = vmatprep.mubr.msk.f32.mxu0 %vm3415_vm0, %v3416_v6  ;;  %3050 = vmatprep.mubr.msk.f32.mxu1 %vm3415_vm0, %v3416_v6  ;;  %v1555_v24 = vld [vmem:[%s5335_s3 + $0x48] sm:$0xff] }
  0xab   :  { %2896 = vmatmul.mubr.msk.f32.gmra.mrb[80].mxu0 %vm76_vm1, %v67_v25  ;;  %3051 = vmatmul.mubr.msk.f32.gmra.mrb[80].mxu1 %vm76_vm1, %v574_v26 }
  0xac   :  { %2898 = vmatprep.mubr.msk.f32.mxu0 %vm3415_vm0, %v3416_v6  ;;  %3053 = vmatprep.mubr.msk.f32.mxu1 %vm3415_vm0, %v3416_v6 }
  0xaf   :  { %2899 = vmatmul.mubr.msk.f32.gmra.mrb[82].mxu0 %vm76_vm1, %v68_v27  ;;  %3054 = vmatmul.mubr.msk.f32.gmra.mrb[82].mxu1 %vm76_vm1, %v575_v28  ;;  %v1070_v27 = vld [vmem:[%s5334_s2 + $0xf0] sm:$0xff] }
  0xb0   :  { %2901 = vmatprep.mubr.msk.f32.mxu0 %vm3415_vm0, %v3416_v6  ;;  %3056 = vmatprep.mubr.msk.f32.mxu1 %vm3415_vm0, %v3416_v6 }
  0xb3   :  { %2902 = vmatmul.mubr.msk.f32.gmra.mrb[84].mxu0 %vm76_vm1, %v69_v29  ;;  %3057 = vmatmul.mubr.msk.f32.gmra.mrb[84].mxu1 %vm76_vm1, %v576_v30  ;;  %v1050_v30 = vld [vmem:[%s5334_s2 + $0x50] sm:$0xff] }
  0xb4   :  { %2904 = vmatprep.mubr.msk.f32.mxu0 %vm3415_vm0, %v3416_v6  ;;  %3059 = vmatprep.mubr.msk.f32.mxu1 %vm3415_vm0, %v3416_v6 }
  0xb7   :  { %2905 = vmatmul.mubr.msk.f32.gmra.mrb[86].mxu0 %vm76_vm1, %v70_v31  ;;  %3060 = vmatmul.mubr.msk.f32.gmra.mrb[86].mxu1 %vm76_vm1, %v577_v32  ;;  %v1556_v31 = vld [vmem:[%s5335_s3 + $0x50] sm:$0xff] }
  0xb8   :  { %2907 = vmatprep.mubr.msk.f32.mxu0 %vm3415_vm0, %v3416_v6  ;;  %3062 = vmatprep.mubr.msk.f32.mxu1 %vm3415_vm0, %v3416_v6 }
  0xbb   :  { %2908 = vmatmul.mubr.msk.f32.gmra.mrb[88].mxu0 %vm76_vm1, %v71_v33  ;;  %3063 = vmatmul.mubr.msk.f32.gmra.mrb[88].mxu1 %vm76_vm1, %v578_v34 }
  0xbc   :  { %2910 = vmatprep.mubr.msk.f32.mxu0 %vm3415_vm0, %v3416_v6  ;;  %3065 = vmatprep.mubr.msk.f32.mxu1 %vm3415_vm0, %v3416_v6 }
  0xbf   :  { %2911 = vmatmul.mubr.msk.f32.gmra.mrb[90].mxu0 %vm76_vm1, %v72_v35  ;;  %3066 = vmatmul.mubr.msk.f32.gmra.mrb[90].mxu1 %vm76_vm1, %v579_v36 }
  0xc0   :  { %2913 = vmatprep.mubr.msk.f32.mxu0 %vm3415_vm0, %v3416_v6  ;;  %3068 = vmatprep.mubr.msk.f32.mxu1 %vm3415_vm0, %v3416_v6 }
  0xc3   :  { %2914 = vmatmul.mubr.msk.f32.gmra.mrb[92].mxu0 %vm76_vm1, %v73_v37  ;;  %3069 = vmatmul.mubr.msk.f32.gmra.mrb[92].mxu1 %vm76_vm1, %v580_v38  ;;  %v1051_v37 = vld [vmem:[%s5334_s2 + $0x58] sm:$0xff] }
  0xc4   :  { %2916 = vmatprep.mubr.msk.f32.mxu0 %vm3415_vm0, %v3416_v6  ;;  %3071 = vmatprep.mubr.msk.f32.mxu1 %vm3415_vm0, %v3416_v6  ;;  %v1557_v38 = vld [vmem:[%s5335_s3 + $0x58] sm:$0xff] }
  0xc7   :  { %2917 = vmatmul.mubr.msk.f32.gmra.mrb[94].mxu0 %vm76_vm1, %v74_v39  ;;  %3072 = vmatmul.mubr.msk.f32.gmra.mrb[94].mxu1 %vm76_vm1, %v581_v40 }
  0xc8   :  { %2919 = vmatprep.mubr.msk.f32.mxu0 %vm3415_vm0, %v3416_v6  ;;  %3074 = vmatprep.mubr.msk.f32.mxu1 %vm3415_vm0, %v3416_v6 }
  0xcb   :  { %2920 = vmatmul.mubr.msk.f32.gmra.mrb[96].mxu0 %vm76_vm1, %v75_v41  ;;  %3075 = vmatmul.mubr.msk.f32.gmra.mrb[96].mxu1 %vm76_vm1, %v582_v42  ;;  %v1069_v41 = vld [vmem:[%s5334_s2 + $0xe8] sm:$0xff] }
  0xcc   :  { %3085 = vmatprep.mubr.msk.f32.mxu0 %vm3415_vm0, %v3416_v6  ;;  %3240 = vmatprep.mubr.msk.f32.mxu1 %vm3415_vm0, %v3416_v6 }
  0xcf   :  { %3086 = vmatmul.mubr.msk.f32.vlgmr.msra.gmra.mrb[98].mxu0 %vm76_vm1, %v1040_v43  ;;  %3241 = vmatmul.mubr.msk.f32.vlgmr.msra.gmra.mrb[98].mxu1 %vm76_vm1, %v1546_v44  ;;  %v1052_v44 = vld [vmem:[%s5334_s2 + $0x60] sm:$0xff] }
  0xd0   :  { %3088 = vmatprep.mubr.msk.f32.mxu0 %vm3415_vm0, %v3416_v6  ;;  %3243 = vmatprep.mubr.msk.f32.mxu1 %vm3415_vm0, %v3416_v6 }
  0xd3   :  { %3089 = vmatmul.mubr.msk.f32.gmra.mrb[100].mxu0 %vm76_vm1, %v1041_v45  ;;  %3244 = vmatmul.mubr.msk.f32.gmra.mrb[100].mxu1 %vm76_vm1, %v1547_v46  ;;  %v1558_v45 = vld [vmem:[%s5335_s3 + $0x60] sm:$0xff] }
  0xd4   :  { %3091 = vmatprep.mubr.msk.f32.mxu0 %vm3415_vm0, %v3416_v6  ;;  %3246 = vmatprep.mubr.msk.f32.mxu1 %vm3415_vm0, %v3416_v6 }
  0xd7   :  { %3092 = vmatmul.mubr.msk.f32.gmra.mrb[102].mxu0 %vm76_vm1, %v1042_v47  ;;  %3247 = vmatmul.mubr.msk.f32.gmra.mrb[102].mxu1 %vm76_vm1, %v1548_v48 }
  0xd8   :  { %3094 = vmatprep.mubr.msk.f32.mxu0 %vm3415_vm0, %v3416_v6  ;;  %3249 = vmatprep.mubr.msk.f32.mxu1 %vm3415_vm0, %v3416_v6 }
  0xdb   :  { %3095 = vmatmul.mubr.msk.f32.gmra.mrb[104].mxu0 %vm76_vm1, %v1043_v49  ;;  %3250 = vmatmul.mubr.msk.f32.gmra.mrb[104].mxu1 %vm76_vm1, %v1549_v50 }
  0xdc   :  { %3097 = vmatprep.mubr.msk.f32.mxu0 %vm3415_vm0, %v3416_v6  ;;  %3252 = vmatprep.mubr.msk.f32.mxu1 %vm3415_vm0, %v3416_v6 }
  0xde   :  { %v4110_v53 = vpop.f32.mrb[0].mxu0  ;;  %v4112_v54 = vpop.f32.mrb[0].mxu1 }
  0xdf   :  { %v2777_v56 = vpop.f32.mrb[1].mxu0  ;;  %v2932_v57 = vpop.f32.mrb[1].mxu1  ;;  %3098 = vmatmul.mubr.msk.f32.gmra.mrb[106].mxu0 %vm76_vm1, %v1044_v51  ;;  %3253 = vmatmul.mubr.msk.f32.gmra.mrb[106].mxu1 %vm76_vm1, %v1550_v52  ;;  %v1053_v51 = vld [vmem:[%s5334_s2 + $0x68] sm:$0xff] }
  0xe0   :  { %3100 = vmatprep.mubr.msk.f32.mxu0 %vm3415_vm0, %v3416_v6  ;;  %3255 = vmatprep.mubr.msk.f32.mxu1 %vm3415_vm0, %v3416_v6  ;;  %v1559_v52 = vld [vmem:[%s5335_s3 + $0x68] sm:$0xff] }
  0xe2   :  { %v4128_v60 = vpop.f32.mrb[2].mxu0  ;;  %v4130_v61 = vpop.f32.mrb[2].mxu1 }
  0xe3   :  { %v2780_v63 = vpop.f32.mrb[3].mxu0  ;;  %v2935_v0 = vpop.f32.mrb[3].mxu1  ;;  %3101 = vmatmul.mubr.msk.f32.gmra.mrb[108].mxu0 %vm76_vm1, %v1045_v58  ;;  %3256 = vmatmul.mubr.msk.f32.gmra.mrb[108].mxu1 %vm76_vm1, %v1551_v59  ;;  %v1068_v58 = vld [vmem:[%s5334_s2 + $0xe0] sm:$0xff] }
  0xe4   :  { %3103 = vmatprep.mubr.msk.f32.mxu0 %vm3415_vm0, %v3416_v6  ;;  %3258 = vmatprep.mubr.msk.f32.mxu1 %vm3415_vm0, %v3416_v6  ;;  %v1054_v0 = vld [vmem:[%s5334_s2 + $0x70] sm:$0xff] }
  0xe6   :  { %v4146_v3 = vpop.f32.mrb[4].mxu0  ;;  %v4148_v4 = vpop.f32.mrb[4].mxu1 }
  0xe7   :  { %v2783_v7 = vpop.f32.mrb[5].mxu0  ;;  %v2938_v8 = vpop.f32.mrb[5].mxu1  ;;  %3104 = vmatmul.mubr.msk.f32.gmra.mrb[110].mxu0 %vm76_vm1, %v1046_v1  ;;  %3259 = vmatmul.mubr.msk.f32.gmra.mrb[110].mxu1 %vm76_vm1, %v1552_v2  ;;  %v1560_v1 = vld [vmem:[%s5335_s3 + $0x70] sm:$0xff] }
  0xe8   :  { %3106 = vmatprep.mubr.msk.f32.mxu0 %vm3415_vm0, %v3416_v6  ;;  %3261 = vmatprep.mubr.msk.f32.mxu1 %vm3415_vm0, %v3416_v6 }
  0xea   :  { %v4164_v11 = vpop.f32.mrb[6].mxu0  ;;  %v4166_v12 = vpop.f32.mrb[6].mxu1 }
  0xeb   :  { %v2786_v14 = vpop.f32.mrb[7].mxu0  ;;  %v2941_v15 = vpop.f32.mrb[7].mxu1  ;;  %3107 = vmatmul.mubr.msk.f32.gmra.mrb[112].mxu0 %vm76_vm1, %v1047_v9  ;;  %3262 = vmatmul.mubr.msk.f32.gmra.mrb[112].mxu1 %vm76_vm1, %v1553_v10 }
  0xec   :  { %3109 = vmatprep.mubr.msk.f32.mxu0 %vm3415_vm0, %v3416_v6  ;;  %3264 = vmatprep.mubr.msk.f32.mxu1 %vm3415_vm0, %v3416_v6  ;;  %v1055_v14 = vld [vmem:[%s5334_s2 + $0x78] sm:$0xff] }
  0xed   :  { %v1561_v15 = vld [vmem:[%s5335_s3 + $0x78] sm:$0xff] }
  0xee   :  { %v4182_v18 = vpop.f32.mrb[8].mxu0  ;;  %v4184_v19 = vpop.f32.mrb[8].mxu1 }
  0xef   :  { %v2789_v21 = vpop.f32.mrb[9].mxu0  ;;  %v2944_v22 = vpop.f32.mrb[9].mxu1  ;;  %3110 = vmatmul.mubr.msk.f32.gmra.mrb[114].mxu0 %vm76_vm1, %v1048_v16  ;;  %3265 = vmatmul.mubr.msk.f32.gmra.mrb[114].mxu1 %vm76_vm1, %v1554_v17 }
  0xf0   :  { %3112 = vmatprep.mubr.msk.f32.mxu0 %vm3415_vm0, %v3416_v6  ;;  %3267 = vmatprep.mubr.msk.f32.mxu1 %vm3415_vm0, %v3416_v6  ;;  %v1067_v21 = vld [vmem:[%s5334_s2 + $0xd8] sm:$0xff] }
  0xf2   :  { %v4200_v25 = vpop.f32.mrb[10].mxu0  ;;  %v4202_v26 = vpop.f32.mrb[10].mxu1 }
  0xf3   :  { %v2792_v28 = vpop.f32.mrb[11].mxu0  ;;  %v2947_v29 = vpop.f32.mrb[11].mxu1  ;;  %3113 = vmatmul.mubr.msk.f32.gmra.mrb[116].mxu0 %vm76_vm1, %v1049_v23  ;;  %3268 = vmatmul.mubr.msk.f32.gmra.mrb[116].mxu1 %vm76_vm1, %v1555_v24  ;;  %v1056_v24 = vld [vmem:[%s5334_s2 + $0x80] sm:$0xff] }
  0xf4   :  { %3115 = vmatprep.mubr.msk.f32.mxu0 %vm3415_vm0, %v3416_v6  ;;  %3270 = vmatprep.mubr.msk.f32.mxu1 %vm3415_vm0, %v3416_v6  ;;  %v1562_v28 = vld [vmem:[%s5335_s3 + $0x80] sm:$0xff] }
  0xf6   :  { %v4218_v32 = vpop.f32.mrb[12].mxu0  ;;  %v4220_v33 = vpop.f32.mrb[12].mxu1 }
  0xf7   :  { %v2795_v35 = vpop.f32.mrb[13].mxu0  ;;  %v2950_v36 = vpop.f32.mrb[13].mxu1  ;;  %3116 = vmatmul.mubr.msk.f32.gmra.mrb[118].mxu0 %vm76_vm1, %v1050_v30  ;;  %3271 = vmatmul.mubr.msk.f32.gmra.mrb[118].mxu1 %vm76_vm1, %v1556_v31 }
  0xf8   :  { %3118 = vmatprep.mubr.msk.f32.mxu0 %vm3415_vm0, %v3416_v6  ;;  %3273 = vmatprep.mubr.msk.f32.mxu1 %vm3415_vm0, %v3416_v6 }
  0xfa   :  { %v4236_v39 = vpop.f32.mrb[14].mxu0  ;;  %v4238_v40 = vpop.f32.mrb[14].mxu1 }
  0xfb   :  { %v2798_v42 = vpop.f32.mrb[15].mxu0  ;;  %v2953_v43 = vpop.f32.mrb[15].mxu1  ;;  %3119 = vmatmul.mubr.msk.f32.gmra.mrb[120].mxu0 %vm76_vm1, %v1051_v37  ;;  %3274 = vmatmul.mubr.msk.f32.gmra.mrb[120].mxu1 %vm76_vm1, %v1557_v38  ;;  %v1057_v37 = vld [vmem:[%s5334_s2 + $0x88] sm:$0xff] }
  0xfc   :  { %3121 = vmatprep.mubr.msk.f32.mxu0 %vm3415_vm0, %v3416_v6  ;;  %3276 = vmatprep.mubr.msk.f32.mxu1 %vm3415_vm0, %v3416_v6  ;;  %v1563_v38 = vld [vmem:[%s5335_s3 + $0x88] sm:$0xff] }
  0xfe   :  { %v4254_v46 = vpop.f32.mrb[16].mxu0  ;;  %v4256_v47 = vpop.f32.mrb[16].mxu1 }
  0xff   :  { %v2801_v49 = vpop.f32.mrb[17].mxu0  ;;  %v2956_v50 = vpop.f32.mrb[17].mxu1  ;;  %3122 = vmatmul.mubr.msk.f32.gmra.mrb[122].mxu0 %vm76_vm1, %v1052_v44  ;;  %3277 = vmatmul.mubr.msk.f32.gmra.mrb[122].mxu1 %vm76_vm1, %v1558_v45  ;;  %v1066_v44 = vld [vmem:[%s5334_s2 + $0xd0] sm:$0xff] }
 0x100   :  { %3124 = vmatprep.mubr.msk.f32.mxu0 %vm3415_vm0, %v3416_v6  ;;  %3279 = vmatprep.mubr.msk.f32.mxu1 %vm3415_vm0, %v3416_v6  ;;  %v1058_v50 = vld [vmem:[%s5334_s2 + $0x90] sm:$0xff] }
 0x102   :  { %v4272_v56 = vpop.f32.mrb[18].mxu0  ;;  %v4274_v57 = vpop.f32.mrb[18].mxu1 }
 0x103   :  { %v2804_v59 = vpop.f32.mrb[19].mxu0  ;;  %v2959_v63 = vpop.f32.mrb[19].mxu1  ;;  %3125 = vmatmul.mubr.msk.f32.gmra.mrb[124].mxu0 %vm76_vm1, %v1053_v51  ;;  %3280 = vmatmul.mubr.msk.f32.gmra.mrb[124].mxu1 %vm76_vm1, %v1559_v52  ;;  %v1564_v51 = vld [vmem:[%s5335_s3 + $0x90] sm:$0xff] }
 0x104   :  { %3127 = vmatprep.mubr.msk.f32.mxu0 %vm3415_vm0, %v3416_v6  ;;  %3282 = vmatprep.mubr.msk.f32.mxu1 %vm3415_vm0, %v3416_v6 }
 0x106   :  { %v4290_v2 = vpop.f32.mrb[20].mxu0  ;;  %v4292_v7 = vpop.f32.mrb[20].mxu1 }
 0x107   :  { %v2807_v9 = vpop.f32.mrb[21].mxu0  ;;  %v2962_v10 = vpop.f32.mrb[21].mxu1  ;;  %3128 = vmatmul.mubr.msk.f32.gmra.mrb[126].mxu0 %vm76_vm1, %v1054_v0  ;;  %3283 = vmatmul.mubr.msk.f32.gmra.mrb[126].mxu1 %vm76_vm1, %v1560_v1 }
 0x108   :  { %3130 = vmatprep.mubr.msk.f32.mxu0 %vm3415_vm0, %v3416_v6  ;;  %3285 = vmatprep.mubr.msk.f32.mxu1 %vm3415_vm0, %v3416_v6  ;;  %v1059_v9 = vld [vmem:[%s5334_s2 + $0x98] sm:$0xff] }
 0x109   :  { %v1565_v10 = vld [vmem:[%s5335_s3 + $0x98] sm:$0xff] }
 0x10a   :  { %v4308_v16 = vpop.f32.mrb[22].mxu0  ;;  %v4310_v17 = vpop.f32.mrb[22].mxu1 }
 0x10b   :  { %v2810_v22 = vpop.f32.mrb[23].mxu0  ;;  %v2965_v23 = vpop.f32.mrb[23].mxu1  ;;  %3131 = vmatmul.mubr.msk.f32.gmra.mrb[128].mxu0 %vm76_vm1, %v1055_v14  ;;  %3286 = vmatmul.mubr.msk.f32.gmra.mrb[128].mxu1 %vm76_vm1, %v1561_v15 }
 0x10c   :  { %3133 = vmatprep.mubr.msk.f32.mxu0 %vm3415_vm0, %v3416_v6  ;;  %3288 = vmatprep.mubr.msk.f32.mxu1 %vm3415_vm0, %v3416_v6  ;;  %v1065_v22 = vld [vmem:[%s5334_s2 + $0xc8] sm:$0xff] }
 0x10e   :  { %v4326_v29 = vpop.f32.mrb[24].mxu0  ;;  %v4328_v30 = vpop.f32.mrb[24].mxu1 }
 0x10f   :  { %v2813_v35 = vpop.f32.mrb[25].mxu0  ;;  %v2968_v36 = vpop.f32.mrb[25].mxu1  ;;  %3134 = vmatmul.mubr.msk.f32.gmra.mrb[130].mxu0 %vm76_vm1, %v1056_v24  ;;  %3289 = vmatmul.mubr.msk.f32.gmra.mrb[130].mxu1 %vm76_vm1, %v1562_v28  ;;  %v1060_v28 = vld [vmem:[%s5334_s2 + $0xa0] sm:$0xff] }
 0x110   :  { %3136 = vmatprep.mubr.msk.f32.mxu0 %vm3415_vm0, %v3416_v6  ;;  %3291 = vmatprep.mubr.msk.f32.mxu1 %vm3415_vm0, %v3416_v6  ;;  %v1566_v35 = vld [vmem:[%s5335_s3 + $0xa0] sm:$0xff] }
 0x112   :  { %v4344_v42 = vpop.f32.mrb[26].mxu0  ;;  %v4346_v43 = vpop.f32.mrb[26].mxu1 }
 0x113   :  { %v2816_v45 = vpop.f32.mrb[27].mxu0  ;;  %v2971_v49 = vpop.f32.mrb[27].mxu1  ;;  %3137 = vmatmul.mubr.msk.f32.gmra.mrb[132].mxu0 %vm76_vm1, %v1057_v37  ;;  %3292 = vmatmul.mubr.msk.f32.gmra.mrb[132].mxu1 %vm76_vm1, %v1563_v38 }
 0x114   :  { %3139 = vmatprep.mubr.msk.f32.mxu0 %vm3415_vm0, %v3416_v6  ;;  %3294 = vmatprep.mubr.msk.f32.mxu1 %vm3415_vm0, %v3416_v6 }
 0x116   :  { %v4362_v52 = vpop.f32.mrb[28].mxu0  ;;  %v4364_v59 = vpop.f32.mrb[28].mxu1 }
 0x117   :  { %v2819_v0 = vpop.f32.mrb[29].mxu0  ;;  %v2974_v1 = vpop.f32.mrb[29].mxu1  ;;  %3140 = vmatmul.mubr.msk.f32.gmra.mrb[134].mxu0 %vm76_vm1, %v1058_v50  ;;  %3295 = vmatmul.mubr.msk.f32.gmra.mrb[134].mxu1 %vm76_vm1, %v1564_v51  ;;  %v1061_v50 = vld [vmem:[%s5334_s2 + $0xa8] sm:$0xff] }
 0x118   :  { %3142 = vmatprep.mubr.msk.f32.mxu0 %vm3415_vm0, %v3416_v6  ;;  %3297 = vmatprep.mubr.msk.f32.mxu1 %vm3415_vm0, %v3416_v6  ;;  %v1567_v51 = vld [vmem:[%s5335_s3 + $0xa8] sm:$0xff] }
 0x11a   :  { %v4380_v14 = vpop.f32.mrb[30].mxu0  ;;  %v4382_v15 = vpop.f32.mrb[30].mxu1 }
 0x11b   :  { %v2822_v23 = vpop.f32.mrb[31].mxu0  ;;  %v2977_v24 = vpop.f32.mrb[31].mxu1  ;;  %3143 = vmatmul.mubr.msk.f32.gmra.mrb[136].mxu0 %vm76_vm1, %v1059_v9  ;;  %3298 = vmatmul.mubr.msk.f32.gmra.mrb[136].mxu1 %vm76_vm1, %v1565_v10  ;;  %v1064_v9 = vld [vmem:[%s5334_s2 + $0xc0] sm:$0xff] }
 0x11c   :  { %3145 = vmatprep.mubr.msk.f32.mxu0 %vm3415_vm0, %v3416_v6  ;;  %3300 = vmatprep.mubr.msk.f32.mxu1 %vm3415_vm0, %v3416_v6  ;;  %v1062_v24 = vld [vmem:[%s5334_s2 + $0xb0] sm:$0xff] }
 0x11e   :  { %v4398_v36 = vpop.f32.mrb[32].mxu0  ;;  %v4400_v37 = vpop.f32.mrb[32].mxu1 }
 0x11f   :  { %v2825_v45 = vpop.f32.mrb[33].mxu0  ;;  %v2980_v49 = vpop.f32.mrb[33].mxu1  ;;  %3146 = vmatmul.mubr.msk.f32.gmra.mrb[138].mxu0 %vm76_vm1, %v1060_v28  ;;  %3301 = vmatmul.mubr.msk.f32.gmra.mrb[138].mxu1 %vm76_vm1, %v1566_v35  ;;  %v1568_v28 = vld [vmem:[%s5335_s3 + $0xb0] sm:$0xff] }
 0x120   :  { %3148 = vmatprep.mubr.msk.f32.mxu0 %vm3415_vm0, %v3416_v6  ;;  %3303 = vmatprep.mubr.msk.f32.mxu1 %vm3415_vm0, %v3416_v6 }
 0x122   :  { %v4416_v0 = vpop.f32.mrb[34].mxu0  ;;  %v4418_v1 = vpop.f32.mrb[34].mxu1 }
 0x123   :  { %v2828_v10 = vpop.f32.mrb[35].mxu0  ;;  %v2983_v23 = vpop.f32.mrb[35].mxu1  ;;  %3149 = vmatmul.mubr.msk.f32.gmra.mrb[140].mxu0 %vm76_vm1, %v1061_v50  ;;  %3304 = vmatmul.mubr.msk.f32.gmra.mrb[140].mxu1 %vm76_vm1, %v1567_v51 }
 0x124   :  { %3151 = vmatprep.mubr.msk.f32.mxu0 %vm3415_vm0, %v3416_v6  ;;  %3306 = vmatprep.mubr.msk.f32.mxu1 %vm3415_vm0, %v3416_v6  ;;  %v1063_v10 = vld [vmem:[%s5334_s2 + $0xb8] sm:$0xff] }
 0x125   :  { %v1569_v23 = vld [vmem:[%s5335_s3 + $0xb8] sm:$0xff] }
 0x126   :  { %v4434_v35 = vpop.f32.mrb[36].mxu0  ;;  %v4436_v45 = vpop.f32.mrb[36].mxu1 }
 0x127   :  { %v2831_v50 = vpop.f32.mrb[37].mxu0  ;;  %v2986_v51 = vpop.f32.mrb[37].mxu1  ;;  %3152 = vmatmul.mubr.msk.f32.gmra.mrb[142].mxu0 %vm76_vm1, %v1062_v24  ;;  %3307 = vmatmul.mubr.msk.f32.gmra.mrb[142].mxu1 %vm76_vm1, %v1568_v28  ;;  %v1570_v24 = vld [vmem:[%s5335_s3 + $0xc0] sm:$0xff] }
 0x128   :  { %3154 = vmatprep.mubr.msk.f32.mxu0 %vm3415_vm0, %v3416_v6  ;;  %3309 = vmatprep.mubr.msk.f32.mxu1 %vm3415_vm0, %v3416_v6 }
 0x12a   :  { %v4452_v50 = vpop.f32.mrb[38].mxu0  ;;  %v4454_v51 = vpop.f32.mrb[38].mxu1 }
 0x12b   :  { %v2834_v28 = vpop.f32.mrb[39].mxu0  ;;  %v2989_v49 = vpop.f32.mrb[39].mxu1  ;;  %3155 = vmatmul.mubr.msk.f32.gmra.mrb[144].mxu0 %vm76_vm1, %v1063_v10  ;;  %3310 = vmatmul.mubr.msk.f32.gmra.mrb[144].mxu1 %vm76_vm1, %v1569_v23  ;;  %v1571_v10 = vld [vmem:[%s5335_s3 + $0xc8] sm:$0xff] }
 0x12c   :  { %3157 = vmatprep.mubr.msk.f32.mxu0 %vm3415_vm0, %v3416_v6  ;;  %3312 = vmatprep.mubr.msk.f32.mxu1 %vm3415_vm0, %v3416_v6 }
 0x12e   :  { %v4470_v28 = vpop.f32.mrb[40].mxu0  ;;  %v4472_v49 = vpop.f32.mrb[40].mxu1 }
 0x12f   :  { %v2837_v23 = vpop.f32.mrb[41].mxu0  ;;  %v2992_v38 = vpop.f32.mrb[41].mxu1  ;;  %3158 = vmatmul.mubr.msk.f32.gmra.mrb[146].mxu0 %vm76_vm1, %v1064_v9  ;;  %3313 = vmatmul.mubr.msk.f32.gmra.mrb[146].mxu1 %vm76_vm1, %v1570_v24  ;;  %v1572_v9 = vld [vmem:[%s5335_s3 + $0xd0] sm:$0xff] }
 0x130   :  { %3160 = vmatprep.mubr.msk.f32.mxu0 %vm3415_vm0, %v3416_v6  ;;  %3315 = vmatprep.mubr.msk.f32.mxu1 %vm3415_vm0, %v3416_v6 }
 0x132   :  { %v4488_v23 = vpop.f32.mrb[42].mxu0  ;;  %v4490_v38 = vpop.f32.mrb[42].mxu1 }
 0x133   :  { %v2840_v24 = vpop.f32.mrb[43].mxu0  ;;  %v2995_v63 = vpop.f32.mrb[43].mxu1  ;;  %3161 = vmatmul.mubr.msk.f32.gmra.mrb[148].mxu0 %vm76_vm1, %v1065_v22  ;;  %3316 = vmatmul.mubr.msk.f32.gmra.mrb[148].mxu1 %vm76_vm1, %v1571_v10  ;;  %v1573_v22 = vld [vmem:[%s5335_s3 + $0xd8] sm:$0xff] }
 0x134   :  { %3163 = vmatprep.mubr.msk.f32.mxu0 %vm3415_vm0, %v3416_v6  ;;  %3318 = vmatprep.mubr.msk.f32.mxu1 %vm3415_vm0, %v3416_v6 }
 0x136   :  { %v4506_v24 = vpop.f32.mrb[44].mxu0  ;;  %v4508_v63 = vpop.f32.mrb[44].mxu1 }
 0x137   :  { %v2843_v10 = vpop.f32.mrb[45].mxu0  ;;  %v2998_v31 = vpop.f32.mrb[45].mxu1  ;;  %3164 = vmatmul.mubr.msk.f32.gmra.mrb[150].mxu0 %vm76_vm1, %v1066_v44  ;;  %3319 = vmatmul.mubr.msk.f32.gmra.mrb[150].mxu1 %vm76_vm1, %v1572_v9  ;;  %v1574_v44 = vld [vmem:[%s5335_s3 + $0xe0] sm:$0xff] }
 0x138   :  { %3166 = vmatprep.mubr.msk.f32.mxu0 %vm3415_vm0, %v3416_v6  ;;  %3321 = vmatprep.mubr.msk.f32.mxu1 %vm3415_vm0, %v3416_v6 }
 0x13a   :  { %v4524_v10 = vpop.f32.mrb[46].mxu0  ;;  %v4526_v31 = vpop.f32.mrb[46].mxu1 }
 0x13b   :  { %v2846_v9 = vpop.f32.mrb[47].mxu0  ;;  %v3001_v8 = vpop.f32.mrb[47].mxu1  ;;  %3167 = vmatmul.mubr.msk.f32.gmra.mrb[152].mxu0 %vm76_vm1, %v1067_v21  ;;  %3322 = vmatmul.mubr.msk.f32.gmra.mrb[152].mxu1 %vm76_vm1, %v1573_v22  ;;  %v1575_v21 = vld [vmem:[%s5335_s3 + $0xe8] sm:$0xff] }
 0x13c   :  { %3169 = vmatprep.mubr.msk.f32.mxu0 %vm3415_vm0, %v3416_v6  ;;  %3324 = vmatprep.mubr.msk.f32.mxu1 %vm3415_vm0, %v3416_v6 }
 0x13e   :  { %v4542_v9 = vpop.f32.mrb[48].mxu0  ;;  %v4544_v8 = vpop.f32.mrb[48].mxu1 }
 0x13f   :  { %5387 = vst [vmem:[#allocation2_spill] sm:$0xff] %v4544_v8  ;;  %v2849_v22 = vpop.f32.mrb[49].mxu0  ;;  %v3004_v48 = vpop.f32.mrb[49].mxu1  ;;  %3170 = vmatmul.mubr.msk.f32.gmra.mrb[154].mxu0 %vm76_vm1, %v1068_v58  ;;  %3325 = vmatmul.mubr.msk.f32.gmra.mrb[154].mxu1 %vm76_vm1, %v1574_v44  ;;  %v1576_v58 = vld [vmem:[%s5335_s3 + $0xf0] sm:$0xff] }
 0x140   :  { %3172 = vmatprep.mubr.msk.f32.mxu0 %vm3415_vm0, %v3416_v6  ;;  %3327 = vmatprep.mubr.msk.f32.mxu1 %vm3415_vm0, %v3416_v6 }
 0x142   :  { %v4560_v22 = vpop.f32.mrb[50].mxu0  ;;  %v4562_v48 = vpop.f32.mrb[50].mxu1 }
 0x143   :  { %5388 = vst [vmem:[#allocation3_spill] sm:$0xff] %v4560_v22  ;;  %5389 = vst [vmem:[#allocation4_spill] sm:$0xff] %v4562_v48  ;;  %v2852_v44 = vpop.f32.mrb[51].mxu0  ;;  %v3007_v34 = vpop.f32.mrb[51].mxu1  ;;  %3173 = vmatmul.mubr.msk.f32.gmra.mrb[156].mxu0 %vm76_vm1, %v1069_v41  ;;  %3328 = vmatmul.mubr.msk.f32.gmra.mrb[156].mxu1 %vm76_vm1, %v1575_v21  ;;  %v1577_v41 = vld [vmem:[%s5335_s3 + $0xf8] sm:$0xff] }
 0x144   :  { %3175 = vmatprep.mubr.msk.f32.mxu0 %vm3415_vm0, %v3416_v6  ;;  %3330 = vmatprep.mubr.msk.f32.mxu1 %vm3415_vm0, %v3416_v6 }
 0x146   :  { %v4578_v44 = vpop.f32.mrb[52].mxu0  ;;  %v4580_v34 = vpop.f32.mrb[52].mxu1 }
 0x147   :  { %5390 = vst [vmem:[#allocation5_spill] sm:$0xff] %v4578_v44  ;;  %5391 = vst [vmem:[#allocation6_spill] sm:$0xff] %v4580_v34  ;;  %v2855_v21 = vpop.f32.mrb[53].mxu0  ;;  %v3010_v20 = vpop.f32.mrb[53].mxu1  ;;  %3176 = vmatmul.mubr.msk.f32.gmra.mrb[158].mxu0 %vm76_vm1, %v1070_v27  ;;  %3331 = vmatmul.mubr.msk.f32.gmra.mrb[158].mxu1 %vm76_vm1, %v1576_v58  ;;  %v1578_v27 = vld [vmem:[%s5335_s3 + $0x100] sm:$0xff] }
 0x148   :  { %3178 = vmatprep.mubr.msk.f32.mxu0 %vm3415_vm0, %v3416_v6  ;;  %3333 = vmatprep.mubr.msk.f32.mxu1 %vm3415_vm0, %v3416_v6 }
 0x14a   :  { %v4596_v21 = vpop.f32.mrb[54].mxu0  ;;  %v4598_v20 = vpop.f32.mrb[54].mxu1 }
 0x14b   :  { %5392 = vst [vmem:[#allocation7_spill] sm:$0xff] %v4596_v21  ;;  %5393 = vst [vmem:[#allocation8_spill] sm:$0xff] %v4598_v20  ;;  %v2858_v58 = vpop.f32.mrb[55].mxu0  ;;  %v3013_v5 = vpop.f32.mrb[55].mxu1  ;;  %3179 = vmatmul.mubr.msk.f32.gmra.mrb[160].mxu0 %vm76_vm1, %v1071_v13  ;;  %3334 = vmatmul.mubr.msk.f32.gmra.mrb[160].mxu1 %vm76_vm1, %v1577_v41  ;;  %v1073_v20 = vld [vmem:[%s5334_s2 + $0x108] sm:$0xff] }
 0x14c   :  { %3181 = vmatprep.mubr.msk.f32.mxu0 %vm3415_vm0, %v3416_v6  ;;  %3336 = vmatprep.mubr.msk.f32.mxu1 %vm3415_vm0, %v3416_v6  ;;  %v1579_v13 = vld [vmem:[%s5335_s3 + $0x108] sm:$0xff] }
 0x14e   :  { %v4614_v58 = vpop.f32.mrb[56].mxu0  ;;  %v4616_v5 = vpop.f32.mrb[56].mxu1 }
 0x14f   :  { %5394 = vst [vmem:[#allocation9_spill] sm:$0xff] %v4614_v58  ;;  %5395 = vst [vmem:[#allocation10_spill] sm:$0xff] %v4616_v5  ;;  %v2861_v41 = vpop.f32.mrb[57].mxu0  ;;  %v3016_v55 = vpop.f32.mrb[57].mxu1  ;;  %3182 = vmatmul.mubr.msk.f32.gmra.mrb[162].mxu0 %vm76_vm1, %v1072_v62  ;;  %3337 = vmatmul.mubr.msk.f32.gmra.mrb[162].mxu1 %vm76_vm1, %v1578_v27  ;;  %v1074_v58 = vld [vmem:[%s5334_s2 + $0x110] sm:$0xff] }
 0x150   :  { %3184 = vmatprep.mubr.msk.f32.mxu0 %vm3415_vm0, %v3416_v6  ;;  %3339 = vmatprep.mubr.msk.f32.mxu1 %vm3415_vm0, %v3416_v6  ;;  %v1580_v62 = vld [vmem:[%s5335_s3 + $0x110] sm:$0xff] }
 0x152   :  { %v4632_v41 = vpop.f32.mrb[58].mxu0  ;;  %v4634_v55 = vpop.f32.mrb[58].mxu1 }
 0x153   :  { %5396 = vst [vmem:[#allocation11_spill] sm:$0xff] %v4632_v41  ;;  %5397 = vst [vmem:[#allocation12_spill] sm:$0xff] %v4634_v55  ;;  %v2864_v27 = vpop.f32.mrb[59].mxu0  ;;  %v3019_v5 = vpop.f32.mrb[59].mxu1  ;;  %3185 = vmatmul.mubr.msk.f32.gmra.mrb[164].mxu0 %vm76_vm1, %v1073_v20  ;;  %3340 = vmatmul.mubr.msk.f32.gmra.mrb[164].mxu1 %vm76_vm1, %v1579_v13  ;;  %v1075_v41 = vld [vmem:[%s5334_s2 + $0x118] sm:$0xff] }
 0x154   :  { %3187 = vmatprep.mubr.msk.f32.mxu0 %vm3415_vm0, %v3416_v6  ;;  %3342 = vmatprep.mubr.msk.f32.mxu1 %vm3415_vm0, %v3416_v6  ;;  %v1581_v20 = vld [vmem:[%s5335_s3 + $0x118] sm:$0xff] }
 0x156   :  { %v4650_v27 = vpop.f32.mrb[60].mxu0  ;;  %v4652_v5 = vpop.f32.mrb[60].mxu1 }
 0x157   :  { %5398 = vst [vmem:[#allocation13_spill] sm:$0xff] %v4650_v27  ;;  %5399 = vst [vmem:[#allocation14_spill] sm:$0xff] %v4652_v5  ;;  %v2867_v13 = vpop.f32.mrb[61].mxu0  ;;  %v3022_v55 = vpop.f32.mrb[61].mxu1  ;;  %3188 = vmatmul.mubr.msk.f32.gmra.mrb[166].mxu0 %vm76_vm1, %v1074_v58  ;;  %3343 = vmatmul.mubr.msk.f32.gmra.mrb[166].mxu1 %vm76_vm1, %v1580_v62  ;;  %v1076_v27 = vld [vmem:[%s5334_s2 + $0x120] sm:$0xff] }
 0x158   :  { %3190 = vmatprep.mubr.msk.f32.mxu0 %vm3415_vm0, %v3416_v6  ;;  %3345 = vmatprep.mubr.msk.f32.mxu1 %vm3415_vm0, %v3416_v6  ;;  %v1582_v58 = vld [vmem:[%s5335_s3 + $0x120] sm:$0xff] }
 0x15a   :  { %v4668_v13 = vpop.f32.mrb[62].mxu0  ;;  %v4670_v55 = vpop.f32.mrb[62].mxu1 }
 0x15b   :  { %5400 = vst [vmem:[#allocation15_spill] sm:$0xff] %v4668_v13  ;;  %5401 = vst [vmem:[#allocation16_spill] sm:$0xff] %v4670_v55  ;;  %v2870_v62 = vpop.f32.mrb[63].mxu0  ;;  %v3025_v5 = vpop.f32.mrb[63].mxu1  ;;  %3191 = vmatmul.mubr.msk.f32.gmra.mrb[168].mxu0 %vm76_vm1, %v1075_v41  ;;  %3346 = vmatmul.mubr.msk.f32.gmra.mrb[168].mxu1 %vm76_vm1, %v1581_v20  ;;  %v1077_v13 = vld [vmem:[%s5334_s2 + $0x128] sm:$0xff] }
 0x15c   :  { %3193 = vmatprep.mubr.msk.f32.mxu0 %vm3415_vm0, %v3416_v6  ;;  %3348 = vmatprep.mubr.msk.f32.mxu1 %vm3415_vm0, %v3416_v6  ;;  %v1583_v41 = vld [vmem:[%s5335_s3 + $0x128] sm:$0xff] }
 0x15e   :  { %v4686_v62 = vpop.f32.mrb[64].mxu0  ;;  %v4688_v5 = vpop.f32.mrb[64].mxu1 }
 0x15f   :  { %5402 = vst [vmem:[#allocation17_spill] sm:$0xff] %v4686_v62  ;;  %5403 = vst [vmem:[#allocation18_spill] sm:$0xff] %v4688_v5  ;;  %v2873_v20 = vpop.f32.mrb[65].mxu0  ;;  %v3028_v55 = vpop.f32.mrb[65].mxu1  ;;  %3194 = vmatmul.mubr.msk.f32.gmra.mrb[170].mxu0 %vm76_vm1, %v1076_v27  ;;  %3349 = vmatmul.mubr.msk.f32.gmra.mrb[170].mxu1 %vm76_vm1, %v1582_v58  ;;  %v1078_v62 = vld [vmem:[%s5334_s2 + $0x130] sm:$0xff] }
 0x160   :  { %3196 = vmatprep.mubr.msk.f32.mxu0 %vm3415_vm0, %v3416_v6  ;;  %3351 = vmatprep.mubr.msk.f32.mxu1 %vm3415_vm0, %v3416_v6  ;;  %v1584_v27 = vld [vmem:[%s5335_s3 + $0x130] sm:$0xff] }
 0x162   :  { %v4704_v20 = vpop.f32.mrb[66].mxu0  ;;  %v4706_v55 = vpop.f32.mrb[66].mxu1 }
 0x163   :  { %5404 = vst [vmem:[#allocation19_spill] sm:$0xff] %v4704_v20  ;;  %5405 = vst [vmem:[#allocation20_spill] sm:$0xff] %v4706_v55  ;;  %v2876_v58 = vpop.f32.mrb[67].mxu0  ;;  %v3031_v5 = vpop.f32.mrb[67].mxu1  ;;  %3197 = vmatmul.mubr.msk.f32.gmra.mrb[172].mxu0 %vm76_vm1, %v1077_v13  ;;  %3352 = vmatmul.mubr.msk.f32.gmra.mrb[172].mxu1 %vm76_vm1, %v1583_v41  ;;  %v1079_v20 = vld [vmem:[%s5334_s2 + $0x138] sm:$0xff] }
 0x164   :  { %3199 = vmatprep.mubr.msk.f32.mxu0 %vm3415_vm0, %v3416_v6  ;;  %3354 = vmatprep.mubr.msk.f32.mxu1 %vm3415_vm0, %v3416_v6  ;;  %v1585_v13 = vld [vmem:[%s5335_s3 + $0x138] sm:$0xff] }
 0x166   :  { %v4722_v58 = vpop.f32.mrb[68].mxu0  ;;  %v4724_v5 = vpop.f32.mrb[68].mxu1 }
 0x167   :  { %5406 = vst [vmem:[#allocation21_spill] sm:$0xff] %v4722_v58  ;;  %5407 = vst [vmem:[#allocation22_spill] sm:$0xff] %v4724_v5  ;;  %v2879_v41 = vpop.f32.mrb[69].mxu0  ;;  %v3034_v55 = vpop.f32.mrb[69].mxu1  ;;  %3200 = vmatmul.mubr.msk.f32.gmra.mrb[174].mxu0 %vm76_vm1, %v1078_v62  ;;  %3355 = vmatmul.mubr.msk.f32.gmra.mrb[174].mxu1 %vm76_vm1, %v1584_v27  ;;  %v1080_v58 = vld [vmem:[%s5334_s2 + $0x140] sm:$0xff] }
 0x168   :  { %3202 = vmatprep.mubr.msk.f32.mxu0 %vm3415_vm0, %v3416_v6  ;;  %3357 = vmatprep.mubr.msk.f32.mxu1 %vm3415_vm0, %v3416_v6  ;;  %v1586_v62 = vld [vmem:[%s5335_s3 + $0x140] sm:$0xff] }
 0x16a   :  { %v4740_v41 = vpop.f32.mrb[70].mxu0  ;;  %v4742_v55 = vpop.f32.mrb[70].mxu1 }
 0x16b   :  { %5408 = vst [vmem:[#allocation23_spill] sm:$0xff] %v4740_v41  ;;  %5409 = vst [vmem:[#allocation24_spill] sm:$0xff] %v4742_v55  ;;  %v2882_v27 = vpop.f32.mrb[71].mxu0  ;;  %v3037_v5 = vpop.f32.mrb[71].mxu1  ;;  %3203 = vmatmul.mubr.msk.f32.gmra.mrb[176].mxu0 %vm76_vm1, %v1079_v20  ;;  %3358 = vmatmul.mubr.msk.f32.gmra.mrb[176].mxu1 %vm76_vm1, %v1585_v13  ;;  %v1081_v41 = vld [vmem:[%s5334_s2 + $0x148] sm:$0xff] }
 0x16c   :  { %3205 = vmatprep.mubr.msk.f32.mxu0 %vm3415_vm0, %v3416_v6  ;;  %3360 = vmatprep.mubr.msk.f32.mxu1 %vm3415_vm0, %v3416_v6  ;;  %v1587_v20 = vld [vmem:[%s5335_s3 + $0x148] sm:$0xff] }
 0x16e   :  { %v4758_v27 = vpop.f32.mrb[72].mxu0  ;;  %v4760_v5 = vpop.f32.mrb[72].mxu1 }
 0x16f   :  { %5410 = vst [vmem:[#allocation25_spill] sm:$0xff] %v4758_v27  ;;  %5411 = vst [vmem:[#allocation26_spill] sm:$0xff] %v4760_v5  ;;  %v2885_v13 = vpop.f32.mrb[73].mxu0  ;;  %v3040_v55 = vpop.f32.mrb[73].mxu1  ;;  %3206 = vmatmul.mubr.msk.f32.gmra.mrb[178].mxu0 %vm76_vm1, %v1080_v58  ;;  %3361 = vmatmul.mubr.msk.f32.gmra.mrb[178].mxu1 %vm76_vm1, %v1586_v62  ;;  %v1082_v27 = vld [vmem:[%s5334_s2 + $0x150] sm:$0xff] }
 0x170   :  { %3208 = vmatprep.mubr.msk.f32.mxu0 %vm3415_vm0, %v3416_v6  ;;  %3363 = vmatprep.mubr.msk.f32.mxu1 %vm3415_vm0, %v3416_v6  ;;  %v1588_v58 = vld [vmem:[%s5335_s3 + $0x150] sm:$0xff] }
 0x172   :  { %v4776_v13 = vpop.f32.mrb[74].mxu0  ;;  %v4778_v55 = vpop.f32.mrb[74].mxu1 }
 0x173   :  { %5412 = vst [vmem:[#allocation27_spill] sm:$0xff] %v4776_v13  ;;  %5413 = vst [vmem:[#allocation28_spill] sm:$0xff] %v4778_v55  ;;  %v2888_v62 = vpop.f32.mrb[75].mxu0  ;;  %v3043_v5 = vpop.f32.mrb[75].mxu1  ;;  %3209 = vmatmul.mubr.msk.f32.gmra.mrb[180].mxu0 %vm76_vm1, %v1081_v41  ;;  %3364 = vmatmul.mubr.msk.f32.gmra.mrb[180].mxu1 %vm76_vm1, %v1587_v20  ;;  %v1083_v13 = vld [vmem:[%s5334_s2 + $0x158] sm:$0xff] }
 0x174   :  { %3211 = vmatprep.mubr.msk.f32.mxu0 %vm3415_vm0, %v3416_v6  ;;  %3366 = vmatprep.mubr.msk.f32.mxu1 %vm3415_vm0, %v3416_v6  ;;  %v1589_v41 = vld [vmem:[%s5335_s3 + $0x158] sm:$0xff] }
 0x176   :  { %v4794_v62 = vpop.f32.mrb[76].mxu0  ;;  %v4796_v5 = vpop.f32.mrb[76].mxu1 }
 0x177   :  { %5414 = vst [vmem:[#allocation29_spill] sm:$0xff] %v4794_v62  ;;  %5415 = vst [vmem:[#allocation30_spill] sm:$0xff] %v4796_v5  ;;  %v2891_v20 = vpop.f32.mrb[77].mxu0  ;;  %v3046_v55 = vpop.f32.mrb[77].mxu1  ;;  %3212 = vmatmul.mubr.msk.f32.gmra.mrb[182].mxu0 %vm76_vm1, %v1082_v27  ;;  %3367 = vmatmul.mubr.msk.f32.gmra.mrb[182].mxu1 %vm76_vm1, %v1588_v58  ;;  %v1084_v62 = vld [vmem:[%s5334_s2 + $0x160] sm:$0xff] }
 0x178   :  { %3214 = vmatprep.mubr.msk.f32.mxu0 %vm3415_vm0, %v3416_v6  ;;  %3369 = vmatprep.mubr.msk.f32.mxu1 %vm3415_vm0, %v3416_v6  ;;  %v1590_v27 = vld [vmem:[%s5335_s3 + $0x160] sm:$0xff] }
 0x17a   :  { %v4812_v20 = vpop.f32.mrb[78].mxu0  ;;  %v4814_v55 = vpop.f32.mrb[78].mxu1 }
 0x17b   :  { %5416 = vst [vmem:[#allocation31_spill] sm:$0xff] %v4812_v20  ;;  %5417 = vst [vmem:[#allocation32_spill] sm:$0xff] %v4814_v55  ;;  %v2894_v58 = vpop.f32.mrb[79].mxu0  ;;  %v3049_v5 = vpop.f32.mrb[79].mxu1  ;;  %3215 = vmatmul.mubr.msk.f32.gmra.mrb[184].mxu0 %vm76_vm1, %v1083_v13  ;;  %3370 = vmatmul.mubr.msk.f32.gmra.mrb[184].mxu1 %vm76_vm1, %v1589_v41  ;;  %v1085_v20 = vld [vmem:[%s5334_s2 + $0x168] sm:$0xff] }
 0x17c   :  { %3217 = vmatprep.mubr.msk.f32.mxu0 %vm3415_vm0, %v3416_v6  ;;  %3372 = vmatprep.mubr.msk.f32.mxu1 %vm3415_vm0, %v3416_v6  ;;  %v1591_v13 = vld [vmem:[%s5335_s3 + $0x168] sm:$0xff] }
 0x17e   :  { %v4830_v58 = vpop.f32.mrb[80].mxu0  ;;  %v4832_v5 = vpop.f32.mrb[80].mxu1 }
 0x17f   :  { %5418 = vst [vmem:[#allocation33_spill] sm:$0xff] %v4830_v58  ;;  %5419 = vst [vmem:[#allocation34_spill] sm:$0xff] %v4832_v5  ;;  %v2897_v41 = vpop.f32.mrb[81].mxu0  ;;  %v3052_v55 = vpop.f32.mrb[81].mxu1  ;;  %3218 = vmatmul.mubr.msk.f32.gmra.mrb[186].mxu0 %vm76_vm1, %v1084_v62  ;;  %3373 = vmatmul.mubr.msk.f32.gmra.mrb[186].mxu1 %vm76_vm1, %v1590_v27  ;;  %v1086_v58 = vld [vmem:[%s5334_s2 + $0x170] sm:$0xff] }
 0x180   :  { %3220 = vmatprep.mubr.msk.f32.mxu0 %vm3415_vm0, %v3416_v6  ;;  %3375 = vmatprep.mubr.msk.f32.mxu1 %vm3415_vm0, %v3416_v6  ;;  %v1592_v62 = vld [vmem:[%s5335_s3 + $0x170] sm:$0xff] }
 0x182   :  { %v4848_v41 = vpop.f32.mrb[82].mxu0  ;;  %v4850_v55 = vpop.f32.mrb[82].mxu1 }
 0x183   :  { %5420 = vst [vmem:[#allocation35_spill] sm:$0xff] %v4848_v41  ;;  %5421 = vst [vmem:[#allocation36_spill] sm:$0xff] %v4850_v55  ;;  %v2900_v27 = vpop.f32.mrb[83].mxu0  ;;  %v3055_v5 = vpop.f32.mrb[83].mxu1  ;;  %3221 = vmatmul.mubr.msk.f32.gmra.mrb[188].mxu0 %vm76_vm1, %v1085_v20  ;;  %3376 = vmatmul.mubr.msk.f32.gmra.mrb[188].mxu1 %vm76_vm1, %v1591_v13  ;;  %v1087_v41 = vld [vmem:[%s5334_s2 + $0x178] sm:$0xff] }
 0x184   :  { %3223 = vmatprep.mubr.msk.f32.mxu0 %vm3415_vm0, %v3416_v6  ;;  %3378 = vmatprep.mubr.msk.f32.mxu1 %vm3415_vm0, %v3416_v6  ;;  %v1593_v20 = vld [vmem:[%s5335_s3 + $0x178] sm:$0xff] }
 0x186   :  { %v4866_v27 = vpop.f32.mrb[84].mxu0  ;;  %v4868_v5 = vpop.f32.mrb[84].mxu1 }
 0x187   :  { %5422 = vst [vmem:[#allocation37_spill] sm:$0xff] %v4866_v27  ;;  %5423 = vst [vmem:[#allocation38_spill] sm:$0xff] %v4868_v5  ;;  %v2903_v13 = vpop.f32.mrb[85].mxu0  ;;  %v3058_v55 = vpop.f32.mrb[85].mxu1  ;;  %3224 = vmatmul.mubr.msk.f32.gmra.mrb[190].mxu0 %vm76_vm1, %v1086_v58  ;;  %3379 = vmatmul.mubr.msk.f32.gmra.mrb[190].mxu1 %vm76_vm1, %v1592_v62  ;;  %v1088_v27 = vld [vmem:[%s5334_s2 + $0x180] sm:$0xff] }
 0x188   :  { %3226 = vmatprep.mubr.msk.f32.mxu0 %vm3415_vm0, %v3416_v6  ;;  %3381 = vmatprep.mubr.msk.f32.mxu1 %vm3415_vm0, %v3416_v6  ;;  %v1594_v58 = vld [vmem:[%s5335_s3 + $0x180] sm:$0xff] }
 0x18a   :  { %v4884_v13 = vpop.f32.mrb[86].mxu0  ;;  %v4886_v55 = vpop.f32.mrb[86].mxu1 }
 0x18b   :  { %5424 = vst [vmem:[#allocation39_spill] sm:$0xff] %v4884_v13  ;;  %5425 = vst [vmem:[#allocation40_spill] sm:$0xff] %v4886_v55  ;;  %v2906_v62 = vpop.f32.mrb[87].mxu0  ;;  %v3061_v5 = vpop.f32.mrb[87].mxu1  ;;  %3227 = vmatmul.mubr.msk.f32.gmra.mrb[192].mxu0 %vm76_vm1, %v1087_v41  ;;  %3382 = vmatmul.mubr.msk.f32.gmra.mrb[192].mxu1 %vm76_vm1, %v1593_v20 }
 0x18c   :  { %3229 = vmatprep.mubr.msk.f32.mxu0 %vm3415_vm0, %v3416_v6  ;;  %3384 = vmatprep.mubr.msk.f32.mxu1 %vm3415_vm0, %v3416_v6 }
 0x18e   :  { %v4902_v62 = vpop.f32.mrb[88].mxu0  ;;  %v4904_v5 = vpop.f32.mrb[88].mxu1 }
 0x18f   :  { %5426 = vst [vmem:[#allocation41_spill] sm:$0xff] %v4902_v62  ;;  %5427 = vst [vmem:[#allocation42_spill] sm:$0xff] %v4904_v5  ;;  %v2909_v20 = vpop.f32.mrb[89].mxu0  ;;  %v3064_v55 = vpop.f32.mrb[89].mxu1  ;;  %3230 = vmatmul.mubr.msk.f32.gmra.mrb[194].mxu0 %vm76_vm1, %v1088_v27  ;;  %3385 = vmatmul.mubr.msk.f32.gmra.mrb[194].mxu1 %vm76_vm1, %v1594_v58  ;;  %v4937_v5 = vld [vmem:[%s5336_s5] ss:$0 sm:$0xff] }
 0x192   :  { %v4910_v6 = vpop.f32.mrb[90].mxu0  ;;  %v4912_v13 = vpop.f32.mrb[90].mxu1 }
 0x193   :  { %5428 = vst [vmem:[#allocation43_spill] sm:$0xff] %v4910_v6  ;;  %5429 = vst [vmem:[#allocation44_spill] sm:$0xff] %v4912_v13  ;;  %v2912_v34 = vpop.f32.mrb[91].mxu0  ;;  %v3067_v44 = vpop.f32.mrb[91].mxu1 }
 0x196   :  { %v4916_v48 = vpop.f32.mrb[92].mxu0  ;;  %v4918_v22 = vpop.f32.mrb[92].mxu1 }
 0x197   :  { %5430 = vst [vmem:[#allocation45_spill] sm:$0xff] %v4916_v48  ;;  %5431 = vst [vmem:[#allocation46_spill] sm:$0xff] %v4918_v22  ;;  %v2915_v20 = vpop.f32.mrb[93].mxu0  ;;  %v3070_v27 = vpop.f32.mrb[93].mxu1 }
 0x19a   :  { %v4922_v41 = vpop.f32.mrb[94].mxu0  ;;  %v4924_v58 = vpop.f32.mrb[94].mxu1 }
 0x19b   :  { %5432 = vst [vmem:[#allocation47_spill] sm:$0xff] %v4922_v41  ;;  %5433 = vst [vmem:[#allocation48_spill] sm:$0xff] %v4924_v58  ;;  %v2918_v62 = vpop.f32.mrb[95].mxu0  ;;  %v3073_v21 = vpop.f32.mrb[95].mxu1 }
 0x19c   :  { %v5436_v21 = vmax.f32 %v4110_v53, %v4112_v54 }
 0x19e   :  { %v4928_v34 = vpop.f32.mrb[96].mxu0  ;;  %v4930_v44 = vpop.f32.mrb[96].mxu1 }
 0x19f   :  { %5434 = vst [vmem:[#allocation49_spill] sm:$0xff] %v4928_v34  ;;  %5435 = vst [vmem:[#allocation50_spill] sm:$0xff] %v4930_v44  ;;  %v2921_v6 = vpop.f32.mrb[97].mxu0  ;;  %v3076_v55 = vpop.f32.mrb[97].mxu1 }
 0x1a2   :  { %v1302_v20 = vpop.f32.mrb[98].mxu0  ;;  %v1808_v27 = vpop.f32.mrb[98].mxu1 }
 0x1a3   :  { %v2101_v22 = vmax.f32 %v1302_v20, %v1808_v27  ;;  %v3087_v48 = vpop.f32.mrb[99].mxu0  ;;  %v3242_v8 = vpop.f32.mrb[99].mxu1 }
 0x1a4   :  { %v5437_v8 = vmax.f32 %v4128_v60, %v4130_v61 }
 0x1a5   :  { %v2150_v62 = vmax.f32 %v5436_v21, %v2101_v22 }
 0x1a6   :  { %v1307_v58 = vpop.f32.mrb[100].mxu0  ;;  %v1813_v41 = vpop.f32.mrb[100].mxu1 }
 0x1a7   :  { %v2206_v13 = vadd.f32 %v4937_v5, %v2150_v62  ;;  %v2102_v6 = vmax.f32 %v1307_v58, %v1813_v41  ;;  %v3090_v55 = vpop.f32.mrb[101].mxu0  ;;  %v3245_v44 = vpop.f32.mrb[101].mxu1 }
 0x1a9   :  { %v2255_v20 = vmax.f32 %v2206_v13, 0.0  ;;  %v2151_v48 = vmax.f32 %v5437_v8, %v2102_v6  ;;  %v5438_v13 = vmax.f32 %v4146_v3, %v4148_v4 }
 0x1aa   :  { %v1312_v27 = vpop.f32.mrb[102].mxu0  ;;  %v1818_v34 = vpop.f32.mrb[102].mxu1 }
 0x1ab   :  { %2305 = vst.msk [vmem:[%s5337_s6] sm:$0xff] %vm2304_vm2, %v2255_v20  ;;  %v2207_v53 = vadd.f32 %v4937_v5, %v2151_v48  ;;  %v2103_v54 = vmax.f32 %v1312_v27, %v1818_v34  ;;  %v3093_v22 = vpop.f32.mrb[103].mxu0  ;;  %v3248_v41 = vpop.f32.mrb[103].mxu1  ;;  %v5439_v20 = vmax.f32 %v4164_v11, %v4166_v12 }
 0x1ac   :  { %v5440_v41 = vmax.f32 %v4182_v18, %v4184_v19 }
 0x1ad   :  { %v2256_v58 = vmax.f32 %v2207_v53, 0.0  ;;  %v2152_v44 = vmax.f32 %v5438_v13, %v2103_v54 }
 0x1ae   :  { %v1317_v21 = vpop.f32.mrb[104].mxu0  ;;  %v1823_v60 = vpop.f32.mrb[104].mxu1 }
 0x1af   :  { %2306 = vst.msk [vmem:[%s5337_s6 + $0x8] sm:$0xff] %vm2304_vm2, %v2256_v58  ;;  %v2208_v61 = vadd.f32 %v4937_v5, %v2152_v44  ;;  %v2104_v62 = vmax.f32 %v1317_v21, %v1823_v60  ;;  %v3096_v6 = vpop.f32.mrb[105].mxu0  ;;  %v3251_v55 = vpop.f32.mrb[105].mxu1 }
 0x1b1   :  { %v2257_v34 = vmax.f32 %v2208_v61, 0.0  ;;  %v2153_v8 = vmax.f32 %v5439_v20, %v2104_v62  ;;  %v5441_v62 = vmax.f32 %v4200_v25, %v4202_v26 }
 0x1b2   :  { %v1322_v48 = vpop.f32.mrb[106].mxu0  ;;  %v1828_v3 = vpop.f32.mrb[106].mxu1 }
 0x1b3   :  { %2307 = vst.msk [vmem:[%s5337_s6 + $0x10] sm:$0xff] %vm2304_vm2, %v2257_v34  ;;  %v2209_v4 = vadd.f32 %v4937_v5, %v2153_v8  ;;  %v2105_v27 = vmax.f32 %v1322_v48, %v1828_v3  ;;  %v3099_v53 = vpop.f32.mrb[107].mxu0  ;;  %v3254_v54 = vpop.f32.mrb[107].mxu1  ;;  %v5442_v3 = vmax.f32 %v4218_v32, %v4220_v33 }
 0x1b5   :  { %v2258_v22 = vmax.f32 %v2209_v4, 0.0  ;;  %v2154_v58 = vmax.f32 %v5440_v41, %v2105_v27 }
 0x1b6   :  { %v1327_v13 = vpop.f32.mrb[108].mxu0  ;;  %v1833_v11 = vpop.f32.mrb[108].mxu1 }
 0x1b7   :  { %2308 = vst.msk [vmem:[%s5337_s6 + $0x18] sm:$0xff] %vm2304_vm2, %v2258_v22  ;;  %v2210_v12 = vadd.f32 %v4937_v5, %v2154_v58  ;;  %v2106_v44 = vmax.f32 %v1327_v13, %v1833_v11  ;;  %v3102_v21 = vpop.f32.mrb[109].mxu0  ;;  %v3257_v60 = vpop.f32.mrb[109].mxu1  ;;  %v5443_v58 = vmax.f32 %v4236_v39, %v4238_v40 }
 0x1b9   :  { %v2259_v61 = vmax.f32 %v2210_v12, 0.0  ;;  %v2155_v6 = vmax.f32 %v5441_v62, %v2106_v44 }
 0x1ba   :  { %v1332_v55 = vpop.f32.mrb[110].mxu0  ;;  %v1838_v18 = vpop.f32.mrb[110].mxu1 }
 0x1bb   :  { %2309 = vst.msk [vmem:[%s5337_s6 + $0x20] sm:$0xff] %vm2304_vm2, %v2259_v61  ;;  %v2211_v19 = vadd.f32 %v4937_v5, %v2155_v6  ;;  %v2107_v34 = vmax.f32 %v1332_v55, %v1838_v18  ;;  %v3105_v20 = vpop.f32.mrb[111].mxu0  ;;  %v3260_v8 = vpop.f32.mrb[111].mxu1  ;;  %v5444_v61 = vmax.f32 %v4254_v46, %v4256_v47 }
 0x1bc   :  { %v5445_v20 = vmax.f32 %v4272_v56, %v4274_v57 }
 0x1bd   :  { %v2260_v48 = vmax.f32 %v2211_v19, 0.0  ;;  %v2156_v4 = vmax.f32 %v5442_v3, %v2107_v34 }
 0x1be   :  { %v1337_v27 = vpop.f32.mrb[112].mxu0  ;;  %v1843_v25 = vpop.f32.mrb[112].mxu1 }
 0x1bf   :  { %2310 = vst.msk [vmem:[%s5337_s6 + $0x28] sm:$0xff] %vm2304_vm2, %v2260_v48  ;;  %v2212_v26 = vadd.f32 %v4937_v5, %v2156_v4  ;;  %v2108_v53 = vmax.f32 %v1337_v27, %v1843_v25  ;;  %v3108_v54 = vpop.f32.mrb[113].mxu0  ;;  %v3263_v22 = vpop.f32.mrb[113].mxu1 }
 0x1c1   :  { %v2261_v41 = vmax.f32 %v2212_v26, 0.0  ;;  %v2157_v13 = vmax.f32 %v5443_v58, %v2108_v53  ;;  %v5446_v26 = vmax.f32 %v4290_v2, %v4292_v7 }
 0x1c2   :  { %v1342_v11 = vpop.f32.mrb[114].mxu0  ;;  %v1848_v32 = vpop.f32.mrb[114].mxu1 }
 0x1c3   :  { %2311 = vst.msk [vmem:[%s5337_s6 + $0x30] sm:$0xff] %vm2304_vm2, %v2261_v41  ;;  %v2213_v33 = vadd.f32 %v4937_v5, %v2157_v13  ;;  %v2109_v12 = vmax.f32 %v1342_v11, %v1848_v32  ;;  %v3111_v44 = vpop.f32.mrb[115].mxu0  ;;  %v3266_v21 = vpop.f32.mrb[115].mxu1  ;;  %v5447_v11 = vmax.f32 %v4308_v16, %v4310_v17 }
 0x1c5   :  { %v2262_v60 = vmax.f32 %v2213_v33, 0.0  ;;  %v2158_v62 = vmax.f32 %v5444_v61, %v2109_v12  ;;  %v5448_v61 = vmax.f32 %v4326_v29, %v4328_v30 }
 0x1c6   :  { %v1347_v6 = vpop.f32.mrb[116].mxu0  ;;  %v1853_v39 = vpop.f32.mrb[116].mxu1 }
 0x1c7   :  { %2312 = vst.msk [vmem:[%s5337_s6 + $0x38] sm:$0xff] %vm2304_vm2, %v2262_v60  ;;  %v2214_v40 = vadd.f32 %v4937_v5, %v2158_v62  ;;  %v2110_v55 = vmax.f32 %v1347_v6, %v1853_v39  ;;  %v3114_v18 = vpop.f32.mrb[117].mxu0  ;;  %v3269_v19 = vpop.f32.mrb[117].mxu1 }
 0x1c8   :  { %v5449_v19 = vmax.f32 %v4344_v42, %v4346_v43 }
 0x1c9   :  { %v2263_v34 = vmax.f32 %v2214_v40, 0.0  ;;  %v2159_v8 = vmax.f32 %v5445_v20, %v2110_v55 }
 0x1ca   :  { %v1352_v48 = vpop.f32.mrb[118].mxu0  ;;  %v1858_v46 = vpop.f32.mrb[118].mxu1 }
 0x1cb   :  { %2313 = vst.msk [vmem:[%s5337_s6 + $0x40] sm:$0xff] %vm2304_vm2, %v2263_v34  ;;  %v2215_v47 = vadd.f32 %v4937_v5, %v2159_v8  ;;  %v2111_v3 = vmax.f32 %v1352_v48, %v1858_v46  ;;  %v3117_v4 = vpop.f32.mrb[119].mxu0  ;;  %v3272_v27 = vpop.f32.mrb[119].mxu1 }
 0x1cd   :  { %v2264_v25 = vmax.f32 %v2215_v47, 0.0  ;;  %v2160_v53 = vmax.f32 %v5446_v26, %v2111_v3  ;;  %v5450_v3 = vmax.f32 %v4362_v52, %v4364_v59 }
 0x1ce   :  { %v1357_v54 = vpop.f32.mrb[120].mxu0  ;;  %v1863_v56 = vpop.f32.mrb[120].mxu1 }
 0x1cf   :  { %2314 = vst.msk [vmem:[%s5337_s6 + $0x48] sm:$0xff] %vm2304_vm2, %v2264_v25  ;;  %v2216_v57 = vadd.f32 %v4937_v5, %v2160_v53  ;;  %v2112_v22 = vmax.f32 %v1357_v54, %v1863_v56  ;;  %v3120_v41 = vpop.f32.mrb[121].mxu0  ;;  %v3275_v58 = vpop.f32.mrb[121].mxu1  ;;  %v5451_v56 = vmax.f32 %v4380_v14, %v4382_v15 }
 0x1d1   :  { %v2265_v13 = vmax.f32 %v2216_v57, 0.0  ;;  %v2161_v32 = vmax.f32 %v5447_v11, %v2112_v22 }
 0x1d2   :  { %v1362_v33 = vpop.f32.mrb[122].mxu0  ;;  %v1868_v2 = vpop.f32.mrb[122].mxu1 }
 0x1d3   :  { %2315 = vst.msk [vmem:[%s5337_s6 + $0x50] sm:$0xff] %vm2304_vm2, %v2265_v13  ;;  %v2217_v7 = vadd.f32 %v4937_v5, %v2161_v32  ;;  %v2113_v12 = vmax.f32 %v1362_v33, %v1868_v2  ;;  %v3123_v44 = vpop.f32.mrb[123].mxu0  ;;  %v3278_v21 = vpop.f32.mrb[123].mxu1  ;;  %v5452_v32 = vmax.f32 %v4398_v36, %v4400_v37 }
 0x1d5   :  { %v2266_v60 = vmax.f32 %v2217_v7, 0.0  ;;  %v2162_v62 = vmax.f32 %v5448_v61, %v2113_v12 }
 0x1d6   :  { %v1367_v6 = vpop.f32.mrb[124].mxu0  ;;  %v1873_v16 = vpop.f32.mrb[124].mxu1 }
 0x1d7   :  { %2316 = vst.msk [vmem:[%s5337_s6 + $0x58] sm:$0xff] %vm2304_vm2, %v2266_v60  ;;  %v2218_v17 = vadd.f32 %v4937_v5, %v2162_v62  ;;  %v2114_v39 = vmax.f32 %v1367_v6, %v1873_v16  ;;  %v3126_v40 = vpop.f32.mrb[125].mxu0  ;;  %v3281_v55 = vpop.f32.mrb[125].mxu1  ;;  %v5453_v60 = vmax.f32 %v4416_v0, %v4418_v1 }
 0x1d8   :  { %v5454_v40 = vmax.f32 %v4434_v35, %v4436_v45 }
 0x1d9   :  { %v2267_v18 = vmax.f32 %v2218_v17, 0.0  ;;  %v2163_v34 = vmax.f32 %v5449_v19, %v2114_v39 }
 0x1da   :  { %v1372_v20 = vpop.f32.mrb[126].mxu0  ;;  %v1878_v29 = vpop.f32.mrb[126].mxu1 }
 0x1db   :  { %2317 = vst.msk [vmem:[%s5337_s6 + $0x60] sm:$0xff] %vm2304_vm2, %v2267_v18  ;;  %v2219_v30 = vadd.f32 %v4937_v5, %v2163_v34  ;;  %v2115_v8 = vmax.f32 %v1372_v20, %v1878_v29  ;;  %v3129_v48 = vpop.f32.mrb[127].mxu0  ;;  %v3284_v46 = vpop.f32.mrb[127].mxu1 }
 0x1dd   :  { %v2268_v47 = vmax.f32 %v2219_v30, 0.0  ;;  %v2164_v4 = vmax.f32 %v5450_v3, %v2115_v8  ;;  %v5455_v30 = vmax.f32 %v4452_v50, %v4454_v51 }
 0x1de   :  { %v1377_v27 = vpop.f32.mrb[128].mxu0  ;;  %v1883_v42 = vpop.f32.mrb[128].mxu1 }
 0x1df   :  { %2318 = vst.msk [vmem:[%s5337_s6 + $0x68] sm:$0xff] %vm2304_vm2, %v2268_v47  ;;  %v2220_v43 = vadd.f32 %v4937_v5, %v2164_v4  ;;  %v2116_v25 = vmax.f32 %v1377_v27, %v1883_v42  ;;  %v3132_v26 = vpop.f32.mrb[129].mxu0  ;;  %v3287_v53 = vpop.f32.mrb[129].mxu1  ;;  %v5456_v27 = vmax.f32 %v4470_v28, %v4472_v49 }
 0x1e1   :  { %v2269_v54 = vmax.f32 %v2220_v43, 0.0  ;;  %v2165_v57 = vmax.f32 %v5451_v56, %v2116_v25  ;;  %v5457_v56 = vmax.f32 %v4488_v23, %v4490_v38 }
 0x1e2   :  { %v1382_v22 = vpop.f32.mrb[130].mxu0  ;;  %v1888_v52 = vpop.f32.mrb[130].mxu1 }
 0x1e3   :  { %2319 = vst.msk [vmem:[%s5337_s6 + $0x70] sm:$0xff] %vm2304_vm2, %v2269_v54  ;;  %v2221_v59 = vadd.f32 %v4937_v5, %v2165_v57  ;;  %v2117_v41 = vmax.f32 %v1382_v22, %v1888_v52  ;;  %v3135_v58 = vpop.f32.mrb[131].mxu0  ;;  %v3290_v13 = vpop.f32.mrb[131].mxu1 }
 0x1e4   :  { %v5458_v13 = vmax.f32 %v4506_v24, %v4508_v63 }
 0x1e5   :  { %v2270_v11 = vmax.f32 %v2221_v59, 0.0  ;;  %v2166_v33 = vmax.f32 %v5452_v32, %v2117_v41 }
 0x1e6   :  { %v1387_v2 = vpop.f32.mrb[132].mxu0  ;;  %v1893_v14 = vpop.f32.mrb[132].mxu1 }
 0x1e7   :  { %2320 = vst.msk [vmem:[%s5337_s6 + $0x78] sm:$0xff] %vm2304_vm2, %v2270_v11  ;;  %v2222_v15 = vadd.f32 %v4937_v5, %v2166_v33  ;;  %v2118_v7 = vmax.f32 %v1387_v2, %v1893_v14  ;;  %v3138_v12 = vpop.f32.mrb[133].mxu0  ;;  %v3293_v44 = vpop.f32.mrb[133].mxu1 }
 0x1e9   :  { %v2271_v21 = vmax.f32 %v2222_v15, 0.0  ;;  %v2167_v61 = vmax.f32 %v5453_v60, %v2118_v7  ;;  %v5459_v7 = vmax.f32 %v4524_v10, %v4526_v31 }
 0x1ea   :  { %v1392_v62 = vpop.f32.mrb[134].mxu0  ;;  %v1898_v36 = vpop.f32.mrb[134].mxu1 }
 0x1eb   :  { %2321 = vst.msk [vmem:[%s5337_s6 + $0x80] sm:$0xff] %vm2304_vm2, %v2271_v21  ;;  %v2223_v37 = vadd.f32 %v4937_v5, %v2167_v61  ;;  %v2119_v6 = vmax.f32 %v1392_v62, %v1898_v36  ;;  %v3141_v16 = vpop.f32.mrb[135].mxu0  ;;  %v3296_v17 = vpop.f32.mrb[135].mxu1  ;;  %v5460_v36 = vld [vmem:[#allocation2_spill] sm:$0xff] }
 0x1ed   :  { %v2272_v39 = vmax.f32 %v2223_v37, 0.0  ;;  %v2168_v55 = vmax.f32 %v5454_v40, %v2119_v6  ;;  %v5461_v37 = vmax.f32 %v4542_v9, %v5460_v36 }
 0x1ee   :  { %v1397_v18 = vpop.f32.mrb[136].mxu0  ;;  %v1903_v0 = vpop.f32.mrb[136].mxu1 }
 0x1ef   :  { %2322 = vst.msk [vmem:[%s5337_s6 + $0x88] sm:$0xff] %vm2304_vm2, %v2272_v39  ;;  %v2224_v1 = vadd.f32 %v4937_v5, %v2168_v55  ;;  %v2120_v19 = vmax.f32 %v1397_v18, %v1903_v0  ;;  %v3144_v34 = vpop.f32.mrb[137].mxu0  ;;  %v3299_v20 = vpop.f32.mrb[137].mxu1  ;;  %v5462_v18 = vld [vmem:[#allocation3_spill] sm:$0xff]  ;;  %v5463_v0 = vld [vmem:[#allocation4_spill] sm:$0xff] }
 0x1f1   :  { %v2273_v29 = vmax.f32 %v2224_v1, 0.0  ;;  %v2169_v8 = vmax.f32 %v5455_v30, %v2120_v19  ;;  %v5464_v1 = vmax.f32 %v5462_v18, %v5463_v0 }
 0x1f2   :  { %v1402_v48 = vpop.f32.mrb[138].mxu0  ;;  %v1908_v35 = vpop.f32.mrb[138].mxu1 }
 0x1f3   :  { %2323 = vst.msk [vmem:[%s5337_s6 + $0x90] sm:$0xff] %vm2304_vm2, %v2273_v29  ;;  %v2225_v45 = vadd.f32 %v4937_v5, %v2169_v8  ;;  %v2121_v46 = vmax.f32 %v1402_v48, %v1908_v35  ;;  %v3147_v47 = vpop.f32.mrb[139].mxu0  ;;  %v3302_v3 = vpop.f32.mrb[139].mxu1  ;;  %v5465_v35 = vld [vmem:[#allocation5_spill] sm:$0xff] }
 0x1f5   :  { %v2274_v4 = vmax.f32 %v2225_v45, 0.0  ;;  %v2170_v42 = vmax.f32 %v5456_v27, %v2121_v46  ;;  %v5466_v45 = vld [vmem:[#allocation6_spill] sm:$0xff] }
 0x1f6   :  { %v1407_v43 = vpop.f32.mrb[140].mxu0  ;;  %v1913_v50 = vpop.f32.mrb[140].mxu1  ;;  %v5467_v46 = vmax.f32 %v5465_v35, %v5466_v45 }
 0x1f7   :  { %2324 = vst.msk [vmem:[%s5337_s6 + $0x98] sm:$0xff] %vm2304_vm2, %v2274_v4  ;;  %v2226_v51 = vadd.f32 %v4937_v5, %v2170_v42  ;;  %v2122_v25 = vmax.f32 %v1407_v43, %v1913_v50  ;;  %v3150_v26 = vpop.f32.mrb[141].mxu0  ;;  %v3305_v53 = vpop.f32.mrb[141].mxu1 }
 0x1f8   :  { %v5469_v26 = vld [vmem:[#allocation8_spill] sm:$0xff] }
 0x1f9   :  { %v2275_v54 = vmax.f32 %v2226_v51, 0.0  ;;  %v2171_v57 = vmax.f32 %v5457_v56, %v2122_v25  ;;  %v5468_v25 = vld [vmem:[#allocation7_spill] sm:$0xff] }
 0x1fa   :  { %v1412_v22 = vpop.f32.mrb[142].mxu0  ;;  %v1918_v28 = vpop.f32.mrb[142].mxu1  ;;  %v5470_v53 = vmax.f32 %v5468_v25, %v5469_v26 }
 0x1fb   :  { %2325 = vst.msk [vmem:[%s5337_s6 + $0xa0] sm:$0xff] %vm2304_vm2, %v2275_v54  ;;  %v2227_v49 = vadd.f32 %v4937_v5, %v2171_v57  ;;  %v2123_v52 = vmax.f32 %v1412_v22, %v1918_v28  ;;  %v3153_v59 = vpop.f32.mrb[143].mxu0  ;;  %v3308_v41 = vpop.f32.mrb[143].mxu1 }
 0x1fc   :  { %v5471_v41 = vld [vmem:[#allocation9_spill] sm:$0xff] }
 0x1fd   :  { %v2276_v58 = vmax.f32 %v2227_v49, 0.0  ;;  %v2172_v11 = vmax.f32 %v5458_v13, %v2123_v52 }
 0x1fe   :  { %v1417_v32 = vpop.f32.mrb[144].mxu0  ;;  %v1923_v23 = vpop.f32.mrb[144].mxu1 }
 0x1ff   :  { %2326 = vst.msk [vmem:[%s5337_s6 + $0xa8] sm:$0xff] %vm2304_vm2, %v2276_v58  ;;  %v2228_v38 = vadd.f32 %v4937_v5, %v2172_v11  ;;  %v2124_v33 = vmax.f32 %v1417_v32, %v1923_v23  ;;  %v3156_v2 = vpop.f32.mrb[145].mxu0  ;;  %v3311_v14 = vpop.f32.mrb[145].mxu1  ;;  %v5472_v58 = vld [vmem:[#allocation10_spill] sm:$0xff] }
 0x200   :  { %v5473_v13 = vmax.f32 %v5471_v41, %v5472_v58 }
 0x201   :  { %v2277_v15 = vmax.f32 %v2228_v38, 0.0  ;;  %v2173_v12 = vmax.f32 %v5459_v7, %v2124_v33  ;;  %v5474_v7 = vld [vmem:[#allocation11_spill] sm:$0xff] }
 0x202   :  { %v1422_v44 = vpop.f32.mrb[146].mxu0  ;;  %v1928_v24 = vpop.f32.mrb[146].mxu1 }
 0x203   :  { %2327 = vst.msk [vmem:[%s5337_s6 + $0xb0] sm:$0xff] %vm2304_vm2, %v2277_v15  ;;  %v2229_v63 = vadd.f32 %v4937_v5, %v2173_v12  ;;  %v2125_v21 = vmax.f32 %v1422_v44, %v1928_v24  ;;  %v3159_v60 = vpop.f32.mrb[147].mxu0  ;;  %v3314_v61 = vpop.f32.mrb[147].mxu1  ;;  %v5475_v12 = vld [vmem:[#allocation12_spill] sm:$0xff] }
 0x204   :  { %v5476_v44 = vmax.f32 %v5474_v7, %v5475_v12 }
 0x205   :  { %v2278_v62 = vmax.f32 %v2229_v63, 0.0  ;;  %v2174_v6 = vmax.f32 %v5461_v37, %v2125_v21 }
 0x206   :  { %v1427_v16 = vpop.f32.mrb[148].mxu0  ;;  %v1933_v10 = vpop.f32.mrb[148].mxu1 }
 0x207   :  { %2328 = vst.msk [vmem:[%s5337_s6 + $0xb8] sm:$0xff] %vm2304_vm2, %v2278_v62  ;;  %v2230_v31 = vadd.f32 %v4937_v5, %v2174_v6  ;;  %v2126_v17 = vmax.f32 %v1427_v16, %v1933_v10  ;;  %v3162_v39 = vpop.f32.mrb[149].mxu0  ;;  %v3317_v40 = vpop.f32.mrb[149].mxu1  ;;  %v5477_v6 = vld [vmem:[#allocation13_spill] sm:$0xff]  ;;  %v5478_v16 = vld [vmem:[#allocation14_spill] sm:$0xff] }
 0x208   :  { %v5479_v10 = vmax.f32 %v5477_v6, %v5478_v16 }
 0x209   :  { %v2279_v55 = vmax.f32 %v2230_v31, 0.0  ;;  %v2175_v19 = vmax.f32 %v5464_v1, %v2126_v17 }
 0x20a   :  { %v1432_v34 = vpop.f32.mrb[150].mxu0  ;;  %v1938_v9 = vpop.f32.mrb[150].mxu1 }
 0x20b   :  { %2329 = vst.msk [vmem:[%s5337_s6 + $0xc0] sm:$0xff] %vm2304_vm2, %v2279_v55  ;;  %v2231_v20 = vadd.f32 %v4937_v5, %v2175_v19  ;;  %v2127_v29 = vmax.f32 %v1432_v34, %v1938_v9  ;;  %v3165_v30 = vpop.f32.mrb[151].mxu0  ;;  %v3320_v8 = vpop.f32.mrb[151].mxu1  ;;  %v5480_v19 = vld [vmem:[#allocation15_spill] sm:$0xff]  ;;  %v5481_v34 = vld [vmem:[#allocation16_spill] sm:$0xff] }
 0x20c   :  { %v5482_v9 = vmax.f32 %v5480_v19, %v5481_v34 }
 0x20d   :  { %v2280_v48 = vmax.f32 %v2231_v20, 0.0  ;;  %v2176_v47 = vmax.f32 %v5467_v46, %v2127_v29 }
 0x20e   :  { %v1437_v3 = vpop.f32.mrb[152].mxu0  ;;  %v1943_v4 = vpop.f32.mrb[152].mxu1 }
 0x20f   :  { %2330 = vst.msk [vmem:[%s5337_s6 + $0xc8] sm:$0xff] %vm2304_vm2, %v2280_v48  ;;  %v2232_v27 = vadd.f32 %v4937_v5, %v2176_v47  ;;  %v2128_v42 = vmax.f32 %v1437_v3, %v1943_v4  ;;  %v3168_v43 = vpop.f32.mrb[153].mxu0  ;;  %v3323_v50 = vpop.f32.mrb[153].mxu1  ;;  %v5483_v47 = vld [vmem:[#allocation17_spill] sm:$0xff]  ;;  %v5484_v3 = vld [vmem:[#allocation18_spill] sm:$0xff] }
 0x210   :  { %v5485_v4 = vmax.f32 %v5483_v47, %v5484_v3 }
 0x211   :  { %v2281_v51 = vmax.f32 %v2232_v27, 0.0  ;;  %v2177_v54 = vmax.f32 %v5470_v53, %v2128_v42 }
 0x212   :  { %v1442_v56 = vpop.f32.mrb[154].mxu0  ;;  %v1948_v57 = vpop.f32.mrb[154].mxu1 }
 0x213   :  { %2331 = vst.msk [vmem:[%s5337_s6 + $0xd0] sm:$0xff] %vm2304_vm2, %v2281_v51  ;;  %v2233_v22 = vadd.f32 %v4937_v5, %v2177_v54  ;;  %v2129_v28 = vmax.f32 %v1442_v56, %v1948_v57  ;;  %v3171_v49 = vpop.f32.mrb[155].mxu0  ;;  %v3326_v52 = vpop.f32.mrb[155].mxu1  ;;  %v5486_v54 = vld [vmem:[#allocation19_spill] sm:$0xff]  ;;  %v5487_v56 = vld [vmem:[#allocation20_spill] sm:$0xff] }
 0x214   :  { %v5488_v57 = vmax.f32 %v5486_v54, %v5487_v56 }
 0x215   :  { %v2282_v59 = vmax.f32 %v2233_v22, 0.0  ;;  %v2178_v11 = vmax.f32 %v5473_v13, %v2129_v28 }
 0x216   :  { %v1447_v32 = vpop.f32.mrb[156].mxu0  ;;  %v1953_v23 = vpop.f32.mrb[156].mxu1 }
 0x217   :  { %2332 = vst.msk [vmem:[%s5337_s6 + $0xd8] sm:$0xff] %vm2304_vm2, %v2282_v59  ;;  %v2234_v38 = vadd.f32 %v4937_v5, %v2178_v11  ;;  %v2130_v33 = vmax.f32 %v1447_v32, %v1953_v23  ;;  %v3174_v2 = vpop.f32.mrb[157].mxu0  ;;  %v3329_v14 = vpop.f32.mrb[157].mxu1  ;;  %v5489_v11 = vld [vmem:[#allocation21_spill] sm:$0xff]  ;;  %v5490_v32 = vld [vmem:[#allocation22_spill] sm:$0xff] }
 0x218   :  { %v5491_v23 = vmax.f32 %v5489_v11, %v5490_v32 }
 0x219   :  { %v2283_v15 = vmax.f32 %v2234_v38, 0.0  ;;  %v2179_v24 = vmax.f32 %v5476_v44, %v2130_v33 }
 0x21a   :  { %v1452_v63 = vpop.f32.mrb[158].mxu0  ;;  %v1958_v21 = vpop.f32.mrb[158].mxu1 }
 0x21b   :  { %2333 = vst.msk [vmem:[%s5337_s6 + $0xe0] sm:$0xff] %vm2304_vm2, %v2283_v15  ;;  %v2235_v60 = vadd.f32 %v4937_v5, %v2179_v24  ;;  %v2131_v61 = vmax.f32 %v1452_v63, %v1958_v21  ;;  %v3177_v62 = vpop.f32.mrb[159].mxu0  ;;  %v3332_v36 = vpop.f32.mrb[159].mxu1  ;;  %v5492_v24 = vld [vmem:[#allocation23_spill] sm:$0xff]  ;;  %v5493_v63 = vld [vmem:[#allocation24_spill] sm:$0xff] }
 0x21c   :  { %v5494_v21 = vmax.f32 %v5492_v24, %v5493_v63 }
 0x21d   :  { %v2284_v37 = vmax.f32 %v2235_v60, 0.0  ;;  %v2180_v31 = vmax.f32 %v5479_v10, %v2131_v61 }
 0x21e   :  { %v1457_v17 = vpop.f32.mrb[160].mxu0  ;;  %v1963_v39 = vpop.f32.mrb[160].mxu1 }
 0x21f   :  { %2334 = vst.msk [vmem:[%s5337_s6 + $0xe8] sm:$0xff] %vm2304_vm2, %v2284_v37  ;;  %v2236_v40 = vadd.f32 %v4937_v5, %v2180_v31  ;;  %v2132_v55 = vmax.f32 %v1457_v17, %v1963_v39  ;;  %v3180_v18 = vpop.f32.mrb[161].mxu0  ;;  %v3335_v0 = vpop.f32.mrb[161].mxu1  ;;  %v5495_v31 = vld [vmem:[#allocation25_spill] sm:$0xff]  ;;  %v5496_v17 = vld [vmem:[#allocation26_spill] sm:$0xff] }
 0x220   :  { %v5497_v39 = vmax.f32 %v5495_v31, %v5496_v17 }
 0x221   :  { %v2285_v1 = vmax.f32 %v2236_v40, 0.0  ;;  %v2181_v20 = vmax.f32 %v5482_v9, %v2132_v55 }
 0x222   :  { %v1462_v29 = vpop.f32.mrb[162].mxu0  ;;  %v1968_v30 = vpop.f32.mrb[162].mxu1 }
 0x223   :  { %2335 = vst.msk [vmem:[%s5337_s6 + $0xf0] sm:$0xff] %vm2304_vm2, %v2285_v1  ;;  %v2237_v8 = vadd.f32 %v4937_v5, %v2181_v20  ;;  %v2133_v48 = vmax.f32 %v1462_v29, %v1968_v30  ;;  %v3183_v35 = vpop.f32.mrb[163].mxu0  ;;  %v3338_v45 = vpop.f32.mrb[163].mxu1  ;;  %v5498_v20 = vld [vmem:[#allocation27_spill] sm:$0xff]  ;;  %v5499_v29 = vld [vmem:[#allocation28_spill] sm:$0xff] }
 0x224   :  { %v5500_v30 = vmax.f32 %v5498_v20, %v5499_v29 }
 0x225   :  { %v2286_v46 = vmax.f32 %v2237_v8, 0.0  ;;  %v2182_v27 = vmax.f32 %v5485_v4, %v2133_v48 }
 0x226   :  { %v1467_v42 = vpop.f32.mrb[164].mxu0  ;;  %v1973_v43 = vpop.f32.mrb[164].mxu1 }
 0x227   :  { %2336 = vst.msk [vmem:[%s5337_s6 + $0xf8] sm:$0xff] %vm2304_vm2, %v2286_v46  ;;  %v2238_v50 = vadd.f32 %v4937_v5, %v2182_v27  ;;  %v2134_v51 = vmax.f32 %v1467_v42, %v1973_v43  ;;  %v3186_v25 = vpop.f32.mrb[165].mxu0  ;;  %v3341_v26 = vpop.f32.mrb[165].mxu1  ;;  %v5501_v27 = vld [vmem:[#allocation29_spill] sm:$0xff]  ;;  %v5502_v42 = vld [vmem:[#allocation30_spill] sm:$0xff] }
 0x228   :  { %v5503_v43 = vmax.f32 %v5501_v27, %v5502_v42 }
 0x229   :  { %v2287_v53 = vmax.f32 %v2238_v50, 0.0  ;;  %v2183_v22 = vmax.f32 %v5488_v57, %v2134_v51 }
 0x22a   :  { %v1472_v28 = vpop.f32.mrb[166].mxu0  ;;  %v1978_v49 = vpop.f32.mrb[166].mxu1 }
 0x22b   :  { %2337 = vst.msk [vmem:[%s5337_s6 + $0x100] sm:$0xff] %vm2304_vm2, %v2287_v53  ;;  %v2239_v52 = vadd.f32 %v4937_v5, %v2183_v22  ;;  %v2135_v59 = vmax.f32 %v1472_v28, %v1978_v49  ;;  %v3189_v41 = vpop.f32.mrb[167].mxu0  ;;  %v3344_v58 = vpop.f32.mrb[167].mxu1  ;;  %v5504_v22 = vld [vmem:[#allocation31_spill] sm:$0xff]  ;;  %v5505_v28 = vld [vmem:[#allocation32_spill] sm:$0xff] }
 0x22c   :  { %v5506_v49 = vmax.f32 %v5504_v22, %v5505_v28 }
 0x22d   :  { %v2288_v13 = vmax.f32 %v2239_v52, 0.0  ;;  %v2184_v38 = vmax.f32 %v5491_v23, %v2135_v59 }
 0x22e   :  { %v1477_v33 = vpop.f32.mrb[168].mxu0  ;;  %v1983_v2 = vpop.f32.mrb[168].mxu1 }
 0x22f   :  { %2338 = vst.msk [vmem:[%s5337_s6 + $0x108] sm:$0xff] %vm2304_vm2, %v2288_v13  ;;  %v2240_v14 = vadd.f32 %v4937_v5, %v2184_v38  ;;  %v2136_v15 = vmax.f32 %v1477_v33, %v1983_v2  ;;  %v3192_v7 = vpop.f32.mrb[169].mxu0  ;;  %v3347_v12 = vpop.f32.mrb[169].mxu1  ;;  %v5507_v38 = vld [vmem:[#allocation33_spill] sm:$0xff]  ;;  %v5508_v33 = vld [vmem:[#allocation34_spill] sm:$0xff] }
 0x230   :  { %v5509_v2 = vmax.f32 %v5507_v38, %v5508_v33 }
 0x231   :  { %v2289_v44 = vmax.f32 %v2240_v14, 0.0  ;;  %v2185_v60 = vmax.f32 %v5494_v21, %v2136_v15 }
 0x232   :  { %v1482_v61 = vpop.f32.mrb[170].mxu0  ;;  %v1988_v62 = vpop.f32.mrb[170].mxu1 }
 0x233   :  { %2339 = vst.msk [vmem:[%s5337_s6 + $0x110] sm:$0xff] %vm2304_vm2, %v2289_v44  ;;  %v2241_v36 = vadd.f32 %v4937_v5, %v2185_v60  ;;  %v2137_v37 = vmax.f32 %v1482_v61, %v1988_v62  ;;  %v3195_v6 = vpop.f32.mrb[171].mxu0  ;;  %v3350_v16 = vpop.f32.mrb[171].mxu1  ;;  %v5510_v60 = vld [vmem:[#allocation35_spill] sm:$0xff]  ;;  %v5511_v61 = vld [vmem:[#allocation36_spill] sm:$0xff] }
 0x234   :  { %v5512_v62 = vmax.f32 %v5510_v60, %v5511_v61 }
 0x235   :  { %v2290_v10 = vmax.f32 %v2241_v36, 0.0  ;;  %v2186_v40 = vmax.f32 %v5497_v39, %v2137_v37 }
 0x236   :  { %v1487_v55 = vpop.f32.mrb[172].mxu0  ;;  %v1993_v18 = vpop.f32.mrb[172].mxu1 }
 0x237   :  { %2340 = vst.msk [vmem:[%s5337_s6 + $0x118] sm:$0xff] %vm2304_vm2, %v2290_v10  ;;  %v2242_v0 = vadd.f32 %v4937_v5, %v2186_v40  ;;  %v2138_v1 = vmax.f32 %v1487_v55, %v1993_v18  ;;  %v3198_v19 = vpop.f32.mrb[173].mxu0  ;;  %v3353_v34 = vpop.f32.mrb[173].mxu1  ;;  %v5513_v40 = vld [vmem:[#allocation37_spill] sm:$0xff]  ;;  %v5514_v55 = vld [vmem:[#allocation38_spill] sm:$0xff] }
 0x238   :  { %v5515_v18 = vmax.f32 %v5513_v40, %v5514_v55 }
 0x239   :  { %v2291_v9 = vmax.f32 %v2242_v0, 0.0  ;;  %v2187_v8 = vmax.f32 %v5500_v30, %v2138_v1 }
 0x23a   :  { %v1492_v48 = vpop.f32.mrb[174].mxu0  ;;  %v1998_v35 = vpop.f32.mrb[174].mxu1 }
 0x23b   :  { %2341 = vst.msk [vmem:[%s5337_s6 + $0x120] sm:$0xff] %vm2304_vm2, %v2291_v9  ;;  %v2243_v45 = vadd.f32 %v4937_v5, %v2187_v8  ;;  %v2139_v46 = vmax.f32 %v1492_v48, %v1998_v35  ;;  %v3201_v47 = vpop.f32.mrb[175].mxu0  ;;  %v3356_v3 = vpop.f32.mrb[175].mxu1  ;;  %v5516_v8 = vld [vmem:[#allocation39_spill] sm:$0xff]  ;;  %v5517_v48 = vld [vmem:[#allocation40_spill] sm:$0xff] }
 0x23c   :  { %v5518_v35 = vmax.f32 %v5516_v8, %v5517_v48 }
 0x23d   :  { %v2292_v4 = vmax.f32 %v2243_v45, 0.0  ;;  %v2188_v50 = vmax.f32 %v5503_v43, %v2139_v46 }
 0x23e   :  { %v1497_v51 = vpop.f32.mrb[176].mxu0  ;;  %v2003_v25 = vpop.f32.mrb[176].mxu1 }
 0x23f   :  { %2342 = vst.msk [vmem:[%s5337_s6 + $0x128] sm:$0xff] %vm2304_vm2, %v2292_v4  ;;  %v2244_v26 = vadd.f32 %v4937_v5, %v2188_v50  ;;  %v2140_v53 = vmax.f32 %v1497_v51, %v2003_v25  ;;  %v3204_v54 = vpop.f32.mrb[177].mxu0  ;;  %v3359_v56 = vpop.f32.mrb[177].mxu1  ;;  %v5519_v50 = vld [vmem:[#allocation41_spill] sm:$0xff]  ;;  %v5520_v51 = vld [vmem:[#allocation42_spill] sm:$0xff] }
 0x240   :  { %v5521_v25 = vmax.f32 %v5519_v50, %v5520_v51 }
 0x241   :  { %v2293_v57 = vmax.f32 %v2244_v26, 0.0  ;;  %v2189_v52 = vmax.f32 %v5506_v49, %v2140_v53 }
 0x242   :  { %v1502_v59 = vpop.f32.mrb[178].mxu0  ;;  %v2008_v41 = vpop.f32.mrb[178].mxu1 }
 0x243   :  { %2343 = vst.msk [vmem:[%s5337_s6 + $0x130] sm:$0xff] %vm2304_vm2, %v2293_v57  ;;  %v2245_v58 = vadd.f32 %v4937_v5, %v2189_v52  ;;  %v2141_v13 = vmax.f32 %v1502_v59, %v2008_v41  ;;  %v3207_v11 = vpop.f32.mrb[179].mxu0  ;;  %v3362_v32 = vpop.f32.mrb[179].mxu1  ;;  %v5522_v52 = vld [vmem:[#allocation43_spill] sm:$0xff]  ;;  %v5523_v59 = vld [vmem:[#allocation44_spill] sm:$0xff] }
 0x244   :  { %v5524_v41 = vmax.f32 %v5522_v52, %v5523_v59 }
 0x245   :  { %v2294_v23 = vmax.f32 %v2245_v58, 0.0  ;;  %v2190_v14 = vmax.f32 %v5509_v2, %v2141_v13 }
 0x246   :  { %v1507_v15 = vpop.f32.mrb[180].mxu0  ;;  %v2013_v7 = vpop.f32.mrb[180].mxu1 }
 0x247   :  { %2344 = vst.msk [vmem:[%s5337_s6 + $0x138] sm:$0xff] %vm2304_vm2, %v2294_v23  ;;  %v2246_v12 = vadd.f32 %v4937_v5, %v2190_v14  ;;  %v2142_v44 = vmax.f32 %v1507_v15, %v2013_v7  ;;  %v3210_v24 = vpop.f32.mrb[181].mxu0  ;;  %v3365_v63 = vpop.f32.mrb[181].mxu1  ;;  %v5525_v14 = vld [vmem:[#allocation45_spill] sm:$0xff]  ;;  %v5526_v15 = vld [vmem:[#allocation46_spill] sm:$0xff] }
 0x248   :  { %v5527_v7 = vmax.f32 %v5525_v14, %v5526_v15 }
 0x249   :  { %v2295_v21 = vmax.f32 %v2246_v12, 0.0  ;;  %v2191_v36 = vmax.f32 %v5512_v62, %v2142_v44 }
 0x24a   :  { %v1512_v37 = vpop.f32.mrb[182].mxu0  ;;  %v2018_v6 = vpop.f32.mrb[182].mxu1 }
 0x24b   :  { %2345 = vst.msk [vmem:[%s5337_s6 + $0x140] sm:$0xff] %vm2304_vm2, %v2295_v21  ;;  %v2247_v16 = vadd.f32 %v4937_v5, %v2191_v36  ;;  %v2143_v10 = vmax.f32 %v1512_v37, %v2018_v6  ;;  %v3213_v31 = vpop.f32.mrb[183].mxu0  ;;  %v3368_v17 = vpop.f32.mrb[183].mxu1  ;;  %v5528_v36 = vld [vmem:[#allocation47_spill] sm:$0xff]  ;;  %v5529_v37 = vld [vmem:[#allocation48_spill] sm:$0xff] }
 0x24c   :  { %v5530_v6 = vmax.f32 %v5528_v36, %v5529_v37 }
 0x24d   :  { %v2296_v39 = vmax.f32 %v2247_v16, 0.0  ;;  %v2192_v0 = vmax.f32 %v5515_v18, %v2143_v10 }
 0x24e   :  { %v1517_v1 = vpop.f32.mrb[184].mxu0  ;;  %v2023_v19 = vpop.f32.mrb[184].mxu1 }
 0x24f   :  { %2346 = vst.msk [vmem:[%s5337_s6 + $0x148] sm:$0xff] %vm2304_vm2, %v2296_v39  ;;  %v2248_v34 = vadd.f32 %v4937_v5, %v2192_v0  ;;  %v2144_v9 = vmax.f32 %v1517_v1, %v2023_v19  ;;  %v3216_v20 = vpop.f32.mrb[185].mxu0  ;;  %v3371_v29 = vpop.f32.mrb[185].mxu1  ;;  %v5531_v0 = vld [vmem:[#allocation49_spill] sm:$0xff]  ;;  %v5532_v1 = vld [vmem:[#allocation50_spill] sm:$0xff] }
 0x250   :  { %v5533_v19 = vmax.f32 %v5531_v0, %v5532_v1 }
 0x251   :  { %v2297_v30 = vmax.f32 %v2248_v34, 0.0  ;;  %v2193_v45 = vmax.f32 %v5518_v35, %v2144_v9 }
 0x252   :  { %v1522_v46 = vpop.f32.mrb[186].mxu0  ;;  %v2028_v47 = vpop.f32.mrb[186].mxu1 }
 0x253   :  { %2347 = vst.msk [vmem:[%s5337_s6 + $0x150] sm:$0xff] %vm2304_vm2, %v2297_v30  ;;  %v2249_v3 = vadd.f32 %v4937_v5, %v2193_v45  ;;  %v2145_v4 = vmax.f32 %v1522_v46, %v2028_v47  ;;  %v3219_v27 = vpop.f32.mrb[187].mxu0  ;;  %v3374_v42 = vpop.f32.mrb[187].mxu1 }
 0x255   :  { %v2298_v43 = vmax.f32 %v2249_v3, 0.0  ;;  %v2194_v26 = vmax.f32 %v5521_v25, %v2145_v4 }
 0x256   :  { %v1527_v53 = vpop.f32.mrb[188].mxu0  ;;  %v2033_v54 = vpop.f32.mrb[188].mxu1 }
 0x257   :  { %2348 = vst.msk [vmem:[%s5337_s6 + $0x158] sm:$0xff] %vm2304_vm2, %v2298_v43  ;;  %v2250_v56 = vadd.f32 %v4937_v5, %v2194_v26  ;;  %v2146_v57 = vmax.f32 %v1527_v53, %v2033_v54  ;;  %v3222_v22 = vpop.f32.mrb[189].mxu0  ;;  %v3377_v28 = vpop.f32.mrb[189].mxu1 }
 0x259   :  { %v2299_v49 = vmax.f32 %v2250_v56, 0.0  ;;  %v2195_v58 = vmax.f32 %v5524_v41, %v2146_v57 }
 0x25a   :  { %v1532_v13 = vpop.f32.mrb[190].mxu0  ;;  %v2038_v11 = vpop.f32.mrb[190].mxu1 }
 0x25b   :  { %2349 = vst.msk [vmem:[%s5337_s6 + $0x160] sm:$0xff] %vm2304_vm2, %v2299_v49  ;;  %v2251_v32 = vadd.f32 %v4937_v5, %v2195_v58  ;;  %v2147_v23 = vmax.f32 %v1532_v13, %v2038_v11  ;;  %v3225_v38 = vpop.f32.mrb[191].mxu0  ;;  %v3380_v33 = vpop.f32.mrb[191].mxu1 }
 0x25d   :  { %v2300_v2 = vmax.f32 %v2251_v32, 0.0  ;;  %v2196_v12 = vmax.f32 %v5527_v7, %v2147_v23 }
 0x25e   :  { %v1537_v44 = vpop.f32.mrb[192].mxu0  ;;  %v2043_v24 = vpop.f32.mrb[192].mxu1 }
 0x25f   :  { %2350 = vst.msk [vmem:[%s5337_s6 + $0x168] sm:$0xff] %vm2304_vm2, %v2300_v2  ;;  %v2252_v63 = vadd.f32 %v4937_v5, %v2196_v12  ;;  %v2148_v21 = vmax.f32 %v1537_v44, %v2043_v24  ;;  %v3228_v60 = vpop.f32.mrb[193].mxu0  ;;  %v3383_v61 = vpop.f32.mrb[193].mxu1 }
 0x261   :  { %v2301_v62 = vmax.f32 %v2252_v63, 0.0  ;;  %v2197_v16 = vmax.f32 %v5530_v6, %v2148_v21 }
 0x262   :  { %v1542_v10 = vpop.f32.mrb[194].mxu0  ;;  %v2048_v31 = vpop.f32.mrb[194].mxu1 }
 0x263   :  { %2351 = vst.msk [vmem:[%s5337_s6 + $0x170] sm:$0xff] %vm2304_vm2, %v2301_v62  ;;  %v2253_v17 = vadd.f32 %v4937_v5, %v2197_v16  ;;  %v2149_v39 = vmax.f32 %v1542_v10, %v2048_v31  ;;  %v3231_v40 = vpop.f32.mrb[195].mxu0  ;;  %v3386_v55 = vpop.f32.mrb[195].mxu1 }
 0x265   :  { %v2302_v18 = vmax.f32 %v2253_v17, 0.0  ;;  %v2198_v34 = vmax.f32 %v5533_v19, %v2149_v39 }
 0x267   :  { %2352 = vst.msk [vmem:[%s5337_s6 + $0x178] sm:$0xff] %vm2304_vm2, %v2302_v18  ;;  %v2254_v9 = vadd.f32 %v4937_v5, %v2198_v34 }
 0x269   :  { %v2303_v20 = vmax.f32 %v2254_v9, 0.0 }
 0x26b   :  { %2353 = vst.msk [vmem:[%s5337_s6 + $0x180] sm:$0xff] %vm2304_vm2, %v2303_v20 }

// kernel: cnn_forward.4
= control target key start
LH: loop header
LB: loop body
LE: loop exit
PB: predicated region body
PF: predicated region fallthrough
CT: control target
= control target key end

     0   :  { %v2143_v0 = vmov 0.0|0.0   ;;  %vm125_vm0 = vcmask 130048   ;;  %vm1550_vm1 = vcmask 261120   ;;  %vm1563_vm2 = vcmask 254976   ;;  %s3416_s4 = inlined_call_operand.vmem [shape: f32[400,32], index: 4, kind: input, shape index: {}]   ;;  %s3417_s0 = inlined_call_operand.vmem [shape: f32[98,400], index: 0, kind: input, shape index: {}]   ;;  %s3418_s1 = inlined_call_operand.vmem [shape: f32[98,400], index: 1, kind: input, shape index: {}]   ;;  %s3419_s2 = inlined_call_operand.vmem [shape: f32[98,400], index: 2, kind: input, shape index: {}]   ;;  %s3420_s3 = inlined_call_operand.vmem [shape: f32[98,400], index: 3, kind: input, shape index: {}]   ;;  %s3421_s5 = inlined_call_operand.vmem [shape: f32[1,32], index: 5, kind: input, shape index: {}]   ;;  %s3422_s6 = inlined_call_operand.vmem [shape: f32[98,32], index: 6, kind: output, shape index: {}]  }
   0x1   :  { %1938 = vmatprep.subr.bf16.mxu1 %v2143_v0  ;;  %v39_v1 = vld [vmem:[%s3416_s4 + $0x80] sm:$0xff]  ;;  %v40_v2 = vld [vmem:[%s3416_s4 + $0x88] sm:$0xff]  ;;  %v41_v10 = vld [vmem:[%s3416_s4 + $0x90] sm:$0xff] }
   0x2   :  { %v55_v3 = vld [vmem:[%s3416_s4 + $0x100] sm:$0xff]  ;;  %v2189_v4 = vpack.c.bf16 %v40_v2, %v39_v1  ;;  %v56_v5 = vld [vmem:[%s3416_s4 + $0x108] sm:$0xff]  ;;  %v42_v11 = vld [vmem:[%s3416_s4 + $0x98] sm:$0xff] }
   0x3   :  { %v23_v6 = vld [vmem:[%s3416_s4] sm:$0xff]  ;;  %v24_v7 = vld [vmem:[%s3416_s4 + $0x8] sm:$0xff]  ;;  %v2200_v8 = vpack.c.bf16 %v56_v5, %v55_v3  ;;  %v57_v12 = vld [vmem:[%s3416_s4 + $0x110] sm:$0xff]  ;;  %v2214_v13 = vpack.c.bf16 %v42_v11, %v41_v10 }
   0x4   :  { %v2202_v9 = vpack.c.bf16 %v24_v7, %v23_v6  ;;  %1907 = vmatprep.subr.bf16.mxu0 %v2189_v4  ;;  %v58_v14 = vld [vmem:[%s3416_s4 + $0x118] sm:$0xff]  ;;  %v25_v15 = vld [vmem:[%s3416_s4 + $0x10] sm:$0xff]  ;;  %v43_v19 = vld [vmem:[%s3416_s4 + $0xa0] sm:$0xff] }
   0x5   :  { %v26_v16 = vld [vmem:[%s3416_s4 + $0x18] sm:$0xff]  ;;  %1940 = vmatpush1.bf16.msra.mxu1 %v2200_v8  ;;  %v2227_v17 = vpack.c.bf16 %v58_v14, %v57_v12  ;;  %v44_v20 = vld [vmem:[%s3416_s4 + $0xa8] sm:$0xff]  ;;  %v59_v21 = vld [vmem:[%s3416_s4 + $0x120] sm:$0xff] }
   0x6   :  { %1909 = vmatpush3.bf16.msra.mxu0 %v2202_v9  ;;  %v2229_v18 = vpack.c.bf16 %v26_v16, %v25_v15  ;;  %1941 = vmatprep.subr.bf16.mxu1 %v2143_v0  ;;  %v2242_v22 = vpack.c.bf16 %v44_v20, %v43_v19  ;;  %v60_v23 = vld [vmem:[%s3416_s4 + $0x128] sm:$0xff]  ;;  %v27_v24 = vld [vmem:[%s3416_s4 + $0x20] sm:$0xff]  ;;  %v45_v26 = vld [vmem:[%s3416_s4 + $0xb0] sm:$0xff] }
   0x7   :  { %1911 = vmatprep.subr.bf16.mxu0 %v2214_v13  ;;  %v28_v25 = vld [vmem:[%s3416_s4 + $0x28] sm:$0xff]  ;;  %v46_v27 = vld [vmem:[%s3416_s4 + $0xb8] sm:$0xff]  ;;  %v2261_v28 = vpack.c.bf16 %v60_v23, %v59_v21  ;;  %v61_v30 = vld [vmem:[%s3416_s4 + $0x130] sm:$0xff] }
   0x8   :  { %v2263_v29 = vpack.c.bf16 %v28_v25, %v27_v24  ;;  %v2270_v31 = vpack.c.bf16 %v46_v27, %v45_v26  ;;  %v62_v32 = vld [vmem:[%s3416_s4 + $0x138] sm:$0xff]  ;;  %v29_v33 = vld [vmem:[%s3416_s4 + $0x30] sm:$0xff]  ;;  %v47_v35 = vld [vmem:[%s3416_s4 + $0xc0] sm:$0xff] }
   0x9   :  { %1943 = vmatpush1.bf16.msra.mxu1 %v2227_v17  ;;  %v30_v34 = vld [vmem:[%s3416_s4 + $0x38] sm:$0xff]  ;;  %v48_v36 = vld [vmem:[%s3416_s4 + $0xc8] sm:$0xff]  ;;  %v2289_v37 = vpack.c.bf16 %v62_v32, %v61_v30  ;;  %v63_v39 = vld [vmem:[%s3416_s4 + $0x140] sm:$0xff] }
   0xa   :  { %1913 = vmatpush3.bf16.msra.mxu0 %v2229_v18  ;;  %1944 = vmatprep.subr.bf16.mxu1 %v2143_v0  ;;  %v2291_v38 = vpack.c.bf16 %v30_v34, %v29_v33  ;;  %v2298_v40 = vpack.c.bf16 %v48_v36, %v47_v35  ;;  %v64_v41 = vld [vmem:[%s3416_s4 + $0x148] sm:$0xff]  ;;  %v31_v42 = vld [vmem:[%s3416_s4 + $0x40] sm:$0xff]  ;;  %v49_v44 = vld [vmem:[%s3416_s4 + $0xd0] sm:$0xff] }
   0xb   :  { %1915 = vmatprep.subr.bf16.mxu0 %v2242_v22  ;;  %v32_v43 = vld [vmem:[%s3416_s4 + $0x48] sm:$0xff]  ;;  %v50_v45 = vld [vmem:[%s3416_s4 + $0xd8] sm:$0xff]  ;;  %v2317_v46 = vpack.c.bf16 %v64_v41, %v63_v39  ;;  %v65_v48 = vld [vmem:[%s3416_s4 + $0x150] sm:$0xff] }
   0xc   :  { %v2319_v47 = vpack.c.bf16 %v32_v43, %v31_v42  ;;  %v66_v49 = vld [vmem:[%s3416_s4 + $0x158] sm:$0xff]  ;;  %v74_v50 = vld [vmem:[%s3417_s0 + $0x8] sm:$0xff]  ;;  %v2332_v51 = vpack.c.bf16 %v50_v45, %v49_v44  ;;  %v33_v52 = vld [vmem:[%s3416_s4 + $0x50] sm:$0xff] }
   0xd   :  { %1946 = vmatpush1.bf16.msra.mxu1 %v2261_v28  ;;  %v34_v53 = vld [vmem:[%s3416_s4 + $0x58] sm:$0xff]  ;;  %v51_v55 = vld [vmem:[%s3416_s4 + $0xe0] sm:$0xff]  ;;  %v52_v56 = vld [vmem:[%s3416_s4 + $0xe8] sm:$0xff]  ;;  %229 = vmatprep.mubr.f32.mxu0 %v74_v50  ;;  %v2352_v57 = vpack.c.bf16 %v66_v49, %v65_v48 }
   0xe   :  { %1917 = vmatpush3.bf16.msra.mxu0 %v2263_v29  ;;  %1947 = vmatprep.subr.bf16.mxu1 %v2143_v0  ;;  %v76_v54 = vld [vmem:[%s3417_s0 + $0x18] sm:$0xff]  ;;  %v2354_v58 = vpack.c.bf16 %v34_v53, %v33_v52  ;;  %v67_v59 = vld [vmem:[%s3416_s4 + $0x160] sm:$0xff]  ;;  %v2361_v60 = vpack.c.bf16 %v52_v56, %v51_v55  ;;  %v68_v61 = vld [vmem:[%s3416_s4 + $0x168] sm:$0xff] }
   0xf   :  { %1919 = vmatprep.subr.bf16.mxu0 %v2270_v31  ;;  %1569 = vmatprep.mubr.msk.f32.mxu1 %vm125_vm0, %v76_v54  ;;  %v35_v62 = vld [vmem:[%s3416_s4 + $0x60] sm:$0xff]  ;;  %v36_v63 = vld [vmem:[%s3416_s4 + $0x68] sm:$0xff]  ;;  %v53_v1 = vld [vmem:[%s3416_s4 + $0xf0] sm:$0xff]  ;;  %v2380_v3 = vpack.c.bf16 %v68_v61, %v67_v59 }
  0x10   :  { %v54_v2 = vld [vmem:[%s3416_s4 + $0xf8] sm:$0xff]  ;;  %v2382_v5 = vpack.c.bf16 %v36_v63, %v35_v62  ;;  %v69_v6 = vld [vmem:[%s3416_s4 + $0x170] sm:$0xff]  ;;  %v71_v16 = vld [vmem:[%s3416_s4 + $0x180] sm:$0xff] }
  0x11   :  { %1949 = vmatpush1.bf16.msra.mxu1 %v2289_v37  ;;  %v2389_v7 = vpack.c.bf16 %v54_v2, %v53_v1  ;;  %v70_v10 = vld [vmem:[%s3416_s4 + $0x178] sm:$0xff]  ;;  %v37_v11 = vld [vmem:[%s3416_s4 + $0x70] sm:$0xff]  ;;  %v72_v19 = vld [vmem:[%s3416_s4 + $0x188] sm:$0xff] }
  0x12   :  { %1921 = vmatpush3.bf16.msra.mxu0 %v2291_v38  ;;  %1950 = vmatprep.subr.bf16.mxu1 %v2143_v0  ;;  %v38_v12 = vld [vmem:[%s3416_s4 + $0x78] sm:$0xff]  ;;  %v2402_v14 = vpack.c.bf16 %v70_v10, %v69_v6  ;;  %v73_v20 = vld [vmem:[%s3417_s0] sm:$0xff]  ;;  %v2419_v21 = vpack.c.bf16 %v72_v19, %v71_v16  ;;  %v78_v23 = vld [vmem:[%s3417_s0 + $0x28] sm:$0xff] }
  0x13   :  { %1923 = vmatprep.subr.bf16.mxu0 %v2298_v40  ;;  %v2404_v15 = vpack.c.bf16 %v38_v12, %v37_v11  ;;  %v75_v24 = vld [vmem:[%s3417_s0 + $0x10] sm:$0xff]  ;;  %v77_v25 = vld [vmem:[%s3417_s0 + $0x20] sm:$0xff]  ;;  %v80_v26 = vld [vmem:[%s3417_s0 + $0x38] sm:$0xff] }
  0x14   :  { %v82_v27 = vld [vmem:[%s3417_s0 + $0x48] sm:$0xff]  ;;  %v79_v30 = vld [vmem:[%s3417_s0 + $0x30] sm:$0xff]  ;;  %v81_v32 = vld [vmem:[%s3417_s0 + $0x40] sm:$0xff] }
  0x15   :  { %1952 = vmatpush1.bf16.msra.mxu1 %v2317_v46  ;;  %v84_v33 = vld [vmem:[%s3417_s0 + $0x58] sm:$0xff]  ;;  %v86_v34 = vld [vmem:[%s3417_s0 + $0x68] sm:$0xff]  ;;  %v83_v35 = vld [vmem:[%s3417_s0 + $0x50] sm:$0xff] }
  0x16   :  { %1925 = vmatpush3.bf16.msra.mxu0 %v2319_v47  ;;  %1953 = vmatprep.subr.bf16.mxu1 %v2143_v0  ;;  %v85_v36 = vld [vmem:[%s3417_s0 + $0x60] sm:$0xff]  ;;  %v88_v39 = vld [vmem:[%s3417_s0 + $0x78] sm:$0xff]  ;;  %v90_v41 = vld [vmem:[%s3417_s0 + $0x88] sm:$0xff] }
  0x17   :  { %1927 = vmatprep.subr.bf16.mxu0 %v2332_v51  ;;  %v87_v42 = vld [vmem:[%s3417_s0 + $0x70] sm:$0xff]  ;;  %v89_v43 = vld [vmem:[%s3417_s0 + $0x80] sm:$0xff]  ;;  %v92_v44 = vld [vmem:[%s3417_s0 + $0x98] sm:$0xff] }
  0x18   :  { %v94_v45 = vld [vmem:[%s3417_s0 + $0xa8] sm:$0xff]  ;;  %v91_v48 = vld [vmem:[%s3417_s0 + $0x90] sm:$0xff]  ;;  %v93_v49 = vld [vmem:[%s3417_s0 + $0xa0] sm:$0xff] }
  0x19   :  { %1955 = vmatpush1.bf16.msra.mxu1 %v2352_v57  ;;  %v96_v50 = vld [vmem:[%s3417_s0 + $0xb8] sm:$0xff]  ;;  %v98_v52 = vld [vmem:[%s3417_s0 + $0xc8] sm:$0xff]  ;;  %v95_v53 = vld [vmem:[%s3417_s0 + $0xb0] sm:$0xff] }
  0x1a   :  { %1929 = vmatpush3.bf16.msra.mxu0 %v2354_v58  ;;  %1956 = vmatprep.subr.bf16.mxu1 %v2143_v0  ;;  %v97_v54 = vld [vmem:[%s3417_s0 + $0xc0] sm:$0xff]  ;;  %v100_v55 = vld [vmem:[%s3417_s0 + $0xd8] sm:$0xff]  ;;  %v102_v56 = vld [vmem:[%s3417_s0 + $0xe8] sm:$0xff] }
  0x1b   :  { %1931 = vmatprep.subr.bf16.mxu0 %v2361_v60  ;;  %v99_v59 = vld [vmem:[%s3417_s0 + $0xd0] sm:$0xff]  ;;  %v101_v61 = vld [vmem:[%s3417_s0 + $0xe0] sm:$0xff]  ;;  %v104_v62 = vld [vmem:[%s3417_s0 + $0xf8] sm:$0xff] }
  0x1c   :  { %v106_v63 = vld [vmem:[%s3417_s0 + $0x108] sm:$0xff]  ;;  %v103_v1 = vld [vmem:[%s3417_s0 + $0xf0] sm:$0xff]  ;;  %v105_v2 = vld [vmem:[%s3417_s0 + $0x100] sm:$0xff] }
  0x1d   :  { %1958 = vmatpush1.bf16.msra.mxu1 %v2380_v3  ;;  %v108_v6 = vld [vmem:[%s3417_s0 + $0x118] sm:$0xff]  ;;  %v110_v10 = vld [vmem:[%s3417_s0 + $0x128] sm:$0xff]  ;;  %v107_v11 = vld [vmem:[%s3417_s0 + $0x110] sm:$0xff] }
  0x1e   :  { %1933 = vmatpush3.bf16.msra.mxu0 %v2382_v5  ;;  %1959 = vmatprep.subr.bf16.mxu1 %v2143_v0  ;;  %v109_v12 = vld [vmem:[%s3417_s0 + $0x120] sm:$0xff]  ;;  %v112_v16 = vld [vmem:[%s3417_s0 + $0x138] sm:$0xff]  ;;  %v114_v19 = vld [vmem:[%s3417_s0 + $0x148] sm:$0xff] }
  0x1f   :  { %1935 = vmatprep.subr.bf16.mxu0 %v2389_v7 }
  0x21   :  { %1961 = vmatpush1.bf16.msra.mxu1 %v2402_v14 }
  0x22   :  { %1937 = vmatpush3.bf16.msra.mxu0 %v2404_v15  ;;  %1962 = vmatprep.subr.bf16.mxu1 %v2143_v0 }
  0x23   :  { %1966 = vmatprep.subr.bf16.mxu0 %v2189_v4 }
  0x25   :  { %230 = vmatmul.mubr.f32.vlgmr.msra.gmra.mrb[0].mxu0 %v73_v20  ;;  %1964 = vmatpush1.bf16.msra.mxu1 %v2419_v21  ;;  %v111_v20 = vld [vmem:[%s3417_s0 + $0x130] sm:$0xff] }
  0x26   :  { %1968 = vmatpush3.bf16.msra.mxu0 %v2202_v9  ;;  %234 = vmatprep.mubr.f32.mxu0 %v78_v23  ;;  %v113_v23 = vld [vmem:[%s3417_s0 + $0x140] sm:$0xff] }
  0x27   :  { %1997 = vmatprep.subr.bf16.mxu1 %v2143_v0  ;;  %1970 = vmatprep.subr.bf16.mxu0 %v2214_v13 }
  0x28   :  { %360 = vmatmul.mubr.f32.vlgmr.msra.gmra.mrb[0].mxu1 %v75_v24  ;;  %v116_v24 = vld [vmem:[%s3417_s0 + $0x158] sm:$0xff] }
  0x29   :  { %235 = vmatmul.mubr.f32.gmra.mrb[2].mxu0 %v77_v25  ;;  %1999 = vmatpush1.bf16.msra.mxu1 %v2200_v8  ;;  %v118_v25 = vld [vmem:[%s3417_s0 + $0x168] sm:$0xff] }
  0x2a   :  { %1570 = vmatprep.mubr.msk.f32.mxu1 %vm125_vm0, %v80_v26  ;;  %239 = vmatprep.mubr.f32.mxu0 %v82_v27  ;;  %v115_v26 = vld [vmem:[%s3417_s0 + $0x150] sm:$0xff]  ;;  %v117_v27 = vld [vmem:[%s3417_s0 + $0x160] sm:$0xff] }
  0x2b   :  { %1972 = vmatpush3.bf16.msra.mxu0 %v2229_v18  ;;  %2000 = vmatprep.subr.bf16.mxu1 %v2143_v0 }
  0x2c   :  { %1974 = vmatprep.subr.bf16.mxu0 %v2242_v22  ;;  %365 = vmatmul.mubr.f32.gmra.mrb[2].mxu1 %v79_v30  ;;  %v120_v30 = vld [vmem:[%s3417_s0 + $0x178] sm:$0xff] }
  0x2d   :  { %240 = vmatmul.mubr.f32.gmra.mrb[4].mxu0 %v81_v32  ;;  %1571 = vmatprep.mubr.msk.f32.mxu1 %vm125_vm0, %v84_v33  ;;  %v122_v32 = vld [vmem:[%s3417_s0 + $0x188] sm:$0x3]  ;;  %v119_v33 = vld [vmem:[%s3417_s0 + $0x170] sm:$0xff] }
  0x2e   :  { %2002 = vmatpush1.bf16.msra.mxu1 %v2227_v17  ;;  %244 = vmatprep.mubr.f32.mxu0 %v86_v34  ;;  %v121_v34 = vld [vmem:[%s3417_s0 + $0x180] sm:$0x3] }
  0x2f   :  { %1976 = vmatpush3.bf16.msra.mxu0 %v2263_v29  ;;  %2003 = vmatprep.subr.bf16.mxu1 %v2143_v0 }
  0x30   :  { %1978 = vmatprep.subr.bf16.mxu0 %v2270_v31  ;;  %370 = vmatmul.mubr.f32.gmra.mrb[4].mxu1 %v83_v35  ;;  %v124_v35 = vld [vmem:[%s3417_s0 + $0x198] sm:$0x3] }
  0x31   :  { %245 = vmatmul.mubr.f32.gmra.mrb[6].mxu0 %v85_v36  ;;  %1572 = vmatprep.mubr.msk.f32.mxu1 %vm125_vm0, %v88_v39  ;;  %v426_v36 = vld [vmem:[%s3418_s1 + $0x8] sm:$0xff]  ;;  %v123_v39 = vld [vmem:[%s3417_s0 + $0x190] sm:$0x3] }
  0x32   :  { %249 = vmatprep.mubr.f32.mxu0 %v90_v41  ;;  %2005 = vmatpush1.bf16.msra.mxu1 %v2261_v28  ;;  %v425_v41 = vld [vmem:[%s3418_s1] sm:$0xff] }
  0x33   :  { %1980 = vmatpush3.bf16.msra.mxu0 %v2291_v38  ;;  %2006 = vmatprep.subr.bf16.mxu1 %v2143_v0 }
  0x34   :  { %1982 = vmatprep.subr.bf16.mxu0 %v2298_v40  ;;  %375 = vmatmul.mubr.f32.gmra.mrb[6].mxu1 %v87_v42  ;;  %v428_v42 = vld [vmem:[%s3418_s1 + $0x18] sm:$0xff] }
  0x35   :  { %250 = vmatmul.mubr.f32.gmra.mrb[8].mxu0 %v89_v43  ;;  %1573 = vmatprep.mubr.msk.f32.mxu1 %vm125_vm0, %v92_v44  ;;  %v430_v43 = vld [vmem:[%s3418_s1 + $0x28] sm:$0xff]  ;;  %v427_v44 = vld [vmem:[%s3418_s1 + $0x10] sm:$0xff] }
  0x36   :  { %254 = vmatprep.mubr.f32.mxu0 %v94_v45  ;;  %2008 = vmatpush1.bf16.msra.mxu1 %v2289_v37  ;;  %v429_v45 = vld [vmem:[%s3418_s1 + $0x20] sm:$0xff] }
  0x37   :  { %1984 = vmatpush3.bf16.msra.mxu0 %v2319_v47  ;;  %2009 = vmatprep.subr.bf16.mxu1 %v2143_v0 }
  0x38   :  { %1986 = vmatprep.subr.bf16.mxu0 %v2332_v51  ;;  %380 = vmatmul.mubr.f32.gmra.mrb[8].mxu1 %v91_v48  ;;  %v432_v48 = vld [vmem:[%s3418_s1 + $0x38] sm:$0xff] }
  0x39   :  { %255 = vmatmul.mubr.f32.gmra.mrb[10].mxu0 %v93_v49  ;;  %1574 = vmatprep.mubr.msk.f32.mxu1 %vm125_vm0, %v96_v50  ;;  %v434_v49 = vld [vmem:[%s3418_s1 + $0x48] sm:$0xff]  ;;  %v431_v50 = vld [vmem:[%s3418_s1 + $0x30] sm:$0xff] }
  0x3a   :  { %259 = vmatprep.mubr.f32.mxu0 %v98_v52  ;;  %2011 = vmatpush1.bf16.msra.mxu1 %v2317_v46  ;;  %v433_v52 = vld [vmem:[%s3418_s1 + $0x40] sm:$0xff] }
  0x3b   :  { %1988 = vmatpush3.bf16.msra.mxu0 %v2354_v58  ;;  %2012 = vmatprep.subr.bf16.mxu1 %v2143_v0 }
  0x3c   :  { %1990 = vmatprep.subr.bf16.mxu0 %v2361_v60  ;;  %385 = vmatmul.mubr.f32.gmra.mrb[10].mxu1 %v95_v53  ;;  %v436_v53 = vld [vmem:[%s3418_s1 + $0x58] sm:$0xff] }
  0x3d   :  { %260 = vmatmul.mubr.f32.gmra.mrb[12].mxu0 %v97_v54  ;;  %1575 = vmatprep.mubr.msk.f32.mxu1 %vm125_vm0, %v100_v55  ;;  %v438_v54 = vld [vmem:[%s3418_s1 + $0x68] sm:$0xff]  ;;  %v435_v55 = vld [vmem:[%s3418_s1 + $0x50] sm:$0xff] }
  0x3e   :  { %264 = vmatprep.mubr.f32.mxu0 %v102_v56  ;;  %2014 = vmatpush1.bf16.msra.mxu1 %v2352_v57  ;;  %v437_v56 = vld [vmem:[%s3418_s1 + $0x60] sm:$0xff] }
  0x3f   :  { %1992 = vmatpush3.bf16.msra.mxu0 %v2382_v5  ;;  %2015 = vmatprep.subr.bf16.mxu1 %v2143_v0 }
  0x40   :  { %1994 = vmatprep.subr.bf16.mxu0 %v2389_v7  ;;  %390 = vmatmul.mubr.f32.gmra.mrb[12].mxu1 %v99_v59  ;;  %v440_v59 = vld [vmem:[%s3418_s1 + $0x78] sm:$0xff] }
  0x41   :  { %265 = vmatmul.mubr.f32.gmra.mrb[14].mxu0 %v101_v61  ;;  %1576 = vmatprep.mubr.msk.f32.mxu1 %vm125_vm0, %v104_v62  ;;  %v442_v61 = vld [vmem:[%s3418_s1 + $0x88] sm:$0xff]  ;;  %v439_v62 = vld [vmem:[%s3418_s1 + $0x70] sm:$0xff] }
  0x42   :  { %269 = vmatprep.mubr.f32.mxu0 %v106_v63  ;;  %2017 = vmatpush1.bf16.msra.mxu1 %v2380_v3  ;;  %v441_v63 = vld [vmem:[%s3418_s1 + $0x80] sm:$0xff] }
  0x43   :  { %1996 = vmatpush3.bf16.msra.mxu0 %v2404_v15  ;;  %2018 = vmatprep.subr.bf16.mxu1 %v2143_v0 }
  0x44   :  { %2025 = vmatprep.subr.bf16.mxu0 %v2189_v4  ;;  %395 = vmatmul.mubr.f32.gmra.mrb[14].mxu1 %v103_v1  ;;  %v444_v1 = vld [vmem:[%s3418_s1 + $0x98] sm:$0xff] }
  0x45   :  { %270 = vmatmul.mubr.f32.gmra.mrb[16].mxu0 %v105_v2  ;;  %1577 = vmatprep.mubr.msk.f32.mxu1 %vm125_vm0, %v108_v6  ;;  %v446_v2 = vld [vmem:[%s3418_s1 + $0xa8] sm:$0xff]  ;;  %v443_v6 = vld [vmem:[%s3418_s1 + $0x90] sm:$0xff] }
  0x46   :  { %274 = vmatprep.mubr.f32.mxu0 %v110_v10  ;;  %2020 = vmatpush1.bf16.msra.mxu1 %v2402_v14  ;;  %v445_v10 = vld [vmem:[%s3418_s1 + $0xa0] sm:$0xff] }
  0x47   :  { %2021 = vmatprep.subr.bf16.mxu1 %v2143_v0 }
  0x48   :  { %400 = vmatmul.mubr.f32.gmra.mrb[16].mxu1 %v107_v11  ;;  %v448_v11 = vld [vmem:[%s3418_s1 + $0xb8] sm:$0xff] }
  0x49   :  { %275 = vmatmul.mubr.f32.gmra.mrb[18].mxu0 %v109_v12  ;;  %1578 = vmatprep.mubr.msk.f32.mxu1 %vm125_vm0, %v112_v16  ;;  %v450_v12 = vld [vmem:[%s3418_s1 + $0xc8] sm:$0xff]  ;;  %v447_v16 = vld [vmem:[%s3418_s1 + $0xb0] sm:$0xff] }
  0x4a   :  { %279 = vmatprep.mubr.f32.mxu0 %v114_v19  ;;  %2023 = vmatpush1.bf16.msra.mxu1 %v2419_v21  ;;  %v449_v19 = vld [vmem:[%s3418_s1 + $0xc0] sm:$0xff] }
  0x4b   :  { %2056 = vmatprep.subr.bf16.mxu1 %v2143_v0 }
  0x4c   :  { %405 = vmatmul.mubr.f32.gmra.mrb[18].mxu1 %v111_v20  ;;  %v452_v20 = vld [vmem:[%s3418_s1 + $0xd8] sm:$0xff] }
  0x4d   :  { %280 = vmatmul.mubr.f32.gmra.mrb[20].mxu0 %v113_v23  ;;  %1579 = vmatprep.mubr.msk.f32.mxu1 %vm125_vm0, %v116_v24  ;;  %v454_v23 = vld [vmem:[%s3418_s1 + $0xe8] sm:$0xff]  ;;  %v451_v24 = vld [vmem:[%s3418_s1 + $0xd0] sm:$0xff] }
  0x4e   :  { %284 = vmatprep.mubr.f32.mxu0 %v118_v25  ;;  %v453_v25 = vld [vmem:[%s3418_s1 + $0xe0] sm:$0xff] }
  0x50   :  { %410 = vmatmul.mubr.f32.gmra.mrb[20].mxu1 %v115_v26  ;;  %v456_v26 = vld [vmem:[%s3418_s1 + $0xf8] sm:$0xff] }
  0x51   :  { %285 = vmatmul.mubr.f32.gmra.mrb[22].mxu0 %v117_v27  ;;  %1580 = vmatprep.mubr.msk.f32.mxu1 %vm125_vm0, %v120_v30  ;;  %v458_v27 = vld [vmem:[%s3418_s1 + $0x108] sm:$0xff]  ;;  %v455_v30 = vld [vmem:[%s3418_s1 + $0xf0] sm:$0xff] }
  0x52   :  { %289 = vmatprep.mubr.f32.mxu0 %v122_v32  ;;  %v457_v32 = vld [vmem:[%s3418_s1 + $0x100] sm:$0xff] }
  0x54   :  { %415 = vmatmul.mubr.f32.gmra.mrb[22].mxu1 %v119_v33  ;;  %v460_v33 = vld [vmem:[%s3418_s1 + $0x118] sm:$0xff] }
  0x55   :  { %290 = vmatmul.mubr.f32.gmra.mrb[24].mxu0 %v121_v34  ;;  %1581 = vmatprep.mubr.msk.f32.mxu1 %vm125_vm0, %v124_v35  ;;  %v462_v34 = vld [vmem:[%s3418_s1 + $0x128] sm:$0xff]  ;;  %v459_v35 = vld [vmem:[%s3418_s1 + $0x110] sm:$0xff] }
  0x56   :  { %580 = vmatprep.mubr.f32.mxu0 %v426_v36  ;;  %v461_v36 = vld [vmem:[%s3418_s1 + $0x120] sm:$0xff] }
  0x58   :  { %420 = vmatmul.mubr.f32.gmra.mrb[24].mxu1 %v123_v39  ;;  %v464_v39 = vld [vmem:[%s3418_s1 + $0x138] sm:$0xff] }
  0x59   :  { %581 = vmatmul.mubr.f32.vlgmr.msra.gmra.mrb[26].mxu0 %v425_v41  ;;  %1582 = vmatprep.mubr.msk.f32.mxu1 %vm125_vm0, %v428_v42  ;;  %v463_v41 = vld [vmem:[%s3418_s1 + $0x130] sm:$0xff]  ;;  %v465_v42 = vld [vmem:[%s3418_s1 + $0x140] sm:$0xff] }
  0x5a   :  { %2027 = vmatpush3.bf16.msra.mxu0 %v2202_v9  ;;  %585 = vmatprep.mubr.f32.mxu0 %v430_v43  ;;  %v468_v43 = vld [vmem:[%s3418_s1 + $0x158] sm:$0xff] }
  0x5b   :  { %2029 = vmatprep.subr.bf16.mxu0 %v2214_v13 }
  0x5c   :  { %711 = vmatmul.mubr.f32.vlgmr.msra.gmra.mrb[26].mxu1 %v427_v44  ;;  %v470_v44 = vld [vmem:[%s3418_s1 + $0x168] sm:$0xff] }
  0x5d   :  { %586 = vmatmul.mubr.f32.gmra.mrb[28].mxu0 %v429_v45  ;;  %2058 = vmatpush1.bf16.msra.mxu1 %v2200_v8  ;;  %v467_v45 = vld [vmem:[%s3418_s1 + $0x150] sm:$0xff] }
  0x5e   :  { %1583 = vmatprep.mubr.msk.f32.mxu1 %vm125_vm0, %v432_v48  ;;  %590 = vmatprep.mubr.f32.mxu0 %v434_v49  ;;  %v469_v48 = vld [vmem:[%s3418_s1 + $0x160] sm:$0xff]  ;;  %v472_v49 = vld [vmem:[%s3418_s1 + $0x178] sm:$0xff] }
  0x5f   :  { %2031 = vmatpush3.bf16.msra.mxu0 %v2229_v18  ;;  %2059 = vmatprep.subr.bf16.mxu1 %v2143_v0 }
  0x60   :  { %2033 = vmatprep.subr.bf16.mxu0 %v2242_v22  ;;  %716 = vmatmul.mubr.f32.gmra.mrb[28].mxu1 %v431_v50  ;;  %v474_v50 = vld [vmem:[%s3418_s1 + $0x188] sm:$0x3] }
  0x61   :  { %591 = vmatmul.mubr.f32.gmra.mrb[30].mxu0 %v433_v52  ;;  %1584 = vmatprep.mubr.msk.f32.mxu1 %vm125_vm0, %v436_v53  ;;  %v471_v52 = vld [vmem:[%s3418_s1 + $0x170] sm:$0xff]  ;;  %v473_v53 = vld [vmem:[%s3418_s1 + $0x180] sm:$0x3] }
  0x62   :  { %2061 = vmatpush1.bf16.msra.mxu1 %v2227_v17  ;;  %595 = vmatprep.mubr.f32.mxu0 %v438_v54  ;;  %v476_v54 = vld [vmem:[%s3418_s1 + $0x198] sm:$0x3] }
  0x63   :  { %2035 = vmatpush3.bf16.msra.mxu0 %v2263_v29  ;;  %2062 = vmatprep.subr.bf16.mxu1 %v2143_v0 }
  0x64   :  { %2037 = vmatprep.subr.bf16.mxu0 %v2270_v31  ;;  %721 = vmatmul.mubr.f32.gmra.mrb[30].mxu1 %v435_v55  ;;  %v777_v55 = vld [vmem:[%s3419_s2 + $0x8] sm:$0xff] }
  0x65   :  { %596 = vmatmul.mubr.f32.gmra.mrb[32].mxu0 %v437_v56  ;;  %1585 = vmatprep.mubr.msk.f32.mxu1 %vm125_vm0, %v440_v59  ;;  %v475_v56 = vld [vmem:[%s3418_s1 + $0x190] sm:$0x3]  ;;  %v776_v59 = vld [vmem:[%s3419_s2] sm:$0xff] }
  0x66   :  { %600 = vmatprep.mubr.f32.mxu0 %v442_v61  ;;  %2064 = vmatpush1.bf16.msra.mxu1 %v2261_v28  ;;  %v779_v61 = vld [vmem:[%s3419_s2 + $0x18] sm:$0xff] }
  0x67   :  { %2039 = vmatpush3.bf16.msra.mxu0 %v2291_v38  ;;  %2065 = vmatprep.subr.bf16.mxu1 %v2143_v0 }
  0x68   :  { %2041 = vmatprep.subr.bf16.mxu0 %v2298_v40  ;;  %726 = vmatmul.mubr.f32.gmra.mrb[32].mxu1 %v439_v62  ;;  %v781_v62 = vld [vmem:[%s3419_s2 + $0x28] sm:$0xff] }
  0x69   :  { %601 = vmatmul.mubr.f32.gmra.mrb[34].mxu0 %v441_v63  ;;  %1586 = vmatprep.mubr.msk.f32.mxu1 %vm125_vm0, %v444_v1  ;;  %v778_v63 = vld [vmem:[%s3419_s2 + $0x10] sm:$0xff]  ;;  %v780_v1 = vld [vmem:[%s3419_s2 + $0x20] sm:$0xff] }
  0x6a   :  { %605 = vmatprep.mubr.f32.mxu0 %v446_v2  ;;  %2067 = vmatpush1.bf16.msra.mxu1 %v2289_v37  ;;  %v783_v2 = vld [vmem:[%s3419_s2 + $0x38] sm:$0xff] }
  0x6b   :  { %2043 = vmatpush3.bf16.msra.mxu0 %v2319_v47  ;;  %2068 = vmatprep.subr.bf16.mxu1 %v2143_v0 }
  0x6c   :  { %2045 = vmatprep.subr.bf16.mxu0 %v2332_v51  ;;  %731 = vmatmul.mubr.f32.gmra.mrb[34].mxu1 %v443_v6  ;;  %v782_v6 = vld [vmem:[%s3419_s2 + $0x30] sm:$0xff] }
  0x6d   :  { %606 = vmatmul.mubr.f32.gmra.mrb[36].mxu0 %v445_v10  ;;  %1587 = vmatprep.mubr.msk.f32.mxu1 %vm125_vm0, %v448_v11  ;;  %v784_v10 = vld [vmem:[%s3419_s2 + $0x40] sm:$0xff] }
  0x6e   :  { %610 = vmatprep.mubr.f32.mxu0 %v450_v12  ;;  %2070 = vmatpush1.bf16.msra.mxu1 %v2317_v46  ;;  %v788_v11 = vld [vmem:[%s3419_s2 + $0x60] sm:$0xff]  ;;  %v791_v12 = vld [vmem:[%s3419_s2 + $0x78] sm:$0xff] }
  0x6f   :  { %2047 = vmatpush3.bf16.msra.mxu0 %v2354_v58  ;;  %2071 = vmatprep.subr.bf16.mxu1 %v2143_v0 }
  0x70   :  { %2049 = vmatprep.subr.bf16.mxu0 %v2361_v60  ;;  %736 = vmatmul.mubr.f32.gmra.mrb[36].mxu1 %v447_v16  ;;  %v795_v16 = vld [vmem:[%s3419_s2 + $0x98] sm:$0xff] }
  0x71   :  { %611 = vmatmul.mubr.f32.gmra.mrb[38].mxu0 %v449_v19  ;;  %1588 = vmatprep.mubr.msk.f32.mxu1 %vm125_vm0, %v452_v20  ;;  %v796_v19 = vld [vmem:[%s3419_s2 + $0xa0] sm:$0xff]  ;;  %v798_v20 = vld [vmem:[%s3419_s2 + $0xb0] sm:$0xff] }
  0x72   :  { %615 = vmatprep.mubr.f32.mxu0 %v454_v23  ;;  %2073 = vmatpush1.bf16.msra.mxu1 %v2352_v57  ;;  %v802_v23 = vld [vmem:[%s3419_s2 + $0xd0] sm:$0xff] }
  0x73   :  { %2051 = vmatpush3.bf16.msra.mxu0 %v2382_v5  ;;  %2074 = vmatprep.subr.bf16.mxu1 %v2143_v0 }
  0x74   :  { %2053 = vmatprep.subr.bf16.mxu0 %v2389_v7  ;;  %741 = vmatmul.mubr.f32.gmra.mrb[38].mxu1 %v451_v24  ;;  %v804_v24 = vld [vmem:[%s3419_s2 + $0xe0] sm:$0xff] }
  0x75   :  { %616 = vmatmul.mubr.f32.gmra.mrb[40].mxu0 %v453_v25  ;;  %1589 = vmatprep.mubr.msk.f32.mxu1 %vm125_vm0, %v456_v26  ;;  %v808_v25 = vld [vmem:[%s3419_s2 + $0x100] sm:$0xff] }
  0x76   :  { %620 = vmatprep.mubr.f32.mxu0 %v458_v27  ;;  %2076 = vmatpush1.bf16.msra.mxu1 %v2380_v3  ;;  %v812_v26 = vld [vmem:[%s3419_s2 + $0x120] sm:$0xff]  ;;  %v814_v27 = vld [vmem:[%s3419_s2 + $0x130] sm:$0xff] }
  0x77   :  { %2055 = vmatpush3.bf16.msra.mxu0 %v2404_v15  ;;  %2077 = vmatprep.subr.bf16.mxu1 %v2143_v0 }
  0x78   :  { %2084 = vmatprep.subr.bf16.mxu0 %v2189_v4  ;;  %746 = vmatmul.mubr.f32.gmra.mrb[40].mxu1 %v455_v30  ;;  %v466_v4 = vld [vmem:[%s3418_s1 + $0x148] sm:$0xff]  ;;  %v816_v30 = vld [vmem:[%s3419_s2 + $0x140] sm:$0xff] }
  0x79   :  { %621 = vmatmul.mubr.f32.gmra.mrb[42].mxu0 %v457_v32  ;;  %1590 = vmatprep.mubr.msk.f32.mxu1 %vm125_vm0, %v460_v33  ;;  %v819_v32 = vld [vmem:[%s3419_s2 + $0x158] sm:$0xff]  ;;  %v820_v33 = vld [vmem:[%s3419_s2 + $0x160] sm:$0xff] }
  0x7a   :  { %625 = vmatprep.mubr.f32.mxu0 %v462_v34  ;;  %2079 = vmatpush1.bf16.msra.mxu1 %v2402_v14  ;;  %v823_v34 = vld [vmem:[%s3419_s2 + $0x178] sm:$0xff] }
  0x7b   :  { %2080 = vmatprep.subr.bf16.mxu1 %v2143_v0 }
  0x7c   :  { %751 = vmatmul.mubr.f32.gmra.mrb[42].mxu1 %v459_v35  ;;  %v822_v35 = vld [vmem:[%s3419_s2 + $0x170] sm:$0xff] }
  0x7d   :  { %626 = vmatmul.mubr.f32.gmra.mrb[44].mxu0 %v461_v36  ;;  %1591 = vmatprep.mubr.msk.f32.mxu1 %vm125_vm0, %v464_v39  ;;  %v824_v36 = vld [vmem:[%s3419_s2 + $0x180] sm:$0x3]  ;;  %v827_v39 = vld [vmem:[%s3419_s2 + $0x198] sm:$0x3] }
  0x7e   :  { %630 = vmatprep.mubr.f32.mxu0 %v466_v4  ;;  %2082 = vmatpush1.bf16.msra.mxu1 %v2419_v21  ;;  %v1128_v4 = vld [vmem:[%s3420_s3 + $0x8] sm:$0xff] }
  0x7f   :  { %2115 = vmatprep.subr.bf16.mxu1 %v2143_v0 }
  0x80   :  { %756 = vmatmul.mubr.f32.gmra.mrb[44].mxu1 %v463_v41  ;;  %v826_v41 = vld [vmem:[%s3419_s2 + $0x190] sm:$0x3] }
  0x81   :  { %631 = vmatmul.mubr.f32.gmra.mrb[46].mxu0 %v465_v42  ;;  %1592 = vmatprep.mubr.msk.f32.mxu1 %vm125_vm0, %v468_v43  ;;  %v1127_v42 = vld [vmem:[%s3420_s3] sm:$0xff]  ;;  %v1130_v43 = vld [vmem:[%s3420_s3 + $0x18] sm:$0xff] }
  0x82   :  { %635 = vmatprep.mubr.f32.mxu0 %v470_v44  ;;  %v1132_v44 = vld [vmem:[%s3420_s3 + $0x28] sm:$0xff] }
  0x84   :  { %761 = vmatmul.mubr.f32.gmra.mrb[46].mxu1 %v467_v45  ;;  %v1129_v45 = vld [vmem:[%s3420_s3 + $0x10] sm:$0xff] }
  0x85   :  { %636 = vmatmul.mubr.f32.gmra.mrb[48].mxu0 %v469_v48  ;;  %1593 = vmatprep.mubr.msk.f32.mxu1 %vm125_vm0, %v472_v49  ;;  %v1131_v48 = vld [vmem:[%s3420_s3 + $0x20] sm:$0xff]  ;;  %v1134_v49 = vld [vmem:[%s3420_s3 + $0x38] sm:$0xff] }
  0x86   :  { %640 = vmatprep.mubr.f32.mxu0 %v474_v50  ;;  %v1136_v50 = vld [vmem:[%s3420_s3 + $0x48] sm:$0xff] }
  0x88   :  { %766 = vmatmul.mubr.f32.gmra.mrb[48].mxu1 %v471_v52  ;;  %v1133_v52 = vld [vmem:[%s3420_s3 + $0x30] sm:$0xff] }
  0x89   :  { %641 = vmatmul.mubr.f32.gmra.mrb[50].mxu0 %v473_v53  ;;  %1594 = vmatprep.mubr.msk.f32.mxu1 %vm125_vm0, %v476_v54  ;;  %v1135_v53 = vld [vmem:[%s3420_s3 + $0x40] sm:$0xff]  ;;  %v1138_v54 = vld [vmem:[%s3420_s3 + $0x58] sm:$0xff] }
  0x8a   :  { %931 = vmatprep.mubr.f32.mxu0 %v777_v55  ;;  %v1140_v55 = vld [vmem:[%s3420_s3 + $0x68] sm:$0xff] }
  0x8c   :  { %771 = vmatmul.mubr.f32.gmra.mrb[50].mxu1 %v475_v56  ;;  %v1137_v56 = vld [vmem:[%s3420_s3 + $0x50] sm:$0xff] }
  0x8d   :  { %932 = vmatmul.mubr.f32.vlgmr.msra.gmra.mrb[52].mxu0 %v776_v59  ;;  %1595 = vmatprep.mubr.msk.f32.mxu1 %vm125_vm0, %v779_v61  ;;  %v1139_v59 = vld [vmem:[%s3420_s3 + $0x60] sm:$0xff]  ;;  %v1142_v61 = vld [vmem:[%s3420_s3 + $0x78] sm:$0xff] }
  0x8e   :  { %2086 = vmatpush3.bf16.msra.mxu0 %v2202_v9  ;;  %936 = vmatprep.mubr.f32.mxu0 %v781_v62  ;;  %v785_v9 = vld [vmem:[%s3419_s2 + $0x48] sm:$0xff] }
  0x8f   :  { %2088 = vmatprep.subr.bf16.mxu0 %v2214_v13  ;;  %v787_v13 = vld [vmem:[%s3419_s2 + $0x58] sm:$0xff]  ;;  %v1144_v62 = vld [vmem:[%s3420_s3 + $0x88] sm:$0xff] }
  0x90   :  { %1062 = vmatmul.mubr.f32.vlgmr.msra.gmra.mrb[52].mxu1 %v778_v63  ;;  %v1141_v63 = vld [vmem:[%s3420_s3 + $0x70] sm:$0xff] }
  0x91   :  { %937 = vmatmul.mubr.f32.gmra.mrb[54].mxu0 %v780_v1  ;;  %2117 = vmatpush1.bf16.msra.mxu1 %v2200_v8  ;;  %v789_v8 = vld [vmem:[%s3419_s2 + $0x68] sm:$0xff]  ;;  %v1143_v1 = vld [vmem:[%s3420_s3 + $0x80] sm:$0xff] }
  0x92   :  { %1596 = vmatprep.mubr.msk.f32.mxu1 %vm125_vm0, %v783_v2  ;;  %941 = vmatprep.mubr.f32.mxu0 %v785_v9  ;;  %v1146_v2 = vld [vmem:[%s3420_s3 + $0x98] sm:$0xff]  ;;  %v1148_v9 = vld [vmem:[%s3420_s3 + $0xa8] sm:$0xff] }
  0x93   :  { %2090 = vmatpush3.bf16.msra.mxu0 %v2229_v18  ;;  %2118 = vmatprep.subr.bf16.mxu1 %v2143_v0  ;;  %v786_v18 = vld [vmem:[%s3419_s2 + $0x50] sm:$0xff] }
  0x94   :  { %2092 = vmatprep.subr.bf16.mxu0 %v2242_v22  ;;  %1067 = vmatmul.mubr.f32.gmra.mrb[54].mxu1 %v782_v6  ;;  %v793_v22 = vld [vmem:[%s3419_s2 + $0x88] sm:$0xff]  ;;  %v1145_v6 = vld [vmem:[%s3420_s3 + $0x90] sm:$0xff] }
  0x95   :  { %942 = vmatmul.mubr.f32.gmra.mrb[56].mxu0 %v784_v10  ;;  %1597 = vmatprep.mubr.msk.f32.mxu1 %vm125_vm0, %v787_v13  ;;  %v1147_v10 = vld [vmem:[%s3420_s3 + $0xa0] sm:$0xff]  ;;  %v1150_v13 = vld [vmem:[%s3420_s3 + $0xb8] sm:$0xff] }
  0x96   :  { %2120 = vmatpush1.bf16.msra.mxu1 %v2227_v17  ;;  %946 = vmatprep.mubr.f32.mxu0 %v789_v8  ;;  %v790_v17 = vld [vmem:[%s3419_s2 + $0x70] sm:$0xff]  ;;  %v1152_v8 = vld [vmem:[%s3420_s3 + $0xc8] sm:$0xff] }
  0x97   :  { %2094 = vmatpush3.bf16.msra.mxu0 %v2263_v29  ;;  %2121 = vmatprep.subr.bf16.mxu1 %v2143_v0  ;;  %v792_v29 = vld [vmem:[%s3419_s2 + $0x80] sm:$0xff] }
  0x98   :  { %2096 = vmatprep.subr.bf16.mxu0 %v2270_v31  ;;  %1072 = vmatmul.mubr.f32.gmra.mrb[56].mxu1 %v786_v18  ;;  %v797_v31 = vld [vmem:[%s3419_s2 + $0xa8] sm:$0xff]  ;;  %v1149_v18 = vld [vmem:[%s3420_s3 + $0xb0] sm:$0xff] }
  0x99   :  { %947 = vmatmul.mubr.f32.gmra.mrb[58].mxu0 %v788_v11  ;;  %1598 = vmatprep.mubr.msk.f32.mxu1 %vm125_vm0, %v791_v12  ;;  %v1151_v11 = vld [vmem:[%s3420_s3 + $0xc0] sm:$0xff]  ;;  %v1154_v12 = vld [vmem:[%s3420_s3 + $0xd8] sm:$0xff] }
  0x9a   :  { %951 = vmatprep.mubr.f32.mxu0 %v793_v22  ;;  %2123 = vmatpush1.bf16.msra.mxu1 %v2261_v28  ;;  %v794_v28 = vld [vmem:[%s3419_s2 + $0x90] sm:$0xff]  ;;  %v1156_v22 = vld [vmem:[%s3420_s3 + $0xe8] sm:$0xff] }
  0x9b   :  { %2098 = vmatpush3.bf16.msra.mxu0 %v2291_v38  ;;  %2124 = vmatprep.subr.bf16.mxu1 %v2143_v0  ;;  %v799_v38 = vld [vmem:[%s3419_s2 + $0xb8] sm:$0xff] }
  0x9c   :  { %2100 = vmatprep.subr.bf16.mxu0 %v2298_v40  ;;  %1077 = vmatmul.mubr.f32.gmra.mrb[58].mxu1 %v790_v17  ;;  %v801_v40 = vld [vmem:[%s3419_s2 + $0xc8] sm:$0xff]  ;;  %v1153_v17 = vld [vmem:[%s3420_s3 + $0xd0] sm:$0xff] }
  0x9d   :  { %952 = vmatmul.mubr.f32.gmra.mrb[60].mxu0 %v792_v29  ;;  %1599 = vmatprep.mubr.msk.f32.mxu1 %vm125_vm0, %v795_v16  ;;  %v1155_v29 = vld [vmem:[%s3420_s3 + $0xe0] sm:$0xff]  ;;  %v1158_v16 = vld [vmem:[%s3420_s3 + $0xf8] sm:$0xff] }
  0x9e   :  { %956 = vmatprep.mubr.f32.mxu0 %v797_v31  ;;  %2126 = vmatpush1.bf16.msra.mxu1 %v2289_v37  ;;  %v800_v37 = vld [vmem:[%s3419_s2 + $0xc0] sm:$0xff]  ;;  %v1160_v31 = vld [vmem:[%s3420_s3 + $0x108] sm:$0xff] }
  0x9f   :  { %2102 = vmatpush3.bf16.msra.mxu0 %v2319_v47  ;;  %2127 = vmatprep.subr.bf16.mxu1 %v2143_v0  ;;  %v803_v47 = vld [vmem:[%s3419_s2 + $0xd8] sm:$0xff] }
  0xa0   :  { %2104 = vmatprep.subr.bf16.mxu0 %v2332_v51  ;;  %1082 = vmatmul.mubr.f32.gmra.mrb[60].mxu1 %v794_v28  ;;  %v805_v51 = vld [vmem:[%s3419_s2 + $0xe8] sm:$0xff]  ;;  %v1157_v28 = vld [vmem:[%s3420_s3 + $0xf0] sm:$0xff] }
  0xa1   :  { %957 = vmatmul.mubr.f32.gmra.mrb[62].mxu0 %v796_v19  ;;  %1600 = vmatprep.mubr.msk.f32.mxu1 %vm125_vm0, %v799_v38  ;;  %v1159_v19 = vld [vmem:[%s3420_s3 + $0x100] sm:$0xff]  ;;  %v1162_v38 = vld [vmem:[%s3420_s3 + $0x118] sm:$0xff] }
  0xa2   :  { %961 = vmatprep.mubr.f32.mxu0 %v801_v40  ;;  %2129 = vmatpush1.bf16.msra.mxu1 %v2317_v46  ;;  %v807_v46 = vld [vmem:[%s3419_s2 + $0xf8] sm:$0xff]  ;;  %v1164_v40 = vld [vmem:[%s3420_s3 + $0x128] sm:$0xff] }
  0xa3   :  { %2106 = vmatpush3.bf16.msra.mxu0 %v2354_v58  ;;  %2130 = vmatprep.subr.bf16.mxu1 %v2143_v0  ;;  %v809_v58 = vld [vmem:[%s3419_s2 + $0x108] sm:$0xff] }
  0xa4   :  { %2108 = vmatprep.subr.bf16.mxu0 %v2361_v60  ;;  %1087 = vmatmul.mubr.f32.gmra.mrb[62].mxu1 %v798_v20  ;;  %v806_v60 = vld [vmem:[%s3419_s2 + $0xf0] sm:$0xff] }
  0xa5   :  { %962 = vmatmul.mubr.f32.gmra.mrb[64].mxu0 %v800_v37  ;;  %1601 = vmatprep.mubr.msk.f32.mxu1 %vm125_vm0, %v803_v47  ;;  %v1161_v20 = vld [vmem:[%s3420_s3 + $0x110] sm:$0xff]  ;;  %v1163_v37 = vld [vmem:[%s3420_s3 + $0x120] sm:$0xff]  ;;  %v1166_v47 = vld [vmem:[%s3420_s3 + $0x138] sm:$0xff] }
  0xa6   :  { %966 = vmatprep.mubr.f32.mxu0 %v805_v51  ;;  %2132 = vmatpush1.bf16.msra.mxu1 %v2352_v57  ;;  %v811_v57 = vld [vmem:[%s3419_s2 + $0x118] sm:$0xff]  ;;  %v1168_v51 = vld [vmem:[%s3420_s3 + $0x148] sm:$0xff] }
  0xa7   :  { %2110 = vmatpush3.bf16.msra.mxu0 %v2382_v5  ;;  %2133 = vmatprep.subr.bf16.mxu1 %v2143_v0  ;;  %v813_v5 = vld [vmem:[%s3419_s2 + $0x128] sm:$0xff] }
  0xa8   :  { %2112 = vmatprep.subr.bf16.mxu0 %v2389_v7  ;;  %1092 = vmatmul.mubr.f32.gmra.mrb[64].mxu1 %v802_v23  ;;  %v810_v7 = vld [vmem:[%s3419_s2 + $0x110] sm:$0xff] }
  0xa9   :  { %967 = vmatmul.mubr.f32.gmra.mrb[66].mxu0 %v804_v24  ;;  %1602 = vmatprep.mubr.msk.f32.mxu1 %vm125_vm0, %v807_v46  ;;  %v1165_v23 = vld [vmem:[%s3420_s3 + $0x130] sm:$0xff]  ;;  %v1167_v24 = vld [vmem:[%s3420_s3 + $0x140] sm:$0xff]  ;;  %v1170_v46 = vld [vmem:[%s3420_s3 + $0x158] sm:$0xff] }
  0xaa   :  { %971 = vmatprep.mubr.f32.mxu0 %v809_v58  ;;  %2135 = vmatpush1.bf16.msra.mxu1 %v2380_v3  ;;  %v815_v3 = vld [vmem:[%s3419_s2 + $0x138] sm:$0xff]  ;;  %v1172_v58 = vld [vmem:[%s3420_s3 + $0x168] sm:$0xff] }
  0xab   :  { %2114 = vmatpush3.bf16.msra.mxu0 %v2404_v15  ;;  %2136 = vmatprep.subr.bf16.mxu1 %v2143_v0  ;;  %v817_v15 = vld [vmem:[%s3419_s2 + $0x148] sm:$0xff] }
  0xac   :  { %1097 = vmatmul.mubr.f32.gmra.mrb[66].mxu1 %v806_v60  ;;  %v1169_v60 = vld [vmem:[%s3420_s3 + $0x150] sm:$0xff] }
  0xad   :  { %972 = vmatmul.mubr.f32.gmra.mrb[68].mxu0 %v808_v25  ;;  %1603 = vmatprep.mubr.msk.f32.mxu1 %vm125_vm0, %v811_v57  ;;  %v1171_v25 = vld [vmem:[%s3420_s3 + $0x160] sm:$0xff]  ;;  %v1174_v57 = vld [vmem:[%s3420_s3 + $0x178] sm:$0xff] }
  0xae   :  { %976 = vmatprep.mubr.f32.mxu0 %v813_v5  ;;  %2138 = vmatpush1.bf16.msra.mxu1 %v2402_v14  ;;  %v818_v14 = vld [vmem:[%s3419_s2 + $0x150] sm:$0xff]  ;;  %v1176_v5 = vld [vmem:[%s3420_s3 + $0x188] sm:$0x3] }
  0xaf   :  { %2139 = vmatprep.subr.bf16.mxu1 %v2143_v0  ;;  %v821_v0 = vld [vmem:[%s3419_s2 + $0x168] sm:$0xff] }
  0xb0   :  { %1102 = vmatmul.mubr.f32.gmra.mrb[68].mxu1 %v810_v7  ;;  %v1173_v7 = vld [vmem:[%s3420_s3 + $0x170] sm:$0xff] }
  0xb1   :  { %977 = vmatmul.mubr.f32.gmra.mrb[70].mxu0 %v812_v26  ;;  %1604 = vmatprep.mubr.msk.f32.mxu1 %vm125_vm0, %v815_v3  ;;  %v1175_v26 = vld [vmem:[%s3420_s3 + $0x180] sm:$0x3]  ;;  %v1178_v3 = vld [vmem:[%s3420_s3 + $0x198] sm:$0x3] }
  0xb2   :  { %981 = vmatprep.mubr.f32.mxu0 %v817_v15  ;;  %2141 = vmatpush1.bf16.msra.mxu1 %v2419_v21  ;;  %v825_v21 = vld [vmem:[%s3419_s2 + $0x188] sm:$0x3]  ;;  %v1177_v15 = vld [vmem:[%s3420_s3 + $0x190] sm:$0x3] }
  0xb4   :  { %1107 = vmatmul.mubr.f32.gmra.mrb[70].mxu1 %v814_v27 }
  0xb5   :  { %982 = vmatmul.mubr.f32.gmra.mrb[72].mxu0 %v816_v30  ;;  %1605 = vmatprep.mubr.msk.f32.mxu1 %vm125_vm0, %v819_v32 }
  0xb6   :  { %986 = vmatprep.mubr.f32.mxu0 %v821_v0 }
  0xb8   :  { %1112 = vmatmul.mubr.f32.gmra.mrb[72].mxu1 %v818_v14 }
  0xb9   :  { %987 = vmatmul.mubr.f32.gmra.mrb[74].mxu0 %v820_v33  ;;  %1606 = vmatprep.mubr.msk.f32.mxu1 %vm125_vm0, %v823_v34 }
  0xba   :  { %991 = vmatprep.mubr.f32.mxu0 %v825_v21 }
  0xbc   :  { %1117 = vmatmul.mubr.f32.gmra.mrb[74].mxu1 %v822_v35 }
  0xbd   :  { %992 = vmatmul.mubr.f32.gmra.mrb[76].mxu0 %v824_v36  ;;  %1607 = vmatprep.mubr.msk.f32.mxu1 %vm125_vm0, %v827_v39 }
  0xbe   :  { %1282 = vmatprep.mubr.f32.mxu0 %v1128_v4 }
  0xc0   :  { %1122 = vmatmul.mubr.f32.gmra.mrb[76].mxu1 %v826_v41 }
  0xc1   :  { %1283 = vmatmul.mubr.f32.vlgmr.msra.gmra.mrb[78].mxu0 %v1127_v42  ;;  %1608 = vmatprep.mubr.msk.f32.mxu1 %vm125_vm0, %v1130_v43 }
  0xc2   :  { %1287 = vmatprep.mubr.f32.mxu0 %v1132_v44 }
  0xc4   :  { %1413 = vmatmul.mubr.f32.vlgmr.msra.gmra.mrb[78].mxu1 %v1129_v45 }
  0xc5   :  { %1288 = vmatmul.mubr.f32.gmra.mrb[80].mxu0 %v1131_v48  ;;  %1609 = vmatprep.mubr.msk.f32.mxu1 %vm125_vm0, %v1134_v49 }
  0xc6   :  { %1292 = vmatprep.mubr.f32.mxu0 %v1136_v50 }
  0xc8   :  { %1418 = vmatmul.mubr.f32.gmra.mrb[80].mxu1 %v1133_v52 }
  0xc9   :  { %1293 = vmatmul.mubr.f32.gmra.mrb[82].mxu0 %v1135_v53  ;;  %1610 = vmatprep.mubr.msk.f32.mxu1 %vm125_vm0, %v1138_v54 }
  0xca   :  { %1297 = vmatprep.mubr.f32.mxu0 %v1140_v55 }
  0xcc   :  { %1423 = vmatmul.mubr.f32.gmra.mrb[82].mxu1 %v1137_v56 }
  0xcd   :  { %1298 = vmatmul.mubr.f32.gmra.mrb[84].mxu0 %v1139_v59  ;;  %1611 = vmatprep.mubr.msk.f32.mxu1 %vm125_vm0, %v1142_v61 }
  0xce   :  { %1302 = vmatprep.mubr.f32.mxu0 %v1144_v62 }
  0xd0   :  { %1428 = vmatmul.mubr.f32.gmra.mrb[84].mxu1 %v1141_v63 }
  0xd1   :  { %1303 = vmatmul.mubr.f32.gmra.mrb[86].mxu0 %v1143_v1  ;;  %1612 = vmatprep.mubr.msk.f32.mxu1 %vm125_vm0, %v1146_v2 }
  0xd2   :  { %1307 = vmatprep.mubr.f32.mxu0 %v1148_v9 }
  0xd4   :  { %1433 = vmatmul.mubr.f32.gmra.mrb[86].mxu1 %v1145_v6 }
  0xd5   :  { %1308 = vmatmul.mubr.f32.gmra.mrb[88].mxu0 %v1147_v10  ;;  %1613 = vmatprep.mubr.msk.f32.mxu1 %vm125_vm0, %v1150_v13 }
  0xd6   :  { %1312 = vmatprep.mubr.f32.mxu0 %v1152_v8 }
  0xd8   :  { %1438 = vmatmul.mubr.f32.gmra.mrb[88].mxu1 %v1149_v18 }
  0xd9   :  { %1313 = vmatmul.mubr.f32.gmra.mrb[90].mxu0 %v1151_v11  ;;  %1614 = vmatprep.mubr.msk.f32.mxu1 %vm125_vm0, %v1154_v12 }
  0xda   :  { %1317 = vmatprep.mubr.f32.mxu0 %v1156_v22 }
  0xdc   :  { %1443 = vmatmul.mubr.f32.gmra.mrb[90].mxu1 %v1153_v17 }
  0xdd   :  { %1318 = vmatmul.mubr.f32.gmra.mrb[92].mxu0 %v1155_v29  ;;  %1615 = vmatprep.mubr.msk.f32.mxu1 %vm125_vm0, %v1158_v16 }
  0xde   :  { %1322 = vmatprep.mubr.f32.mxu0 %v1160_v31 }
  0xe0   :  { %1448 = vmatmul.mubr.f32.gmra.mrb[92].mxu1 %v1157_v28 }
  0xe1   :  { %1323 = vmatmul.mubr.f32.gmra.mrb[94].mxu0 %v1159_v19  ;;  %1616 = vmatprep.mubr.msk.f32.mxu1 %vm125_vm0, %v1162_v38 }
  0xe2   :  { %1327 = vmatprep.mubr.f32.mxu0 %v1164_v40 }
  0xe4   :  { %1453 = vmatmul.mubr.f32.gmra.mrb[94].mxu1 %v1161_v20 }
  0xe5   :  { %1328 = vmatmul.mubr.f32.gmra.mrb[96].mxu0 %v1163_v37  ;;  %1617 = vmatprep.mubr.msk.f32.mxu1 %vm125_vm0, %v1166_v47 }
  0xe6   :  { %1332 = vmatprep.mubr.f32.mxu0 %v1168_v51 }
  0xe8   :  { %1458 = vmatmul.mubr.f32.gmra.mrb[96].mxu1 %v1165_v23 }
  0xe9   :  { %1333 = vmatmul.mubr.f32.gmra.mrb[98].mxu0 %v1167_v24  ;;  %1618 = vmatprep.mubr.msk.f32.mxu1 %vm125_vm0, %v1170_v46 }
  0xea   :  { %1337 = vmatprep.mubr.f32.mxu0 %v1172_v58 }
  0xec   :  { %1463 = vmatmul.mubr.f32.gmra.mrb[98].mxu1 %v1169_v60 }
  0xed   :  { %1338 = vmatmul.mubr.f32.gmra.mrb[100].mxu0 %v1171_v25  ;;  %1619 = vmatprep.mubr.msk.f32.mxu1 %vm125_vm0, %v1174_v57 }
  0xee   :  { %1342 = vmatprep.mubr.f32.mxu0 %v1176_v5 }
  0xf0   :  { %1468 = vmatmul.mubr.f32.gmra.mrb[100].mxu1 %v1173_v7 }
  0xf1   :  { %1343 = vmatmul.mubr.f32.gmra.mrb[102].mxu0 %v1175_v26  ;;  %1620 = vmatprep.mubr.msk.f32.mxu1 %vm125_vm0, %v1178_v3 }
  0xf4   :  { %1473 = vmatmul.mubr.f32.gmra.mrb[102].mxu1 %v1177_v15 }
  0xf8   :  { %v1654_v27 = vpop.f32.mrb[0].mxu0 }
  0xf9   :  { %v1655_v30 = vpop.f32.mrb[1].mxu0 }
  0xfa   :  { %v1656_v32 = vadd.f32 %v1655_v30, %v1654_v27 }
  0xfb   :  { %v361_v0 = vpop.f32.mrb[0].mxu1 }
  0xfc   :  { %v1657_v14 = vpop.f32.mrb[2].mxu0  ;;  %v3191_v33 = vadd.f32 %v1656_v32, %v361_v0  ;;  %v363_v34 = vpop.f32.mrb[1].mxu1 }
  0xfd   :  { %v1658_v21 = vpop.f32.mrb[3].mxu0 }
  0xfe   :  { %v1659_v35 = vadd.f32 %v1658_v21, %v1657_v14 }
  0xff   :  { %v366_v36 = vpop.f32.mrb[2].mxu1 }
 0x100   :  { %v1660_v39 = vpop.f32.mrb[4].mxu0  ;;  %v3193_v4 = vadd.f32 %v1659_v35, %v366_v36  ;;  %v368_v41 = vpop.f32.mrb[3].mxu1 }
 0x101   :  { %v1661_v42 = vpop.f32.mrb[5].mxu0 }
 0x102   :  { %v1662_v43 = vadd.f32 %v1661_v42, %v1660_v39 }
 0x103   :  { %v371_v44 = vpop.f32.mrb[4].mxu1 }
 0x104   :  { %v1663_v45 = vpop.f32.mrb[6].mxu0  ;;  %v3195_v48 = vadd.f32 %v1662_v43, %v371_v44  ;;  %v373_v49 = vpop.f32.mrb[5].mxu1 }
 0x105   :  { %v1664_v50 = vpop.f32.mrb[7].mxu0 }
 0x106   :  { %v1665_v52 = vadd.f32 %v1664_v50, %v1663_v45 }
 0x107   :  { %v376_v53 = vpop.f32.mrb[6].mxu1 }
 0x108   :  { %v1666_v54 = vpop.f32.mrb[8].mxu0  ;;  %v3197_v55 = vadd.f32 %v1665_v52, %v376_v53  ;;  %v378_v56 = vpop.f32.mrb[7].mxu1 }
 0x109   :  { %v1667_v59 = vpop.f32.mrb[9].mxu0 }
 0x10a   :  { %v1668_v61 = vadd.f32 %v1667_v59, %v1666_v54 }
 0x10b   :  { %v381_v62 = vpop.f32.mrb[8].mxu1 }
 0x10c   :  { %v1669_v63 = vpop.f32.mrb[10].mxu0  ;;  %v3199_v1 = vadd.f32 %v1668_v61, %v381_v62  ;;  %v383_v2 = vpop.f32.mrb[9].mxu1 }
 0x10d   :  { %v1670_v9 = vpop.f32.mrb[11].mxu0 }
 0x10e   :  { %v1671_v6 = vadd.f32 %v1670_v9, %v1669_v63 }
 0x10f   :  { %v386_v10 = vpop.f32.mrb[10].mxu1 }
 0x110   :  { %v1672_v13 = vpop.f32.mrb[12].mxu0  ;;  %v3201_v8 = vadd.f32 %v1671_v6, %v386_v10  ;;  %v388_v18 = vpop.f32.mrb[11].mxu1 }
 0x111   :  { %v1673_v11 = vpop.f32.mrb[13].mxu0 }
 0x112   :  { %v1674_v12 = vadd.f32 %v1673_v11, %v1672_v13 }
 0x113   :  { %v391_v22 = vpop.f32.mrb[12].mxu1 }
 0x114   :  { %v1675_v17 = vpop.f32.mrb[14].mxu0  ;;  %v3203_v29 = vadd.f32 %v1674_v12, %v391_v22  ;;  %v393_v16 = vpop.f32.mrb[13].mxu1 }
 0x115   :  { %v1676_v31 = vpop.f32.mrb[15].mxu0 }
 0x116   :  { %v1677_v28 = vadd.f32 %v1676_v31, %v1675_v17 }
 0x117   :  { %v396_v19 = vpop.f32.mrb[14].mxu1 }
 0x118   :  { %v1678_v38 = vpop.f32.mrb[16].mxu0  ;;  %v3205_v40 = vadd.f32 %v1677_v28, %v396_v19  ;;  %v398_v20 = vpop.f32.mrb[15].mxu1 }
 0x119   :  { %v1679_v37 = vpop.f32.mrb[17].mxu0 }
 0x11a   :  { %v1680_v47 = vadd.f32 %v1679_v37, %v1678_v38 }
 0x11b   :  { %v401_v51 = vpop.f32.mrb[16].mxu1 }
 0x11c   :  { %v1681_v23 = vpop.f32.mrb[18].mxu0  ;;  %v3207_v24 = vadd.f32 %v1680_v47, %v401_v51  ;;  %v403_v46 = vpop.f32.mrb[17].mxu1 }
 0x11d   :  { %v1682_v58 = vpop.f32.mrb[19].mxu0 }
 0x11e   :  { %v1683_v60 = vadd.f32 %v1682_v58, %v1681_v23 }
 0x11f   :  { %v406_v25 = vpop.f32.mrb[18].mxu1 }
 0x120   :  { %v1684_v57 = vpop.f32.mrb[20].mxu0  ;;  %v3209_v5 = vadd.f32 %v1683_v60, %v406_v25  ;;  %v408_v7 = vpop.f32.mrb[19].mxu1 }
 0x121   :  { %v1685_v26 = vpop.f32.mrb[21].mxu0 }
 0x122   :  { %v1686_v3 = vadd.f32 %v1685_v26, %v1684_v57 }
 0x123   :  { %v411_v15 = vpop.f32.mrb[20].mxu1 }
 0x124   :  { %v1687_v27 = vpop.f32.mrb[22].mxu0  ;;  %v3211_v30 = vadd.f32 %v1686_v3, %v411_v15  ;;  %v413_v32 = vpop.f32.mrb[21].mxu1 }
 0x125   :  { %v1688_v0 = vpop.f32.mrb[23].mxu0 }
 0x126   :  { %v1689_v14 = vadd.f32 %v1688_v0, %v1687_v27 }
 0x127   :  { %v416_v34 = vpop.f32.mrb[22].mxu1 }
 0x128   :  { %v1690_v21 = vpop.f32.mrb[24].mxu0  ;;  %v3213_v35 = vadd.f32 %v1689_v14, %v416_v34  ;;  %v418_v36 = vpop.f32.mrb[23].mxu1 }
 0x129   :  { %v1691_v39 = vpop.f32.mrb[25].mxu0 }
 0x12a   :  { %v1692_v41 = vadd.f32 %v1691_v39, %v1690_v21 }
 0x12b   :  { %v421_v42 = vpop.f32.mrb[24].mxu1 }
 0x12c   :  { %v1725_v43 = vpop.f32.mrb[26].mxu0  ;;  %v3215_v44 = vadd.f32 %v1692_v41, %v421_v42  ;;  %v423_v45 = vpop.f32.mrb[25].mxu1 }
 0x12d   :  { %v1726_v49 = vpop.f32.mrb[27].mxu0 }
 0x12e   :  { %v1727_v50 = vadd.f32 %v1726_v49, %v1725_v43 }
 0x12f   :  { %v712_v52 = vpop.f32.mrb[26].mxu1 }
 0x130   :  { %v1728_v53 = vpop.f32.mrb[28].mxu0  ;;  %v3217_v54 = vadd.f32 %v1727_v50, %v712_v52  ;;  %v714_v56 = vpop.f32.mrb[27].mxu1 }
 0x131   :  { %v1729_v59 = vpop.f32.mrb[29].mxu0 }
 0x132   :  { %v1730_v61 = vadd.f32 %v1729_v59, %v1728_v53  ;;  %v1478_v62 = vmax.f32 %v3191_v33, %v3217_v54 }
 0x133   :  { %v717_v63 = vpop.f32.mrb[28].mxu1 }
 0x134   :  { %v1731_v2 = vpop.f32.mrb[30].mxu0  ;;  %v3221_v9 = vadd.f32 %v1730_v61, %v717_v63  ;;  %v719_v6 = vpop.f32.mrb[29].mxu1 }
 0x135   :  { %v1732_v10 = vpop.f32.mrb[31].mxu0 }
 0x136   :  { %v1733_v13 = vadd.f32 %v1732_v10, %v1731_v2  ;;  %v1479_v18 = vmax.f32 %v3193_v4, %v3221_v9 }
 0x137   :  { %v722_v11 = vpop.f32.mrb[30].mxu1 }
 0x138   :  { %v1734_v12 = vpop.f32.mrb[32].mxu0  ;;  %v3225_v22 = vadd.f32 %v1733_v13, %v722_v11  ;;  %v724_v17 = vpop.f32.mrb[31].mxu1 }
 0x139   :  { %v1735_v16 = vpop.f32.mrb[33].mxu0 }
 0x13a   :  { %v1736_v31 = vadd.f32 %v1735_v16, %v1734_v12  ;;  %v1480_v28 = vmax.f32 %v3195_v48, %v3225_v22 }
 0x13b   :  { %v727_v19 = vpop.f32.mrb[32].mxu1 }
 0x13c   :  { %v1737_v38 = vpop.f32.mrb[34].mxu0  ;;  %v3229_v20 = vadd.f32 %v1736_v31, %v727_v19  ;;  %v729_v37 = vpop.f32.mrb[33].mxu1 }
 0x13d   :  { %v1738_v47 = vpop.f32.mrb[35].mxu0 }
 0x13e   :  { %v1739_v51 = vadd.f32 %v1738_v47, %v1737_v38  ;;  %v1481_v23 = vmax.f32 %v3197_v55, %v3229_v20 }
 0x13f   :  { %v732_v46 = vpop.f32.mrb[34].mxu1 }
 0x140   :  { %v1740_v58 = vpop.f32.mrb[36].mxu0  ;;  %v3233_v60 = vadd.f32 %v1739_v51, %v732_v46  ;;  %v734_v25 = vpop.f32.mrb[35].mxu1 }
 0x141   :  { %v1741_v57 = vpop.f32.mrb[37].mxu0 }
 0x142   :  { %v1742_v7 = vadd.f32 %v1741_v57, %v1740_v58  ;;  %v1482_v26 = vmax.f32 %v3199_v1, %v3233_v60 }
 0x143   :  { %v737_v3 = vpop.f32.mrb[36].mxu1 }
 0x144   :  { %v1743_v15 = vpop.f32.mrb[38].mxu0  ;;  %v3237_v27 = vadd.f32 %v1742_v7, %v737_v3  ;;  %v739_v32 = vpop.f32.mrb[37].mxu1 }
 0x145   :  { %v1744_v0 = vpop.f32.mrb[39].mxu0 }
 0x146   :  { %v1745_v14 = vadd.f32 %v1744_v0, %v1743_v15  ;;  %v1483_v34 = vmax.f32 %v3201_v8, %v3237_v27 }
 0x147   :  { %v742_v21 = vpop.f32.mrb[38].mxu1 }
 0x148   :  { %v1746_v36 = vpop.f32.mrb[40].mxu0  ;;  %v3241_v39 = vadd.f32 %v1745_v14, %v742_v21  ;;  %v744_v41 = vpop.f32.mrb[39].mxu1 }
 0x149   :  { %v1747_v42 = vpop.f32.mrb[41].mxu0 }
 0x14a   :  { %v1748_v43 = vadd.f32 %v1747_v42, %v1746_v36  ;;  %v1484_v45 = vmax.f32 %v3203_v29, %v3241_v39 }
 0x14b   :  { %v747_v49 = vpop.f32.mrb[40].mxu1 }
 0x14c   :  { %v1749_v50 = vpop.f32.mrb[42].mxu0  ;;  %v3245_v52 = vadd.f32 %v1748_v43, %v747_v49  ;;  %v749_v53 = vpop.f32.mrb[41].mxu1 }
 0x14d   :  { %v1750_v56 = vpop.f32.mrb[43].mxu0 }
 0x14e   :  { %v1751_v59 = vadd.f32 %v1750_v56, %v1749_v50  ;;  %v3423_v29 = vmax.f32 %v3205_v40, %v3245_v52 }
 0x14f   :  { %v752_v63 = vpop.f32.mrb[42].mxu1 }
 0x150   :  { %v1752_v2 = vpop.f32.mrb[44].mxu0  ;;  %v3249_v6 = vadd.f32 %v1751_v59, %v752_v63  ;;  %v754_v10 = vpop.f32.mrb[43].mxu1 }
 0x151   :  { %v1753_v13 = vpop.f32.mrb[45].mxu0 }
 0x152   :  { %v1754_v11 = vadd.f32 %v1753_v13, %v1752_v2  ;;  %v3424_v40 = vmax.f32 %v3207_v24, %v3249_v6 }
 0x153   :  { %v757_v17 = vpop.f32.mrb[44].mxu1 }
 0x154   :  { %v1755_v16 = vpop.f32.mrb[46].mxu0  ;;  %v3253_v31 = vadd.f32 %v1754_v11, %v757_v17  ;;  %v759_v19 = vpop.f32.mrb[45].mxu1 }
 0x155   :  { %v1756_v38 = vpop.f32.mrb[47].mxu0 }
 0x156   :  { %v1757_v37 = vadd.f32 %v1756_v38, %v1755_v16  ;;  %v3425_v24 = vmax.f32 %v3209_v5, %v3253_v31 }
 0x157   :  { %v762_v51 = vpop.f32.mrb[46].mxu1 }
 0x158   :  { %v1758_v46 = vpop.f32.mrb[48].mxu0  ;;  %v3257_v58 = vadd.f32 %v1757_v37, %v762_v51  ;;  %v764_v25 = vpop.f32.mrb[47].mxu1 }
 0x159   :  { %v1759_v57 = vpop.f32.mrb[49].mxu0 }
 0x15a   :  { %v1760_v7 = vadd.f32 %v1759_v57, %v1758_v46  ;;  %v3426_v5 = vmax.f32 %v3211_v30, %v3257_v58 }
 0x15b   :  { %v767_v15 = vpop.f32.mrb[48].mxu1 }
 0x15c   :  { %v1761_v32 = vpop.f32.mrb[50].mxu0  ;;  %v3261_v0 = vadd.f32 %v1760_v7, %v767_v15  ;;  %v769_v14 = vpop.f32.mrb[49].mxu1 }
 0x15d   :  { %v1762_v21 = vpop.f32.mrb[51].mxu0 }
 0x15e   :  { %v1763_v36 = vadd.f32 %v1762_v21, %v1761_v32 }
 0x15f   :  { %v772_v42 = vpop.f32.mrb[50].mxu1 }
 0x160   :  { %v1796_v43 = vpop.f32.mrb[52].mxu0  ;;  %v3265_v49 = vadd.f32 %v1763_v36, %v772_v42  ;;  %v774_v50 = vpop.f32.mrb[51].mxu1 }
 0x161   :  { %v1797_v53 = vpop.f32.mrb[53].mxu0 }
 0x162   :  { %v1798_v56 = vadd.f32 %v1797_v53, %v1796_v43 }
 0x163   :  { %v1063_v63 = vpop.f32.mrb[52].mxu1 }
 0x164   :  { %v1799_v2 = vpop.f32.mrb[54].mxu0  ;;  %v3269_v10 = vadd.f32 %v1798_v56, %v1063_v63  ;;  %v1065_v13 = vpop.f32.mrb[53].mxu1 }
 0x165   :  { %v1800_v11 = vpop.f32.mrb[55].mxu0 }
 0x166   :  { %v1801_v17 = vadd.f32 %v1800_v11, %v1799_v2 }
 0x167   :  { %v1068_v16 = vpop.f32.mrb[54].mxu1 }
 0x168   :  { %v1802_v19 = vpop.f32.mrb[56].mxu0  ;;  %v3271_v38 = vadd.f32 %v1801_v17, %v1068_v16  ;;  %v1070_v37 = vpop.f32.mrb[55].mxu1 }
 0x169   :  { %v1803_v51 = vpop.f32.mrb[57].mxu0 }
 0x16a   :  { %v1804_v46 = vadd.f32 %v1803_v51, %v1802_v19 }
 0x16b   :  { %v1073_v25 = vpop.f32.mrb[56].mxu1 }
 0x16c   :  { %v1805_v57 = vpop.f32.mrb[58].mxu0  ;;  %v3273_v7 = vadd.f32 %v1804_v46, %v1073_v25  ;;  %v1075_v15 = vpop.f32.mrb[57].mxu1 }
 0x16d   :  { %v1806_v32 = vpop.f32.mrb[59].mxu0 }
 0x16e   :  { %v1807_v14 = vadd.f32 %v1806_v32, %v1805_v57 }
 0x16f   :  { %v1078_v21 = vpop.f32.mrb[58].mxu1 }
 0x170   :  { %v1808_v36 = vpop.f32.mrb[60].mxu0  ;;  %v3275_v42 = vadd.f32 %v1807_v14, %v1078_v21  ;;  %v1080_v43 = vpop.f32.mrb[59].mxu1 }
 0x171   :  { %v1809_v50 = vpop.f32.mrb[61].mxu0 }
 0x172   :  { %v1810_v53 = vadd.f32 %v1809_v50, %v1808_v36 }
 0x173   :  { %v1083_v56 = vpop.f32.mrb[60].mxu1 }
 0x174   :  { %v1811_v63 = vpop.f32.mrb[62].mxu0  ;;  %v3277_v2 = vadd.f32 %v1810_v53, %v1083_v56  ;;  %v1085_v13 = vpop.f32.mrb[61].mxu1 }
 0x175   :  { %v1812_v11 = vpop.f32.mrb[63].mxu0 }
 0x176   :  { %v1813_v17 = vadd.f32 %v1812_v11, %v1811_v63 }
 0x177   :  { %v1088_v16 = vpop.f32.mrb[62].mxu1 }
 0x178   :  { %v1814_v19 = vpop.f32.mrb[64].mxu0  ;;  %v3279_v37 = vadd.f32 %v1813_v17, %v1088_v16  ;;  %v1090_v51 = vpop.f32.mrb[63].mxu1 }
 0x179   :  { %v1815_v46 = vpop.f32.mrb[65].mxu0 }
 0x17a   :  { %v1816_v25 = vadd.f32 %v1815_v46, %v1814_v19 }
 0x17b   :  { %v1093_v57 = vpop.f32.mrb[64].mxu1 }
 0x17c   :  { %v1817_v15 = vpop.f32.mrb[66].mxu0  ;;  %v3281_v32 = vadd.f32 %v1816_v25, %v1093_v57  ;;  %v1095_v14 = vpop.f32.mrb[65].mxu1 }
 0x17d   :  { %v1818_v21 = vpop.f32.mrb[67].mxu0 }
 0x17e   :  { %v1819_v36 = vadd.f32 %v1818_v21, %v1817_v15 }
 0x17f   :  { %v1098_v43 = vpop.f32.mrb[66].mxu1 }
 0x180   :  { %v1820_v50 = vpop.f32.mrb[68].mxu0  ;;  %v3283_v53 = vadd.f32 %v1819_v36, %v1098_v43  ;;  %v1100_v56 = vpop.f32.mrb[67].mxu1 }
 0x181   :  { %v1821_v63 = vpop.f32.mrb[69].mxu0 }
 0x182   :  { %v1822_v13 = vadd.f32 %v1821_v63, %v1820_v50 }
 0x183   :  { %v1103_v11 = vpop.f32.mrb[68].mxu1 }
 0x184   :  { %v1823_v17 = vpop.f32.mrb[70].mxu0  ;;  %v3285_v16 = vadd.f32 %v1822_v13, %v1103_v11  ;;  %v1105_v51 = vpop.f32.mrb[69].mxu1 }
 0x185   :  { %v1824_v19 = vpop.f32.mrb[71].mxu0 }
 0x186   :  { %v1825_v46 = vadd.f32 %v1824_v19, %v1823_v17 }
 0x187   :  { %v1108_v59 = vpop.f32.mrb[70].mxu1 }
 0x188   :  { %v1826_v25 = vpop.f32.mrb[72].mxu0  ;;  %v3287_v57 = vadd.f32 %v1825_v46, %v1108_v59  ;;  %v1110_v14 = vpop.f32.mrb[71].mxu1 }
 0x189   :  { %v1827_v15 = vpop.f32.mrb[73].mxu0 }
 0x18a   :  { %v1828_v21 = vadd.f32 %v1827_v15, %v1826_v25 }
 0x18b   :  { %v1113_v41 = vpop.f32.mrb[72].mxu1 }
 0x18c   :  { %v1829_v36 = vpop.f32.mrb[74].mxu0  ;;  %v3289_v43 = vadd.f32 %v1828_v21, %v1113_v41  ;;  %v1115_v56 = vpop.f32.mrb[73].mxu1 }
 0x18d   :  { %v1830_v50 = vpop.f32.mrb[75].mxu0 }
 0x18e   :  { %v1831_v63 = vadd.f32 %v1830_v50, %v1829_v36 }
 0x18f   :  { %v1118_v3 = vpop.f32.mrb[74].mxu1 }
 0x190   :  { %v1832_v13 = vpop.f32.mrb[76].mxu0  ;;  %v3291_v11 = vadd.f32 %v1831_v63, %v1118_v3  ;;  %v1120_v51 = vpop.f32.mrb[75].mxu1  ;;  %v3299_v3 = vld [vmem:[%s3421_s5] ss:$0 sm:$0xff] }
 0x191   :  { %v1833_v17 = vpop.f32.mrb[77].mxu0 }
 0x192   :  { %v1834_v19 = vadd.f32 %v1833_v17, %v1832_v13 }
 0x193   :  { %v1123_v47 = vpop.f32.mrb[76].mxu1 }
 0x194   :  { %v1867_v59 = vpop.f32.mrb[78].mxu0  ;;  %v3293_v46 = vadd.f32 %v1834_v19, %v1123_v47  ;;  %v1125_v14 = vpop.f32.mrb[77].mxu1 }
 0x195   :  { %v1868_v25 = vpop.f32.mrb[79].mxu0 }
 0x196   :  { %v1869_v15 = vadd.f32 %v1868_v25, %v1867_v59 }
 0x197   :  { %v1414_v12 = vpop.f32.mrb[78].mxu1 }
 0x198   :  { %v1870_v41 = vpop.f32.mrb[80].mxu0  ;;  %v1415_v21 = vadd.f32 %v1869_v15, %v1414_v12  ;;  %v1416_v56 = vpop.f32.mrb[79].mxu1 }
 0x199   :  { %v1871_v61 = vpop.f32.mrb[81].mxu0 }
 0x19a   :  { %v1872_v36 = vadd.f32 %v1871_v61, %v1870_v41  ;;  %v1491_v50 = vmax.f32 %v3269_v10, %v1415_v21 }
 0x19b   :  { %v1419_v63 = vpop.f32.mrb[80].mxu1 }
 0x19c   :  { %v1873_v13 = vpop.f32.mrb[82].mxu0  ;;  %v1504_v47 = vmax.f32 %v1478_v62, %v1491_v50  ;;  %v1420_v51 = vadd.f32 %v1872_v36, %v1419_v63  ;;  %v1421_v17 = vpop.f32.mrb[81].mxu1 }
 0x19d   :  { %v1874_v19 = vpop.f32.mrb[83].mxu0 }
 0x19e   :  { %v1875_v12 = vadd.f32 %v1874_v19, %v1873_v13  ;;  %v1524_v59 = vadd.f32 %v3299_v3, %v1504_v47  ;;  %v1492_v61 = vmax.f32 %v3271_v38, %v1420_v51 }
 0x19f   :  { %v1424_v10 = vpop.f32.mrb[82].mxu1 }
 0x1a0   :  { %v1876_v14 = vpop.f32.mrb[84].mxu0  ;;  %v1537_v25 = vmax.f32 %v1524_v59, 0.0  ;;  %v1505_v15 = vmax.f32 %v1479_v18, %v1492_v61  ;;  %v1425_v41 = vadd.f32 %v1875_v12, %v1424_v10  ;;  %v1426_v21 = vpop.f32.mrb[83].mxu1 }
 0x1a1   :  { %v1877_v33 = vpop.f32.mrb[85].mxu0 }
 0x1a2   :  { %v1878_v54 = vadd.f32 %v1877_v33, %v1876_v14  ;;  %1551 = vst.msk [vmem:[%s3422_s6] sm:$0xff] %vm1550_vm1, %v1537_v25  ;;  %v1525_v62 = vadd.f32 %v3299_v3, %v1505_v15  ;;  %v1493_v38 = vmax.f32 %v3273_v7, %v1425_v41 }
 0x1a3   :  { %v1429_v56 = vpop.f32.mrb[84].mxu1 }
 0x1a4   :  { %v1879_v36 = vpop.f32.mrb[86].mxu0  ;;  %v1538_v50 = vmax.f32 %v1525_v62, 0.0  ;;  %v1506_v4 = vmax.f32 %v1480_v28, %v1493_v38  ;;  %v1430_v9 = vadd.f32 %v1878_v54, %v1429_v56  ;;  %v1431_v18 = vpop.f32.mrb[85].mxu1 }
 0x1a5   :  { %v1880_v63 = vpop.f32.mrb[87].mxu0 }
 0x1a6   :  { %v1881_v13 = vadd.f32 %v1880_v63, %v1879_v36  ;;  %1552 = vst.msk [vmem:[%s3422_s6 + $0x8] sm:$0xff] %vm1550_vm1, %v1538_v50  ;;  %v1526_v47 = vadd.f32 %v3299_v3, %v1506_v4  ;;  %v1494_v7 = vmax.f32 %v3275_v42, %v1430_v9 }
 0x1a7   :  { %v1434_v51 = vpop.f32.mrb[86].mxu1 }
 0x1a8   :  { %v1882_v17 = vpop.f32.mrb[88].mxu0  ;;  %v1539_v19 = vmax.f32 %v1526_v47, 0.0  ;;  %v1507_v48 = vmax.f32 %v1481_v23, %v1494_v7  ;;  %v1435_v22 = vadd.f32 %v1881_v13, %v1434_v51  ;;  %v1436_v28 = vpop.f32.mrb[87].mxu1 }
 0x1a9   :  { %v1883_v12 = vpop.f32.mrb[89].mxu0 }
 0x1aa   :  { %v1884_v59 = vadd.f32 %v1883_v12, %v1882_v17  ;;  %1553 = vst.msk [vmem:[%s3422_s6 + $0x10] sm:$0xff] %vm1550_vm1, %v1539_v19  ;;  %v1527_v61 = vadd.f32 %v3299_v3, %v1507_v48  ;;  %v1495_v42 = vmax.f32 %v3277_v2, %v1435_v22 }
 0x1ab   :  { %v1439_v10 = vpop.f32.mrb[88].mxu1 }
 0x1ac   :  { %v1885_v14 = vpop.f32.mrb[90].mxu0  ;;  %v1540_v25 = vmax.f32 %v1527_v61, 0.0  ;;  %v1508_v55 = vmax.f32 %v1482_v26, %v1495_v42  ;;  %v1440_v20 = vadd.f32 %v1884_v59, %v1439_v10  ;;  %v1441_v23 = vpop.f32.mrb[89].mxu1 }
 0x1ad   :  { %v1886_v15 = vpop.f32.mrb[91].mxu0 }
 0x1ae   :  { %v1887_v41 = vadd.f32 %v1886_v15, %v1885_v14  ;;  %1554 = vst.msk [vmem:[%s3422_s6 + $0x18] sm:$0xff] %vm1550_vm1, %v1540_v25  ;;  %v1528_v21 = vadd.f32 %v3299_v3, %v1508_v55  ;;  %v1496_v2 = vmax.f32 %v3279_v37, %v1440_v20 }
 0x1af   :  { %v1444_v33 = vpop.f32.mrb[90].mxu1 }
 0x1b0   :  { %v1888_v54 = vpop.f32.mrb[92].mxu0  ;;  %v1541_v62 = vmax.f32 %v1528_v21, 0.0  ;;  %v1509_v1 = vmax.f32 %v1483_v34, %v1496_v2  ;;  %v1445_v60 = vadd.f32 %v1887_v41, %v1444_v33  ;;  %v1446_v26 = vpop.f32.mrb[91].mxu1 }
 0x1b1   :  { %v1889_v38 = vpop.f32.mrb[93].mxu0 }
 0x1b2   :  { %v1890_v56 = vadd.f32 %v1889_v38, %v1888_v54  ;;  %1555 = vst.msk [vmem:[%s3422_s6 + $0x20] sm:$0xff] %vm1550_vm1, %v1541_v62  ;;  %v1529_v36 = vadd.f32 %v3299_v3, %v1509_v1  ;;  %v1497_v37 = vmax.f32 %v3281_v32, %v1445_v60 }
 0x1b3   :  { %v1449_v50 = vpop.f32.mrb[92].mxu1 }
 0x1b4   :  { %v1891_v4 = vpop.f32.mrb[94].mxu0  ;;  %v1542_v9 = vmax.f32 %v1529_v36, 0.0  ;;  %v1510_v8 = vmax.f32 %v1484_v45, %v1497_v37  ;;  %v1450_v27 = vadd.f32 %v1890_v56, %v1449_v50  ;;  %v1451_v34 = vpop.f32.mrb[93].mxu1 }
 0x1b5   :  { %v1892_v18 = vpop.f32.mrb[95].mxu0 }
 0x1b6   :  { %v1893_v63 = vadd.f32 %v1892_v18, %v1891_v4  ;;  %1556 = vst.msk [vmem:[%s3422_s6 + $0x28] sm:$0xff] %vm1550_vm1, %v1542_v9  ;;  %v1530_v13 = vadd.f32 %v3299_v3, %v1510_v8  ;;  %v1498_v32 = vmax.f32 %v3283_v53, %v1450_v27  ;;  %v3427_v4 = vmax.f32 %v3213_v35, %v3261_v0 }
 0x1b7   :  { %v1454_v47 = vpop.f32.mrb[94].mxu1 }
 0x1b8   :  { %v1894_v7 = vpop.f32.mrb[96].mxu0  ;;  %v1543_v51 = vmax.f32 %v1530_v13, 0.0  ;;  %v1511_v39 = vmax.f32 %v3423_v29, %v1498_v32  ;;  %v1455_v45 = vadd.f32 %v1893_v63, %v1454_v47  ;;  %v1456_v17 = vpop.f32.mrb[95].mxu1 }
 0x1b9   :  { %v1895_v19 = vpop.f32.mrb[97].mxu0 }
 0x1ba   :  { %v1896_v48 = vadd.f32 %v1895_v19, %v1894_v7  ;;  %1557 = vst.msk [vmem:[%s3422_s6 + $0x30] sm:$0xff] %vm1550_vm1, %v1543_v51  ;;  %v1531_v22 = vadd.f32 %v3299_v3, %v1511_v39  ;;  %v1499_v53 = vmax.f32 %v3285_v16, %v1455_v45 }
 0x1bb   :  { %v1459_v28 = vpop.f32.mrb[96].mxu1 }
 0x1bc   :  { %v1897_v12 = vpop.f32.mrb[98].mxu0  ;;  %v1544_v59 = vmax.f32 %v1531_v22, 0.0  ;;  %v1512_v52 = vmax.f32 %v3424_v40, %v1499_v53  ;;  %v1460_v61 = vadd.f32 %v1896_v48, %v1459_v28  ;;  %v1461_v42 = vpop.f32.mrb[97].mxu1 }
 0x1bd   :  { %v1898_v10 = vpop.f32.mrb[99].mxu0 }
 0x1be   :  { %v1899_v14 = vadd.f32 %v1898_v10, %v1897_v12  ;;  %1558 = vst.msk [vmem:[%s3422_s6 + $0x38] sm:$0xff] %vm1550_vm1, %v1544_v59  ;;  %v1532_v25 = vadd.f32 %v3299_v3, %v1512_v52  ;;  %v1500_v16 = vmax.f32 %v3287_v57, %v1460_v61 }
 0x1bf   :  { %v1464_v55 = vpop.f32.mrb[98].mxu1 }
 0x1c0   :  { %v1900_v20 = vpop.f32.mrb[100].mxu0  ;;  %v1545_v23 = vmax.f32 %v1532_v25, 0.0  ;;  %v1513_v6 = vmax.f32 %v3425_v24, %v1500_v16  ;;  %v1465_v15 = vadd.f32 %v1899_v14, %v1464_v55  ;;  %v1466_v41 = vpop.f32.mrb[99].mxu1 }
 0x1c1   :  { %v1901_v21 = vpop.f32.mrb[101].mxu0 }
 0x1c2   :  { %v1902_v2 = vadd.f32 %v1901_v21, %v1900_v20  ;;  %1559 = vst.msk [vmem:[%s3422_s6 + $0x40] sm:$0xff] %vm1550_vm1, %v1545_v23  ;;  %v1533_v33 = vadd.f32 %v3299_v3, %v1513_v6  ;;  %v1501_v57 = vmax.f32 %v3289_v43, %v1465_v15 }
 0x1c3   :  { %v1469_v54 = vpop.f32.mrb[100].mxu1 }
 0x1c4   :  { %v1903_v62 = vpop.f32.mrb[102].mxu0  ;;  %v1546_v1 = vmax.f32 %v1533_v33, 0.0  ;;  %v1514_v31 = vmax.f32 %v3426_v5, %v1501_v57  ;;  %v1470_v60 = vadd.f32 %v1902_v2, %v1469_v54  ;;  %v1471_v26 = vpop.f32.mrb[101].mxu1 }
 0x1c5   :  { %v1904_v38 = vpop.f32.mrb[103].mxu0 }
 0x1c6   :  { %v1905_v56 = vadd.f32 %v1904_v38, %v1903_v62  ;;  %1560 = vst.msk [vmem:[%s3422_s6 + $0x48] sm:$0xff] %vm1550_vm1, %v1546_v1  ;;  %v1534_v36 = vadd.f32 %v3299_v3, %v1514_v31  ;;  %v1502_v43 = vmax.f32 %v3291_v11, %v1470_v60  ;;  %v3428_v11 = vmax.f32 %v3215_v44, %v3265_v49 }
 0x1c7   :  { %v1474_v37 = vpop.f32.mrb[102].mxu1 }
 0x1c8   :  { %v1547_v50 = vmax.f32 %v1534_v36, 0.0  ;;  %v1515_v30 = vmax.f32 %v3427_v4, %v1502_v43  ;;  %v1475_v58 = vadd.f32 %v1905_v56, %v1474_v37  ;;  %v1476_v9 = vpop.f32.mrb[103].mxu1 }
 0x1ca   :  { %1561 = vst.msk [vmem:[%s3422_s6 + $0x50] sm:$0xff] %vm1550_vm1, %v1547_v50  ;;  %v1535_v8 = vadd.f32 %v3299_v3, %v1515_v30  ;;  %v1503_v27 = vmax.f32 %v3293_v46, %v1475_v58 }
 0x1cc   :  { %v1548_v34 = vmax.f32 %v1535_v8, 0.0  ;;  %v1516_v18 = vmax.f32 %v3428_v11, %v1503_v27 }
 0x1ce   :  { %1562 = vst.msk [vmem:[%s3422_s6 + $0x58] sm:$0xff] %vm1550_vm1, %v1548_v34  ;;  %v1536_v35 = vadd.f32 %v3299_v3, %v1516_v18 }
 0x1d0   :  { %v1549_v0 = vmax.f32 %v1536_v35, 0.0 }
 0x1d2   :  { %1564 = vst.msk [vmem:[%s3422_s6 + $0x60] sm:$0x3] %vm1563_vm2, %v1549_v0 }

// kernel: cnn_forward.5
= control target key start
LH: loop header
LB: loop body
LE: loop exit
PB: predicated region body
PF: predicated region fallthrough
CT: control target
= control target key end

     0   :  { %v1263_v43 = vmov 1983009808   ;;  %v230_v45 = vlaneseq  ;;  %s1931_s0 = inlined_call_operand.vmem [shape: f32[2,1568], index: 0, kind: input, shape index: {}]   ;;  %s1932_s1 = inlined_call_operand.vmem [shape: f32[1568,128], index: 1, kind: input, shape index: {}]   ;;  %s1933_s2 = inlined_call_operand.vmem [shape: f32[1,128], index: 2, kind: input, shape index: {}]   ;;  %s1934_s3 = inlined_call_operand.hbm [shape: f32[2,128], index: 3, kind: output, shape index: {}]  }
   0x1   :  { %v35_v0 = vld [vmem:[%s1932_s1 + $0x80] sm:$0xff]  ;;  %v36_v1 = vld [vmem:[%s1932_s1 + $0x88] sm:$0xff]  ;;  %v37_v11 = vld [vmem:[%s1932_s1 + $0x90] sm:$0xff]  ;;  %v228_v44 = vunpack.c.l.s4 %v1263_v43 }
   0x2   :  { %v19_v2 = vld [vmem:[%s1932_s1] sm:$0xff]  ;;  %v1033_v3 = vpack.c.bf16 %v36_v1, %v35_v0  ;;  %v20_v4 = vld [vmem:[%s1932_s1 + $0x8] sm:$0xff]  ;;  %v38_v13 = vld [vmem:[%s1932_s1 + $0x98] sm:$0xff]  ;;  %v231_v60 = vshrl.u32 %v230_v45, 7 }
   0x3   :  { %v67_v5 = vld [vmem:[%s1932_s1 + $0x180] sm:$0xff]  ;;  %v68_v6 = vld [vmem:[%s1932_s1 + $0x188] sm:$0xff]  ;;  %v1035_v7 = vpack.c.bf16 %v20_v4, %v19_v2  ;;  %v21_v14 = vld [vmem:[%s1932_s1 + $0x10] sm:$0xff]  ;;  %v1037_v16 = vpack.c.bf16 %v38_v13, %v37_v11  ;;  %v229_v59 = vunpack.c.0.s8 %v228_v44 }
   0x4   :  { %v1065_v8 = vpack.c.bf16 %v68_v6, %v67_v5  ;;  %v51_v9 = vld [vmem:[%s1932_s1 + $0x100] sm:$0xff]  ;;  %v52_v10 = vld [vmem:[%s1932_s1 + $0x108] sm:$0xff]  ;;  %1034 = vmatprep.subr.bf16.mxu0 %v1033_v3  ;;  %v22_v15 = vld [vmem:[%s1932_s1 + $0x18] sm:$0xff] }
   0x5   :  { %v1067_v12 = vpack.c.bf16 %v52_v10, %v51_v9  ;;  %1036 = vmatpush3.bf16.msra.mxu0 %v1035_v7  ;;  %v1039_v17 = vpack.c.bf16 %v22_v15, %v21_v14  ;;  %v69_v18 = vld [vmem:[%s1932_s1 + $0x190] sm:$0xff]  ;;  %v70_v19 = vld [vmem:[%s1932_s1 + $0x198] sm:$0xff]  ;;  %v39_v23 = vld [vmem:[%s1932_s1 + $0xa0] sm:$0xff]  ;;  %v1432_v10 = vsub.s32 %v229_v59, %v231_v60 }
   0x6   :  { %1066 = vmatprep.subr.bf16.mxu1 %v1065_v8  ;;  %v53_v20 = vld [vmem:[%s1932_s1 + $0x110] sm:$0xff]  ;;  %v1069_v21 = vpack.c.bf16 %v70_v19, %v69_v18  ;;  %v54_v22 = vld [vmem:[%s1932_s1 + $0x118] sm:$0xff]  ;;  %v40_v24 = vld [vmem:[%s1932_s1 + $0xa8] sm:$0xff]  ;;  %1038 = vmatprep.subr.bf16.mxu0 %v1037_v16 }
   0x7   :  { %1068 = vmatpush3.bf16.msra.mxu1 %v1067_v12  ;;  %v1071_v25 = vpack.c.bf16 %v54_v22, %v53_v20  ;;  %v1041_v26 = vpack.c.bf16 %v40_v24, %v39_v23  ;;  %v23_v27 = vld [vmem:[%s1932_s1 + $0x20] sm:$0xff]  ;;  %v24_v28 = vld [vmem:[%s1932_s1 + $0x28] sm:$0xff]  ;;  %v41_v35 = vld [vmem:[%s1932_s1 + $0xb0] sm:$0xff] }
   0x8   :  { %v71_v29 = vld [vmem:[%s1932_s1 + $0x1a0] sm:$0xff]  ;;  %1070 = vmatprep.subr.bf16.mxu1 %v1069_v21  ;;  %v72_v30 = vld [vmem:[%s1932_s1 + $0x1a8] sm:$0xff]  ;;  %v1043_v33 = vpack.c.bf16 %v24_v28, %v23_v27  ;;  %v42_v36 = vld [vmem:[%s1932_s1 + $0xb8] sm:$0xff] }
   0x9   :  { %v55_v31 = vld [vmem:[%s1932_s1 + $0x120] sm:$0xff]  ;;  %v56_v32 = vld [vmem:[%s1932_s1 + $0x128] sm:$0xff]  ;;  %1040 = vmatpush3.bf16.msra.mxu0 %v1039_v17  ;;  %v1073_v34 = vpack.c.bf16 %v72_v30, %v71_v29  ;;  %v25_v37 = vld [vmem:[%s1932_s1 + $0x30] sm:$0xff]  ;;  %v1045_v39 = vpack.c.bf16 %v42_v36, %v41_v35 }
   0xa   :  { %1042 = vmatprep.subr.bf16.mxu0 %v1041_v26  ;;  %v1075_v38 = vpack.c.bf16 %v56_v32, %v55_v31  ;;  %v26_v40 = vld [vmem:[%s1932_s1 + $0x38] sm:$0xff]  ;;  %v73_v41 = vld [vmem:[%s1932_s1 + $0x1b0] sm:$0xff]  ;;  %v43_v49 = vld [vmem:[%s1932_s1 + $0xc0] sm:$0xff] }
   0xb   :  { %1072 = vmatpush3.bf16.msra.mxu1 %v1071_v25  ;;  %v74_v42 = vld [vmem:[%s1932_s1 + $0x1b8] sm:$0xff]  ;;  %v57_v47 = vld [vmem:[%s1932_s1 + $0x130] sm:$0xff]  ;;  %v44_v50 = vld [vmem:[%s1932_s1 + $0xc8] sm:$0xff]  ;;  %v1047_v51 = vpack.c.bf16 %v26_v40, %v25_v37 }
   0xc   :  { %1074 = vmatprep.subr.bf16.mxu1 %v1073_v34  ;;  %v1077_v46 = vpack.c.bf16 %v74_v42, %v73_v41  ;;  %v58_v48 = vld [vmem:[%s1932_s1 + $0x138] sm:$0xff]  ;;  %v75_v52 = vld [vmem:[%s1932_s1 + $0x1c0] sm:$0xff]  ;;  %v76_v53 = vld [vmem:[%s1932_s1 + $0x1c8] sm:$0xff]  ;;  %v1049_v55 = vpack.c.bf16 %v44_v50, %v43_v49 }
   0xd   :  { %1044 = vmatpush3.bf16.msra.mxu0 %v1043_v33  ;;  %v1079_v54 = vpack.c.bf16 %v58_v48, %v57_v47  ;;  %v27_v56 = vld [vmem:[%s1932_s1 + $0x40] sm:$0xff]  ;;  %v28_v57 = vld [vmem:[%s1932_s1 + $0x48] sm:$0xff]  ;;  %v1081_v61 = vpack.c.bf16 %v76_v53, %v75_v52  ;;  %v45_v63 = vld [vmem:[%s1932_s1 + $0xd0] sm:$0xff] }
   0xe   :  { %1046 = vmatprep.subr.bf16.mxu0 %v1045_v39  ;;  %v59_v58 = vld [vmem:[%s1932_s1 + $0x140] sm:$0xff]  ;;  %v60_v62 = vld [vmem:[%s1932_s1 + $0x148] sm:$0xff]  ;;  %v46_v0 = vld [vmem:[%s1932_s1 + $0xd8] sm:$0xff]  ;;  %v1051_v3 = vpack.c.bf16 %v28_v57, %v27_v56 }
   0xf   :  { %1076 = vmatpush3.bf16.msra.mxu1 %v1075_v38  ;;  %v77_v1 = vld [vmem:[%s1932_s1 + $0x1d0] sm:$0xff]  ;;  %v78_v2 = vld [vmem:[%s1932_s1 + $0x1d8] sm:$0xff]  ;;  %v1083_v5 = vpack.c.bf16 %v60_v62, %v59_v58  ;;  %v1053_v6 = vpack.c.bf16 %v46_v0, %v45_v63  ;;  %v47_v12 = vld [vmem:[%s1932_s1 + $0xe0] sm:$0xff] }
  0x10   :  { %1078 = vmatprep.subr.bf16.mxu1 %v1077_v46  ;;  %v29_v4 = vld [vmem:[%s1932_s1 + $0x50] sm:$0xff]  ;;  %v30_v7 = vld [vmem:[%s1932_s1 + $0x58] sm:$0xff]  ;;  %v1085_v11 = vpack.c.bf16 %v78_v2, %v77_v1  ;;  %v48_v13 = vld [vmem:[%s1932_s1 + $0xe8] sm:$0xff] }
  0x11   :  { %1048 = vmatpush3.bf16.msra.mxu0 %v1047_v51  ;;  %v61_v8 = vld [vmem:[%s1932_s1 + $0x150] sm:$0xff]  ;;  %v62_v9 = vld [vmem:[%s1932_s1 + $0x158] sm:$0xff]  ;;  %v79_v14 = vld [vmem:[%s1932_s1 + $0x1e0] sm:$0xff]  ;;  %v1055_v16 = vpack.c.bf16 %v30_v7, %v29_v4  ;;  %v1057_v19 = vpack.c.bf16 %v48_v13, %v47_v12 }
  0x12   :  { %1050 = vmatprep.subr.bf16.mxu0 %v1049_v55  ;;  %v80_v15 = vld [vmem:[%s1932_s1 + $0x1e8] sm:$0xff]  ;;  %v1087_v17 = vpack.c.bf16 %v62_v9, %v61_v8  ;;  %v15_v18 = vld [vmem:[%s1931_s0] sm:$0xff]  ;;  %v49_v27 = vld [vmem:[%s1932_s1 + $0xf0] sm:$0xff] }
  0x13   :  { %1080 = vmatpush3.bf16.msra.mxu1 %v1079_v54  ;;  %v31_v20 = vld [vmem:[%s1932_s1 + $0x60] sm:$0xff]  ;;  %v32_v21 = vld [vmem:[%s1932_s1 + $0x68] sm:$0xff]  ;;  %v233_v23 = vrot.slane %v15_v18, %v1432_v10  ;;  %v226_v24 = vcombine.high %v15_v18, %v15_v18  ;;  %v1089_v25 = vpack.c.bf16 %v80_v15, %v79_v14  ;;  %v50_v28 = vld [vmem:[%s1932_s1 + $0xf8] sm:$0xff] }
  0x14   :  { %1082 = vmatprep.subr.bf16.mxu1 %v1081_v61  ;;  %v63_v22 = vld [vmem:[%s1932_s1 + $0x160] sm:$0xff]  ;;  %v64_v26 = vld [vmem:[%s1932_s1 + $0x168] sm:$0xff]  ;;  %v81_v29 = vld [vmem:[%s1932_s1 + $0x1f0] sm:$0xff]  ;;  %v1059_v33 = vpack.c.bf16 %v32_v21, %v31_v20  ;;  %v1061_v35 = vpack.c.bf16 %v50_v28, %v49_v27 }
  0x15   :  { %1052 = vmatpush3.bf16.msra.mxu0 %v1051_v3  ;;  %v82_v30 = vld [vmem:[%s1932_s1 + $0x1f8] sm:$0xff]  ;;  %v241_v31 = vcombine.high %v233_v23, %v233_v23  ;;  %v240_v32 = vrot.slane %v226_v24, %v1432_v10  ;;  %v1091_v34 = vpack.c.bf16 %v64_v26, %v63_v22  ;;  %v33_v36 = vld [vmem:[%s1932_s1 + $0x70] sm:$0xff]  ;;  %v99_v42 = vld [vmem:[%s1932_s1 + $0x280] sm:$0xff] }
  0x16   :  { %1054 = vmatprep.subr.bf16.mxu0 %v1053_v6  ;;  %v34_v37 = vld [vmem:[%s1932_s1 + $0x78] sm:$0xff]  ;;  %v65_v38 = vld [vmem:[%s1932_s1 + $0x170] sm:$0xff]  ;;  %v1093_v40 = vpack.c.bf16 %v82_v30, %v81_v29  ;;  %v100_v43 = vld [vmem:[%s1932_s1 + $0x288] sm:$0xff] }
  0x17   :  { %1084 = vmatpush3.bf16.msra.mxu1 %v1083_v5  ;;  %v242_v39 = vcombine.high %v240_v32, %v240_v32  ;;  %363 = vmatprep.mubr.f32.mxu0 %v241_v31  ;;  %v66_v41 = vld [vmem:[%s1932_s1 + $0x178] sm:$0xff]  ;;  %v131_v44 = vld [vmem:[%s1932_s1 + $0x380] sm:$0xff]  ;;  %v132_v45 = vld [vmem:[%s1932_s1 + $0x388] sm:$0xff]  ;;  %v1063_v46 = vpack.c.bf16 %v34_v37, %v33_v36  ;;  %v1097_v48 = vpack.c.bf16 %v100_v43, %v99_v42 }
  0x18   :  { %1086 = vmatprep.subr.bf16.mxu1 %v1085_v11  ;;  %v1095_v47 = vpack.c.bf16 %v66_v41, %v65_v38  ;;  %v83_v49 = vld [vmem:[%s1932_s1 + $0x200] sm:$0xff]  ;;  %v84_v50 = vld [vmem:[%s1932_s1 + $0x208] sm:$0xff]  ;;  %v1129_v52 = vpack.c.bf16 %v132_v45, %v131_v44  ;;  %v101_v54 = vld [vmem:[%s1932_s1 + $0x290] sm:$0xff] }
  0x19   :  { %1056 = vmatpush3.bf16.msra.mxu0 %v1055_v16  ;;  %433 = vmatprep.mubr.f32.mxu1 %v242_v39  ;;  %v115_v51 = vld [vmem:[%s1932_s1 + $0x300] sm:$0xff]  ;;  %v116_v53 = vld [vmem:[%s1932_s1 + $0x308] sm:$0xff]  ;;  %v102_v55 = vld [vmem:[%s1932_s1 + $0x298] sm:$0xff]  ;;  %v1099_v58 = vpack.c.bf16 %v84_v50, %v83_v49 }
  0x1a   :  { %1058 = vmatprep.subr.bf16.mxu0 %v1057_v19  ;;  %v133_v56 = vld [vmem:[%s1932_s1 + $0x390] sm:$0xff]  ;;  %v134_v57 = vld [vmem:[%s1932_s1 + $0x398] sm:$0xff]  ;;  %v1131_v59 = vpack.c.bf16 %v116_v53, %v115_v51  ;;  %v1101_v60 = vpack.c.bf16 %v102_v55, %v101_v54  ;;  %v103_v2 = vld [vmem:[%s1932_s1 + $0x2a0] sm:$0xff] }
  0x1b   :  { %1088 = vmatpush3.bf16.msra.mxu1 %v1087_v17  ;;  %v85_v61 = vld [vmem:[%s1932_s1 + $0x210] sm:$0xff]  ;;  %v86_v62 = vld [vmem:[%s1932_s1 + $0x218] sm:$0xff]  ;;  %v1133_v0 = vpack.c.bf16 %v134_v57, %v133_v56  ;;  %v104_v3 = vld [vmem:[%s1932_s1 + $0x2a8] sm:$0xff] }
  0x1c   :  { %1090 = vmatprep.subr.bf16.mxu1 %v1089_v25  ;;  %v117_v63 = vld [vmem:[%s1932_s1 + $0x310] sm:$0xff]  ;;  %v118_v1 = vld [vmem:[%s1932_s1 + $0x318] sm:$0xff]  ;;  %v135_v4 = vld [vmem:[%s1932_s1 + $0x3a0] sm:$0xff]  ;;  %v1103_v6 = vpack.c.bf16 %v86_v62, %v85_v61  ;;  %v1105_v8 = vpack.c.bf16 %v104_v3, %v103_v2 }
  0x1d   :  { %1060 = vmatpush3.bf16.msra.mxu0 %v1059_v33  ;;  %v136_v5 = vld [vmem:[%s1932_s1 + $0x3a8] sm:$0xff]  ;;  %v1135_v7 = vpack.c.bf16 %v118_v1, %v117_v63  ;;  %v87_v9 = vld [vmem:[%s1932_s1 + $0x220] sm:$0xff]  ;;  %v105_v15 = vld [vmem:[%s1932_s1 + $0x2b0] sm:$0xff] }
  0x1e   :  { %1062 = vmatprep.subr.bf16.mxu0 %v1061_v35  ;;  %v88_v11 = vld [vmem:[%s1932_s1 + $0x228] sm:$0xff]  ;;  %v119_v12 = vld [vmem:[%s1932_s1 + $0x320] sm:$0xff]  ;;  %v1137_v13 = vpack.c.bf16 %v136_v5, %v135_v4  ;;  %v106_v16 = vld [vmem:[%s1932_s1 + $0x2b8] sm:$0xff] }
  0x1f   :  { %1092 = vmatpush3.bf16.msra.mxu1 %v1091_v34  ;;  %v120_v14 = vld [vmem:[%s1932_s1 + $0x328] sm:$0xff]  ;;  %v137_v17 = vld [vmem:[%s1932_s1 + $0x3b0] sm:$0xff]  ;;  %v138_v18 = vld [vmem:[%s1932_s1 + $0x3b8] sm:$0xff]  ;;  %v1107_v19 = vpack.c.bf16 %v88_v11, %v87_v9  ;;  %v1109_v22 = vpack.c.bf16 %v106_v16, %v105_v15 }
  0x20   :  { %1094 = vmatprep.subr.bf16.mxu1 %v1093_v40  ;;  %v89_v20 = vld [vmem:[%s1932_s1 + $0x230] sm:$0xff]  ;;  %v1139_v21 = vpack.c.bf16 %v120_v14, %v119_v12  ;;  %v122_v25 = vld [vmem:[%s1932_s1 + $0x338] sm:$0xff]  ;;  %v1141_v26 = vpack.c.bf16 %v138_v18, %v137_v17  ;;  %v107_v27 = vld [vmem:[%s1932_s1 + $0x2c0] sm:$0xff] }
  0x21   :  { %1064 = vmatpush3.bf16.msra.mxu0 %v1063_v46  ;;  %v121_v24 = vld [vmem:[%s1932_s1 + $0x330] sm:$0xff]  ;;  %v108_v28 = vld [vmem:[%s1932_s1 + $0x2c8] sm:$0xff]  ;;  %v139_v30 = vld [vmem:[%s1932_s1 + $0x3c0] sm:$0xff] }
  0x22   :  { %1098 = vmatprep.subr.bf16.mxu0 %v1097_v48  ;;  %v16_v29 = vld [vmem:[%s1931_s0 + $0x8] sm:$0xff]  ;;  %v1143_v35 = vpack.c.bf16 %v122_v25, %v121_v24  ;;  %v1113_v36 = vpack.c.bf16 %v108_v28, %v107_v27  ;;  %v91_v37 = vld [vmem:[%s1932_s1 + $0x240] sm:$0xff]  ;;  %v109_v44 = vld [vmem:[%s1932_s1 + $0x2d0] sm:$0xff] }
  0x23   :  { %1096 = vmatpush3.bf16.msra.mxu1 %v1095_v47  ;;  %v140_v31 = vld [vmem:[%s1932_s1 + $0x3c8] sm:$0xff]  ;;  %v243_v33 = vcombine.high %v16_v29, %v16_v29  ;;  %v123_v39 = vld [vmem:[%s1932_s1 + $0x340] sm:$0xff]  ;;  %v110_v45 = vld [vmem:[%s1932_s1 + $0x2d8] sm:$0xff] }
  0x24   :  { %1130 = vmatprep.subr.bf16.mxu1 %v1129_v52  ;;  %364 = vmatmul.mubr.f32.vlgmr.msra.gmra.mrb[0].mxu0 %v233_v23  ;;  %v90_v23 = vld [vmem:[%s1932_s1 + $0x238] sm:$0xff]  ;;  %v92_v38 = vld [vmem:[%s1932_s1 + $0x248] sm:$0xff]  ;;  %v1145_v42 = vpack.c.bf16 %v140_v31, %v139_v30  ;;  %v141_v46 = vld [vmem:[%s1932_s1 + $0x3d0] sm:$0xff]  ;;  %v1117_v51 = vpack.c.bf16 %v110_v45, %v109_v44 }
  0x25   :  { %1100 = vmatpush3.bf16.msra.mxu0 %v1099_v58  ;;  %v1111_v34 = vpack.c.bf16 %v90_v23, %v89_v20  ;;  %v1613_v41 = vrot.slane %v243_v33, %v1432_v10  ;;  %v124_v43 = vld [vmem:[%s1932_s1 + $0x348] sm:$0xff]  ;;  %v142_v47 = vld [vmem:[%s1932_s1 + $0x3d8] sm:$0xff]  ;;  %v1115_v49 = vpack.c.bf16 %v92_v38, %v91_v37  ;;  %v93_v52 = vld [vmem:[%s1932_s1 + $0x250] sm:$0xff] }
  0x26   :  { %434 = vmatmul.mubr.f32.vlgmr.msra.gmra.mrb[0].mxu1 %v240_v32  ;;  %1102 = vmatprep.subr.bf16.mxu0 %v1101_v60  ;;  %v1599_v32 = vrot.slane %v16_v29, %v1432_v10  ;;  %v1147_v50 = vpack.c.bf16 %v124_v43, %v123_v39  ;;  %v94_v53 = vld [vmem:[%s1932_s1 + $0x258] sm:$0xff]  ;;  %v125_v54 = vld [vmem:[%s1932_s1 + $0x350] sm:$0xff]  ;;  %v1149_v55 = vpack.c.bf16 %v142_v47, %v141_v46  ;;  %v111_v57 = vld [vmem:[%s1932_s1 + $0x2e0] sm:$0xff] }
  0x27   :  { %1132 = vmatpush3.bf16.msra.mxu1 %v1131_v59  ;;  %v259_v48 = vcombine.high %v1613_v41, %v1613_v41  ;;  %v126_v56 = vld [vmem:[%s1932_s1 + $0x358] sm:$0xff]  ;;  %v112_v58 = vld [vmem:[%s1932_s1 + $0x2e8] sm:$0xff]  ;;  %v143_v59 = vld [vmem:[%s1932_s1 + $0x3e0] sm:$0xff]  ;;  %v1119_v61 = vpack.c.bf16 %v94_v53, %v93_v52 }
  0x28   :  { %1134 = vmatprep.subr.bf16.mxu1 %v1133_v0  ;;  %v258_v40 = vcombine.high %v1599_v32, %v1599_v32  ;;  %v144_v60 = vld [vmem:[%s1932_s1 + $0x3e8] sm:$0xff]  ;;  %v1151_v62 = vpack.c.bf16 %v126_v56, %v125_v54  ;;  %v1121_v63 = vpack.c.bf16 %v112_v58, %v111_v57  ;;  %v95_v0 = vld [vmem:[%s1932_s1 + $0x260] sm:$0xff]  ;;  %v113_v5 = vld [vmem:[%s1932_s1 + $0x2f0] sm:$0xff] }
  0x29   :  { %1104 = vmatpush3.bf16.msra.mxu0 %v1103_v6  ;;  %573 = vmatprep.mubr.f32.mxu1 %v259_v48  ;;  %v96_v1 = vld [vmem:[%s1932_s1 + $0x268] sm:$0xff]  ;;  %v127_v2 = vld [vmem:[%s1932_s1 + $0x360] sm:$0xff]  ;;  %v1153_v3 = vpack.c.bf16 %v144_v60, %v143_v59  ;;  %v114_v6 = vld [vmem:[%s1932_s1 + $0x2f8] sm:$0xff] }
  0x2a   :  { %1106 = vmatprep.subr.bf16.mxu0 %v1105_v8  ;;  %503 = vmatprep.mubr.f32.mxu0 %v258_v40  ;;  %v128_v4 = vld [vmem:[%s1932_s1 + $0x368] sm:$0xff]  ;;  %v146_v8 = vld [vmem:[%s1932_s1 + $0x3f8] sm:$0xff]  ;;  %v1123_v9 = vpack.c.bf16 %v96_v1, %v95_v0  ;;  %v1125_v12 = vpack.c.bf16 %v114_v6, %v113_v5  ;;  %v129_v15 = vld [vmem:[%s1932_s1 + $0x370] sm:$0xff] }
  0x2b   :  { %1136 = vmatpush3.bf16.msra.mxu1 %v1135_v7  ;;  %v145_v7 = vld [vmem:[%s1932_s1 + $0x3f0] sm:$0xff]  ;;  %v1155_v11 = vpack.c.bf16 %v128_v4, %v127_v2  ;;  %v98_v14 = vld [vmem:[%s1932_s1 + $0x278] sm:$0xff]  ;;  %v163_v18 = vld [vmem:[%s1932_s1 + $0x480] sm:$0xff] }
  0x2c   :  { %1138 = vmatprep.subr.bf16.mxu1 %v1137_v13  ;;  %v97_v13 = vld [vmem:[%s1932_s1 + $0x270] sm:$0xff]  ;;  %v1157_v16 = vpack.c.bf16 %v146_v8, %v145_v7  ;;  %v130_v17 = vld [vmem:[%s1932_s1 + $0x378] sm:$0xff]  ;;  %v195_v20 = vld [vmem:[%s1932_s1 + $0x580] sm:$0xff] }
  0x2d   :  { %1108 = vmatpush3.bf16.msra.mxu0 %v1107_v19  ;;  %v164_v19 = vld [vmem:[%s1932_s1 + $0x488] sm:$0xff]  ;;  %v147_v23 = vld [vmem:[%s1932_s1 + $0x400] sm:$0xff]  ;;  %v1159_v24 = vpack.c.bf16 %v130_v17, %v129_v15  ;;  %v165_v30 = vld [vmem:[%s1932_s1 + $0x490] sm:$0xff] }
  0x2e   :  { %1110 = vmatprep.subr.bf16.mxu0 %v1109_v22  ;;  %v1127_v22 = vpack.c.bf16 %v98_v14, %v97_v13  ;;  %v1161_v25 = vpack.c.bf16 %v164_v19, %v163_v18  ;;  %v179_v27 = vld [vmem:[%s1932_s1 + $0x500] sm:$0xff]  ;;  %v180_v28 = vld [vmem:[%s1932_s1 + $0x508] sm:$0xff]  ;;  %v166_v31 = vld [vmem:[%s1932_s1 + $0x498] sm:$0xff] }
  0x2f   :  { %1140 = vmatpush3.bf16.msra.mxu1 %v1139_v21  ;;  %v196_v21 = vld [vmem:[%s1932_s1 + $0x588] sm:$0xff]  ;;  %v197_v33 = vld [vmem:[%s1932_s1 + $0x590] sm:$0xff]  ;;  %v1165_v38 = vpack.c.bf16 %v166_v31, %v165_v30  ;;  %v150_v40 = vld [vmem:[%s1932_s1 + $0x418] sm:$0xff] }
  0x30   :  { %1142 = vmatprep.subr.bf16.mxu1 %v1141_v26  ;;  %v148_v26 = vld [vmem:[%s1932_s1 + $0x408] sm:$0xff]  ;;  %v1193_v29 = vpack.c.bf16 %v196_v21, %v195_v20  ;;  %v17_v37 = vld [vmem:[%s1931_s0 + $0x10] sm:$0xff]  ;;  %v182_v46 = vld [vmem:[%s1932_s1 + $0x518] sm:$0xff] }
  0x31   :  { %1112 = vmatpush3.bf16.msra.mxu0 %v1111_v34  ;;  %v198_v34 = vld [vmem:[%s1932_s1 + $0x598] sm:$0xff]  ;;  %v149_v39 = vld [vmem:[%s1932_s1 + $0x410] sm:$0xff]  ;;  %v1741_v43 = vrot.slane %v17_v37, %v1432_v10  ;;  %v260_v44 = vcombine.high %v17_v37, %v17_v37  ;;  %v167_v47 = vld [vmem:[%s1932_s1 + $0x4a0] sm:$0xff] }
  0x32   :  { %1114 = vmatprep.subr.bf16.mxu0 %v1113_v36  ;;  %v1195_v36 = vpack.c.bf16 %v180_v28, %v179_v27  ;;  %v1197_v45 = vpack.c.bf16 %v198_v34, %v197_v33  ;;  %v168_v48 = vld [vmem:[%s1932_s1 + $0x4a8] sm:$0xff] }
  0x33   :  { %1144 = vmatpush3.bf16.msra.mxu1 %v1143_v35  ;;  %v1163_v35 = vpack.c.bf16 %v148_v26, %v147_v23  ;;  %v1762_v52 = vrot.slane %v260_v44, %v1432_v10 }
  0x34   :  { %1146 = vmatprep.subr.bf16.mxu1 %v1145_v42  ;;  %v181_v42 = vld [vmem:[%s1932_s1 + $0x510] sm:$0xff] }
  0x35   :  { %1116 = vmatpush3.bf16.msra.mxu0 %v1115_v49  ;;  %v199_v49 = vld [vmem:[%s1932_s1 + $0x5a0] sm:$0xff] }
  0x36   :  { %1118 = vmatprep.subr.bf16.mxu0 %v1117_v51  ;;  %v275_v51 = vcombine.high %v1741_v43, %v1741_v43 }
  0x37   :  { %1148 = vmatpush3.bf16.msra.mxu1 %v1147_v50  ;;  %v200_v50 = vld [vmem:[%s1932_s1 + $0x5a8] sm:$0xff] }
  0x38   :  { %1150 = vmatprep.subr.bf16.mxu1 %v1149_v55 }
  0x39   :  { %1120 = vmatpush3.bf16.msra.mxu0 %v1119_v61 }
  0x3a   :  { %1122 = vmatprep.subr.bf16.mxu0 %v1121_v63 }
  0x3b   :  { %1152 = vmatpush3.bf16.msra.mxu1 %v1151_v62 }
  0x3c   :  { %1154 = vmatprep.subr.bf16.mxu1 %v1153_v3 }
  0x3d   :  { %1124 = vmatpush3.bf16.msra.mxu0 %v1123_v9 }
  0x3e   :  { %1126 = vmatprep.subr.bf16.mxu0 %v1125_v12 }
  0x3f   :  { %1156 = vmatpush3.bf16.msra.mxu1 %v1155_v11 }
  0x40   :  { %1158 = vmatprep.subr.bf16.mxu1 %v1157_v16 }
  0x41   :  { %1128 = vmatpush3.bf16.msra.mxu0 %v1127_v22 }
  0x42   :  { %1162 = vmatprep.subr.bf16.mxu0 %v1161_v25 }
  0x43   :  { %1160 = vmatpush3.bf16.msra.mxu1 %v1159_v24 }
  0x44   :  { %1194 = vmatprep.subr.bf16.mxu1 %v1193_v29  ;;  %504 = vmatmul.mubr.f32.vlgmr.msra.gmra.mrb[2].mxu0 %v1599_v32 }
  0x45   :  { %8 = vsyncpa [#allocation3], 0  ;;  %1164 = vmatpush3.bf16.msra.mxu0 %v1163_v35  ;;  %v1167_v53 = vpack.c.bf16 %v150_v40, %v149_v39  ;;  %v1199_v32 = vpack.c.bf16 %v182_v46, %v181_v42  ;;  %v1169_v54 = vpack.c.bf16 %v168_v48, %v167_v47  ;;  %v151_v55 = vld [vmem:[%s1932_s1 + $0x420] sm:$0xff]  ;;  %v152_v56 = vld [vmem:[%s1932_s1 + $0x428] sm:$0xff]  ;;  %v1201_v57 = vpack.c.bf16 %v200_v50, %v199_v49 }
  0x46   :  { %574 = vmatmul.mubr.f32.vlgmr.msra.gmra.mrb[2].mxu1 %v1613_v41  ;;  %1166 = vmatprep.subr.bf16.mxu0 %v1165_v38  ;;  %v183_v10 = vld [vmem:[%s1932_s1 + $0x520] sm:$0xff]  ;;  %v276_v41 = vcombine.high %v1762_v52, %v1762_v52  ;;  %v184_v58 = vld [vmem:[%s1932_s1 + $0x528] sm:$0xff]  ;;  %v169_v59 = vld [vmem:[%s1932_s1 + $0x4b0] sm:$0xff]  ;;  %v1171_v63 = vpack.c.bf16 %v152_v56, %v151_v55  ;;  %vm1265_vm0 = vmmov 0   ;;  %vm296_vm1 = vcmask 261120  }
  0x47   :  { %1196 = vmatpush3.bf16.msra.mxu1 %v1195_v36  ;;  %v170_v60 = vld [vmem:[%s1932_s1 + $0x4b8] sm:$0xff]  ;;  %643 = vmatprep.mubr.f32.mxu0 %v275_v51  ;;  %v201_v61 = vld [vmem:[%s1932_s1 + $0x5b0] sm:$0xff]  ;;  %v1203_v0 = vpack.c.bf16 %v184_v58, %v183_v10  ;;  %v171_v7 = vld [vmem:[%s1932_s1 + $0x4c0] sm:$0xff] }
  0x48   :  { %1198 = vmatprep.subr.bf16.mxu1 %v1197_v45  ;;  %v202_v62 = vld [vmem:[%s1932_s1 + $0x5b8] sm:$0xff]  ;;  %713 = vmatprep.mubr.f32.mxu1 %v276_v41  ;;  %v1173_v1 = vpack.c.bf16 %v170_v60, %v169_v59  ;;  %v153_v2 = vld [vmem:[%s1932_s1 + $0x430] sm:$0xff]  ;;  %v172_v8 = vld [vmem:[%s1932_s1 + $0x4c8] sm:$0xff] }
  0x49   :  { %1168 = vmatpush3.bf16.msra.mxu0 %v1167_v53  ;;  %v154_v3 = vld [vmem:[%s1932_s1 + $0x438] sm:$0xff]  ;;  %v185_v4 = vld [vmem:[%s1932_s1 + $0x530] sm:$0xff]  ;;  %v1205_v5 = vpack.c.bf16 %v202_v62, %v201_v61  ;;  %v203_v9 = vld [vmem:[%s1932_s1 + $0x5c0] sm:$0xff]  ;;  %v1177_v14 = vpack.c.bf16 %v172_v8, %v171_v7  ;;  %v1264_v62 = vmov 0.0|0.0  }
  0x4a   :  { %1170 = vmatprep.subr.bf16.mxu0 %v1169_v54  ;;  %v186_v6 = vld [vmem:[%s1932_s1 + $0x538] sm:$0xff]  ;;  %v204_v11 = vld [vmem:[%s1932_s1 + $0x5c8] sm:$0xff]  ;;  %v1175_v12 = vpack.c.bf16 %v154_v3, %v153_v2  ;;  %v155_v15 = vld [vmem:[%s1932_s1 + $0x440] sm:$0xff]  ;;  %v1266_v2 = vmov 0.0  }
  0x4b   :  { %1200 = vmatpush3.bf16.msra.mxu1 %v1199_v32  ;;  %v1207_v13 = vpack.c.bf16 %v186_v6, %v185_v4  ;;  %v156_v16 = vld [vmem:[%s1932_s1 + $0x448] sm:$0xff]  ;;  %v187_v17 = vld [vmem:[%s1932_s1 + $0x540] sm:$0xff]  ;;  %v1209_v18 = vpack.c.bf16 %v204_v11, %v203_v9  ;;  %v173_v20 = vld [vmem:[%s1932_s1 + $0x4d0] sm:$0xff] }
  0x4c   :  { %1202 = vmatprep.subr.bf16.mxu1 %v1201_v57  ;;  %v188_v19 = vld [vmem:[%s1932_s1 + $0x548] sm:$0xff]  ;;  %v174_v21 = vld [vmem:[%s1932_s1 + $0x4d8] sm:$0xff]  ;;  %v205_v22 = vld [vmem:[%s1932_s1 + $0x5d0] sm:$0xff]  ;;  %v1179_v24 = vpack.c.bf16 %v156_v16, %v155_v15 }
  0x4d   :  { %1172 = vmatpush3.bf16.msra.mxu0 %v1171_v63  ;;  %v206_v23 = vld [vmem:[%s1932_s1 + $0x5d8] sm:$0xff]  ;;  %v1211_v25 = vpack.c.bf16 %v188_v19, %v187_v17  ;;  %v1181_v26 = vpack.c.bf16 %v174_v21, %v173_v20  ;;  %v157_v27 = vld [vmem:[%s1932_s1 + $0x450] sm:$0xff]  ;;  %v175_v33 = vld [vmem:[%s1932_s1 + $0x4e0] sm:$0xff] }
  0x4e   :  { %1174 = vmatprep.subr.bf16.mxu0 %v1173_v1  ;;  %v158_v28 = vld [vmem:[%s1932_s1 + $0x458] sm:$0xff]  ;;  %v189_v29 = vld [vmem:[%s1932_s1 + $0x550] sm:$0xff]  ;;  %v1213_v30 = vpack.c.bf16 %v206_v23, %v205_v22  ;;  %v176_v34 = vld [vmem:[%s1932_s1 + $0x4e8] sm:$0xff] }
  0x4f   :  { %1204 = vmatpush3.bf16.msra.mxu1 %v1203_v0  ;;  %v190_v31 = vld [vmem:[%s1932_s1 + $0x558] sm:$0xff]  ;;  %v207_v35 = vld [vmem:[%s1932_s1 + $0x5e0] sm:$0xff]  ;;  %v208_v36 = vld [vmem:[%s1932_s1 + $0x5e8] sm:$0xff]  ;;  %v1183_v37 = vpack.c.bf16 %v158_v28, %v157_v27  ;;  %v1185_v39 = vpack.c.bf16 %v176_v34, %v175_v33 }
  0x50   :  { %1206 = vmatprep.subr.bf16.mxu1 %v1205_v5  ;;  %v1215_v38 = vpack.c.bf16 %v190_v31, %v189_v29  ;;  %v159_v40 = vld [vmem:[%s1932_s1 + $0x460] sm:$0xff]  ;;  %v160_v42 = vld [vmem:[%s1932_s1 + $0x468] sm:$0xff]  ;;  %v1217_v45 = vpack.c.bf16 %v208_v36, %v207_v35  ;;  %v177_v47 = vld [vmem:[%s1932_s1 + $0x4f0] sm:$0xff] }
  0x51   :  { %1176 = vmatpush3.bf16.msra.mxu0 %v1175_v12  ;;  %v191_v44 = vld [vmem:[%s1932_s1 + $0x560] sm:$0xff]  ;;  %v192_v46 = vld [vmem:[%s1932_s1 + $0x568] sm:$0xff]  ;;  %v178_v48 = vld [vmem:[%s1932_s1 + $0x4f8] sm:$0xff]  ;;  %v1187_v51 = vpack.c.bf16 %v160_v42, %v159_v40 }
  0x52   :  { %1178 = vmatprep.subr.bf16.mxu0 %v1177_v14  ;;  %v209_v49 = vld [vmem:[%s1932_s1 + $0x5f0] sm:$0xff]  ;;  %v210_v50 = vld [vmem:[%s1932_s1 + $0x5f8] sm:$0xff]  ;;  %v1219_v53 = vpack.c.bf16 %v192_v46, %v191_v44  ;;  %v1189_v32 = vpack.c.bf16 %v178_v48, %v177_v47  ;;  %v211_v59 = vld [vmem:[%s1932_s1 + $0x600] sm:$0xff] }
  0x53   :  { %1208 = vmatpush3.bf16.msra.mxu1 %v1207_v13  ;;  %v161_v54 = vld [vmem:[%s1932_s1 + $0x470] sm:$0xff]  ;;  %v162_v55 = vld [vmem:[%s1932_s1 + $0x478] sm:$0xff]  ;;  %v1221_v56 = vpack.c.bf16 %v210_v50, %v209_v49  ;;  %v212_v60 = vld [vmem:[%s1932_s1 + $0x608] sm:$0xff] }
  0x54   :  { %1210 = vmatprep.subr.bf16.mxu1 %v1209_v18  ;;  %v193_v10 = vld [vmem:[%s1932_s1 + $0x570] sm:$0xff]  ;;  %v194_v41 = vld [vmem:[%s1932_s1 + $0x578] sm:$0xff]  ;;  %v1191_v57 = vpack.c.bf16 %v162_v55, %v161_v54  ;;  %v1226_v61 = vpack.c.bf16 %v212_v60, %v211_v59 }
  0x55   :  { %1180 = vmatpush3.bf16.msra.mxu0 %v1179_v24  ;;  %v1223_v58 = vpack.c.bf16 %v194_v41, %v193_v10  ;;  %v213_v63 = vld [vmem:[%s1932_s1 + $0x610] sm:$0xff]  ;;  %v214_v0 = vld [vmem:[%s1932_s1 + $0x618] sm:$0xff] }
  0x56   :  { %1182 = vmatprep.subr.bf16.mxu0 %v1181_v26  ;;  %v1229_v1 = vpack.c.bf16 %v214_v0, %v213_v63  ;;  %v805_v3 = vld.sshfl [vmem:[%s1931_s0 + $0x18] sm:$0x3 pattern:$0x76325410]  ;;  %s1267_s0 = smov [#allocation2]  }
  0x57   :  { %1212 = vmatpush3.bf16.msra.mxu1 %v1211_v25 }
  0x58   :  { %1214 = vmatprep.subr.bf16.mxu1 %v1213_v30 }
  0x59   :  { %1184 = vmatpush3.bf16.msra.mxu0 %v1183_v37 }
  0x5a   :  { %1186 = vmatprep.subr.bf16.mxu0 %v1185_v39 }
  0x5b   :  { %1216 = vmatpush3.bf16.msra.mxu1 %v1215_v38 }
  0x5c   :  { %1218 = vmatprep.subr.bf16.mxu1 %v1217_v45 }
  0x5d   :  { %1188 = vmatpush3.bf16.msra.mxu0 %v1187_v51 }
  0x5e   :  { %1190 = vmatprep.subr.bf16.mxu0 %v1189_v32 }
  0x5f   :  { %1220 = vmatpush3.bf16.msra.mxu1 %v1219_v53 }
  0x60   :  { %1222 = vmatprep.subr.bf16.mxu1 %v1221_v56 }
  0x61   :  { %1192 = vmatpush3.bf16.msra.mxu0 %v1191_v57 }
  0x62   :  { %1225 = vmatprep.subr.bf16.mxu0 %v1264_v62 }
  0x63   :  { %1224 = vmatpush3.bf16.msra.mxu1 %v1223_v58 }
  0x64   :  { %644 = vmatmul.mubr.f32.vlgmr.msra.gmra.mrb[4].mxu0 %v1741_v43  ;;  %v804_v43 = vld [vmem:[%s1933_s2] ss:$0 sm:$0xff]  ;;  %s796_s2 = sshll.u32 %s1267_s0, 4  ;;  %s797_s2 = int_to_ptr.vmem [resolvable:$true] %s796_s2 }
  0x65   :  { %1227 = vmatpush3.bf16.msra.mxu0 %v1226_v61  ;;  %1030 = vmatprep.mubr.msk.f32.mxu0 %vm1265_vm0, %v1266_v2  ;;  %s1239_s8 = scalar_lea.vmem %s797_s2, 32  ;;  %p1244_p1 = scmp.lt.s32.totalorder %s797_s2, %s797_s2 }
  0x66   :  { %714 = vmatmul.mubr.f32.vlgmr.msra.gmra.mrb[4].mxu1 %v1762_v52  ;;  %1228 = vmatprep.subr.bf16.mxu0 %v1264_v62  ;;  %p1240_p0 = scmp.ne.s32.totalorder %s797_s2, %s1239_s8  ;;  %p1245_p2 = scmp.lt.s32.totalorder %s1239_s8, %s1239_s8 }
  0x68   :  { %p1246_p3 = por %p1245_p2, %p1244_p1 }
  0x69   :  { %1230 = vmatpush3.bf16.msra.mxu0 %v1229_v1 }
  0x6a   :  { %p1247_p4 = pnand %p1246_p3, %p1240_p0 }
  0x6c   :  { %1031 = vmatmul.mubr.msk.f32.vlgmr.msra.gmra.mrb[6].mxu0 %vm296_vm1, %v805_v3 }
  0xf7   :  { %v839_v4 = vpop.f32.mrb[0].mxu0 }
  0xf8   :  { %v840_v5 = vpop.f32.mrb[1].mxu0 }
  0xf9   :  { %v874_v6 = vpop.f32.mrb[0].mxu1  ;;  %v841_v52 = vadd.f32 %v840_v5, %v839_v4 }
  0xfa   :  { %v875_v7 = vpop.f32.mrb[1].mxu1 }
  0xfb   :  { %v876_v8 = vadd.f32 %v875_v7, %v874_v6  ;;  %v366_v9 = vadd.f32 %v841_v52, %v804_v43 }
  0xfd   :  { %v436_v11 = vadd.f32 %v876_v8, %v366_v9 }
 0x117   :  { %v909_v12 = vpop.f32.mrb[2].mxu0 }
 0x118   :  { %v910_v13 = vpop.f32.mrb[3].mxu0 }
 0x119   :  { %v944_v14 = vpop.f32.mrb[2].mxu1  ;;  %v911_v15 = vadd.f32 %v910_v13, %v909_v12 }
 0x11a   :  { %v945_v16 = vpop.f32.mrb[3].mxu1 }
 0x11b   :  { %v946_v17 = vadd.f32 %v945_v16, %v944_v14  ;;  %v506_v18 = vadd.f32 %v911_v15, %v436_v11 }
 0x11d   :  { %v576_v19 = vadd.f32 %v946_v17, %v506_v18 }
 0x137   :  { %v979_v20 = vpop.f32.mrb[4].mxu0 }
 0x138   :  { %v980_v21 = vpop.f32.mrb[5].mxu0 }
 0x139   :  { %v1014_v22 = vpop.f32.mrb[4].mxu1  ;;  %v981_v23 = vadd.f32 %v980_v21, %v979_v20 }
 0x13a   :  { %v1015_v24 = vpop.f32.mrb[5].mxu1 }
 0x13b   :  { %v1016_v25 = vadd.f32 %v1015_v24, %v1014_v22  ;;  %v646_v26 = vadd.f32 %v981_v23, %v576_v19 }
 0x13d   :  { %v716_v27 = vadd.f32 %v1016_v25, %v646_v26 }
 0x13f   :  { %v785_v28 = vpop.f32.mrb[6].mxu0 }
 0x140   :  { %v786_v29 = vadd.f32 %v785_v28, %v716_v27  ;;  %v1032_v30 = vpop.f32.mrb[7].mxu0 }
 0x142   :  { %789 = vst [vmem:[#allocation2] sm:$0x3] %v786_v29 }
 0x143   :  { %1250 = shalt.err (!%p1247_p4)
}
 0x144   :  { %s1251_s11 = scalar_lea.hbm %s1934_s3, 32 }
 0x145   :  { %p1252_p5 = scmp.ne.s32.totalorder %s1934_s3, %s1251_s11  ;;  %p1255_p6 = scmp.lt.u32.totalorder %s1251_s11, %s1934_s3 }
 0x147   :  { %p1257_p7 = pnand %p1255_p6, %p1252_p5 }
 0x149   :  { %1260 = shalt.err (!%p1257_p7)
}
 0x14a   :  { %799 = dma.vmem_to_hbm [thread:$0]  %s797_s2, 32, %s1934_s3, [#allocation3]  }
 0x14b   :  { %1261 = dma.done.wait [#allocation3], 32  }
 0x14c   :  { %1262 = vsyncadd [#allocation3], 4294967264 }
 0x14d   :  { %803 = vsyncpa [#allocation3], 1 }

</bundles_post_ra>
